<compile_context>
chip_gen: v6e
topology: v6e:2x2x1
jax: 0.10.0
libtpu: 0.0.40
codegen_flags: <defaults>
</compile_context>

<pallas_src>
import numpy as np
import jax
import jax.numpy as jnp
from jax import lax
from jax.experimental import pallas as pl
from jax.experimental.pallas import tpu as pltpu

# ----------------------------- configuration ------------------------------
B, TMAX, IDIM = 2, 8, 16          # batch, padded seq len, input feature dim
ELAYERS = 2                        # encoder layers
EUNITS = 32                        # cdim (LSTM hidden)
EPROJS = 32                        # hdim (projection units)
ODIM = 16                          # output vocab dim
SUBSAMPLE = [1, 2]                 # per-layer subsampling (len == ELAYERS)
DROPOUT = 0.0                      # F.dropout(p=0) = identity


# --------------------------- fused encoder kernel --------------------------
def _encoder_kernel(*refs):
    """Single-invocation kernel: 2x (LSTM scan + projection) + LN/MLP/log_softmax head.

    Ref order: [x2d, mask_l0..mask_l{L-1}, mask_out,
                per-layer (wih_t, whh_t, bias, wproj_t, bproj) * L,
                gamma, beta, w1_t, b1, w2_t, b2,
                out, (hn_l, cn_l) * L,
                y_scratch]
    """
    idx = 0
    x_ref = refs[idx]; idx += 1
    mask_refs = refs[idx:idx + ELAYERS]; idx += ELAYERS
    mo_ref = refs[idx]; idx += 1
    layer_refs = []
    for _ in range(ELAYERS):
        layer_refs.append(refs[idx:idx + 5]); idx += 5
    gamma_ref, beta_ref, w1_ref, b1_ref, w2_ref, b2_ref = refs[idx:idx + 6]; idx += 6
    out_ref = refs[idx]; idx += 1
    state_refs = refs[idx:idx + 2 * ELAYERS]; idx += 2 * ELAYERS
    y_scr = refs[idx]

    H = EUNITS
    x = x_ref[...]                                  # (T0*B, in_dim), time-major rows
    T_cur = x_ref.shape[0] // B

    for l in range(ELAYERS):
        wih_ref, whh_ref, b_ref, wp_ref, bp_ref = layer_refs[l]
        mf = mask_refs[l][...]                      # (T_cur*B, 1): 1=valid, 0=pad
        whh = whh_ref[...]                          # (H, 4H)

        # Hoisted input projection: ONE matmul over the full time-major slab.
        gates_in = jnp.dot(x, wih_ref[...],
                           preferred_element_type=jnp.float32) + b_ref[...]  # (T*B, 4H)

        h = jnp.zeros((B, H), jnp.float32)
        c = jnp.zeros((B, H), jnp.float32)
        sub = SUBSAMPLE[l]

        for t in range(T_cur):                      # static unroll; h/c live in vregs
            g = gates_in[t * B:(t + 1) * B, :] + jnp.dot(
                h, whh, preferred_element_type=jnp.float32)   # (B, 4H), gate order i,f,g,o
            i_g = jax.nn.sigmoid(g[:, 0:H])
            f_g = jax.nn.sigmoid(g[:, H:2 * H])
            g_g = jnp.tanh(g[:, 2 * H:3 * H])
            o_g = jax.nn.sigmoid(g[:, 3 * H:4 * H])
            c_new = f_g * c + i_g * g_g
            h_new = o_g * jnp.tanh(c_new)

            m = mf[t * B:(t + 1) * B, :]            # (B, 1) validity
            h = h + m * (h_new - h)                 # packed-seq: padded steps frozen
            c = c + m * (c_new - c)
            if t % sub == 0:                        # subsample y[::sub] at store time
                r = (t // sub) * B
                y_scr[r:r + B, :] = m * h_new       # pad_packed_sequence zero-fills

        state_refs[2 * l][...] = h                  # h_n / c_n (last valid step)
        state_refs[2 * l + 1][...] = c

        T_cur = -(-T_cur // sub)                    # kept frames after subsampling
        y = y_scr[0:T_cur * B, :]                   # (T_cur*B, H) slab in VMEM
        x = jnp.dot(y, wp_ref[...],
                    preferred_element_type=jnp.float32) + bp_ref[...]
        if l < ELAYERS - 1:
            x = jnp.tanh(x)                         # F.dropout(p=0) = identity

    # ----- head: LayerNorm(eprojs) + Linear + LeakyReLU + Linear + log_softmax -----
    mu = jnp.mean(x, axis=-1, keepdims=True)
    var = jnp.mean(jnp.square(x - mu), axis=-1, keepdims=True)
    xn = (x - mu) * lax.rsqrt(var + 1e-5)
    xn = xn * gamma_ref[...] + beta_ref[...]

    y1 = jnp.dot(xn, w1_ref[...], preferred_element_type=jnp.float32) + b1_ref[...]
    y1 = jnp.where(y1 >= 0.0, y1, 0.01 * y1)        # LeakyReLU(0.01)
    z = jnp.dot(y1, w2_ref[...], preferred_element_type=jnp.float32) + b2_ref[...]

    zmax = jnp.max(z, axis=-1, keepdims=True)       # log_softmax
    lse = jnp.log(jnp.sum(jnp.exp(z - zmax), axis=-1, keepdims=True)) + zmax
    out_ref[...] = (z - lse) * mo_ref[...]          # masked_fill(pad, 0.0); single store


# ------------------------------ full encoder -------------------------------
def encoder_forward(params, xs_pad, ilens):
    """xs_pad: (B, Tmax, idim) batch-first; ilens: (B,) int32 (sorted descending).

    Returns (out (B, T', odim), olens (B,), elayer_states) like the PyTorch module.
    Assumes max(ilens) == Tmax (pad_packed_sequence would otherwise trim T).
    """
    x_tm = jnp.transpose(xs_pad, (1, 0, 2)).astype(jnp.float32)   # -> time-major
    T = x_tm.shape[0]
    x2d = x_tm.reshape(T * B, IDIM)
    ilens = ilens.astype(jnp.int32)

    # Per-layer validity masks (packed-sequence semantics) + output mask.
    masks = []
    cur_T, cur_lens = T, ilens
    for l in range(ELAYERS):
        masks.append((jnp.arange(cur_T)[:, None] < cur_lens[None, :])
                     .astype(jnp.float32).reshape(cur_T * B, 1))
        sub = SUBSAMPLE[l]
        if sub > 1:
            cur_T = -(-cur_T // sub)
            cur_lens = (cur_lens + 1) // sub
    mask_out = (jnp.arange(cur_T)[:, None] < cur_lens[None, :]) \
        .astype(jnp.float32).reshape(cur_T * B, 1)
    T_out, olens = cur_T, cur_lens

    inputs = [x2d] + masks + [mask_out]
    for l in range(ELAYERS):
        p = params["rnnp"][l]
        inputs += [p["wih_t"], p["whh_t"], p["bias"], p["wproj_t"], p["bproj"]]
    hp = params["head"]
    inputs += [hp["gamma"], hp["beta"], hp["w1_t"], hp["b1"], hp["w2_t"], hp["b2"]]

    out_shapes = [jax.ShapeDtypeStruct((T_out * B, ODIM), jnp.float32)]
    for _ in range(ELAYERS):
        out_shapes += [jax.ShapeDtypeStruct((B, EUNITS), jnp.float32)] * 2

    results = pl.pallas_call(
        _encoder_kernel,
        out_shape=tuple(out_shapes),
        scratch_shapes=[pltpu.VMEM((T * B, EUNITS), jnp.float32)],
        cost_estimate=pl.CostEstimate(flops=550_000, transcendentals=6_000,
                                      bytes_accessed=80_000),
    )(*inputs)

    out2d = results[0]
    out = jnp.transpose(out2d.reshape(T_out, B, ODIM), (1, 0, 2))  # back to (B, T', odim)
    states = []
    for l in range(ELAYERS):
        hn, cn = results[1 + 2 * l], results[2 + 2 * l]
        states.append((hn[None], cn[None]))          # ((1,B,cdim),(1,B,cdim)) per layer
    return out, olens, states


# ------------------------------ params init --------------------------------
def init_params(key):
    """Weights are stored pre-transposed / pre-fused for the kernel."""
    params = {"rnnp": [], "head": {}}
    for layer in range(ELAYERS):
        in_dim = IDIM if layer == 0 else EPROJS
        k = 1.0 / np.sqrt(EUNITS)
        key, *ks = jax.random.split(key, 7)
        w_ih = jax.random.uniform(ks[0], (4 * EUNITS, in_dim), jnp.float32, -k, k)
        w_hh = jax.random.uniform(ks[1], (4 * EUNITS, EUNITS), jnp.float32, -k, k)
        b_ih = jax.random.uniform(ks[2], (4 * EUNITS,), jnp.float32, -k, k)
        b_hh = jax.random.uniform(ks[3], (4 * EUNITS,), jnp.float32, -k, k)
        w_proj = jax.random.uniform(ks[4], (EPROJS, EUNITS), jnp.float32, -k, k)
        b_proj = jax.random.uniform(ks[5], (EPROJS,), jnp.float32, -k, k)
        params["rnnp"].append({
            "wih_t": jnp.transpose(w_ih),                 # (in_dim, 4H)
            "whh_t": jnp.transpose(w_hh),                 # (H, 4H)
            "bias": (b_ih + b_hh).reshape(1, 4 * EUNITS),
            "wproj_t": jnp.transpose(w_proj),             # (H, P)
            "bproj": b_proj.reshape(1, EPROJS),
        })
    key, k1, k2, k3, k4 = jax.random.split(key, 5)
    kh = 1.0 / np.sqrt(EPROJS)
    params["head"] = {
        "gamma": jnp.ones((1, EPROJS), jnp.float32),
        "beta": jnp.zeros((1, EPROJS), jnp.float32),
        "w1_t": jnp.transpose(jax.random.uniform(k1, (EPROJS, EPROJS), jnp.float32, -kh, kh)),
        "b1": jax.random.uniform(k2, (EPROJS,), jnp.float32, -kh, kh).reshape(1, EPROJS),
        "w2_t": jnp.transpose(jax.random.uniform(k3, (ODIM, EPROJS), jnp.float32, -kh, kh)),
        "b2": jax.random.uniform(k4, (ODIM,), jnp.float32, -kh, kh).reshape(1, ODIM),
    }
    return params


# --------------------------- pure-JAX reference -----------------------------
def reference_forward(params, xs_pad, ilens):
    x = jnp.transpose(xs_pad, (1, 0, 2)).astype(jnp.float32)
    ilens = ilens.astype(jnp.int32)
    H = EUNITS
    ref_states = []
    for layer in range(ELAYERS):
        T, Bb, _ = x.shape
        p = params["rnnp"][layer]
        mask = (jnp.arange(T)[:, None] < ilens[None, :]).astype(jnp.float32)[:, :, None]

        def step(carry, inp, p=p):
            h, c = carry
            xt, mt = inp
            g = xt @ p["wih_t"] + h @ p["whh_t"] + p["bias"]
            i = jax.nn.sigmoid(g[:, :H]); f = jax.nn.sigmoid(g[:, H:2 * H])
            gg = jnp.tanh(g[:, 2 * H:3 * H]); o = jax.nn.sigmoid(g[:, 3 * H:])
            cn = f * c + i * gg
            hn = o * jnp.tanh(cn)
            return (mt * hn + (1 - mt) * h, mt * cn + (1 - mt) * c), mt * hn

        init = (jnp.zeros((Bb, H), jnp.float32), jnp.zeros((Bb, H), jnp.float32))
        (hT, cT), y = lax.scan(step, init, (x, mask))
        ref_states.append((hT, cT))
        sub = SUBSAMPLE[layer]
        if sub > 1:
            y = y[::sub]
            ilens = (ilens + 1) // sub
        x = y @ p["wproj_t"] + p["bproj"]
        if layer < ELAYERS - 1:
            x = jnp.tanh(x)

    T = x.shape[0]
    mask = (jnp.arange(T)[:, None] < ilens[None, :]).astype(jnp.float32)[:, :, None]
    hp = params["head"]
    mu = jnp.mean(x, -1, keepdims=True)
    var = jnp.mean((x - mu) ** 2, -1, keepdims=True)
    xn = (x - mu) / jnp.sqrt(var + 1e-5) * hp["gamma"] + hp["beta"]
    y = xn @ hp["w1_t"] + hp["b1"]
    y = jnp.where(y >= 0, y, 0.01 * y)
    z = y @ hp["w2_t"] + hp["b2"]
    out = jax.nn.log_softmax(z, axis=-1) * mask
    return jnp.transpose(out, (1, 0, 2)), ilens, ref_states


# ---------------------------------- main ------------------------------------
if __name__ == "__main__":
    key = jax.random.PRNGKey(0)
    pkey, xkey = jax.random.split(key)
    params = init_params(pkey)

    xs_pad = jax.random.normal(xkey, (B, TMAX, IDIM), jnp.float32)
    ilens = jnp.array([TMAX, 6], dtype=jnp.int32)   # descending (pack_padded enforce_sorted)

    out, olens, states = encoder_forward(params, xs_pad, ilens)
    out = jax.block_until_ready(out)

    ref, ref_lens, ref_states = reference_forward(params, xs_pad, ilens)
    np.testing.assert_allclose(np.asarray(out), np.asarray(ref), atol=2e-4, rtol=2e-4)
    assert np.array_equal(np.asarray(olens), np.asarray(ref_lens))
    for l in range(ELAYERS):
        np.testing.assert_allclose(np.asarray(states[l][0][0]),
                                   np.asarray(ref_states[l][0]), atol=2e-4, rtol=2e-4)
        np.testing.assert_allclose(np.asarray(states[l][1][0]),
                                   np.asarray(ref_states[l][1]), atol=2e-4, rtol=2e-4)

    print("KERNEL_OK")
</pallas_src>

<mosaic_0001>
module attributes {stable_mosaic.version = 11 : i64} {
  func.func @_encoder_kernel(%arg0: memref<16x16xf32, #tpu.memory_space<vmem>>, %arg1: memref<16x1xf32, #tpu.memory_space<vmem>>, %arg2: memref<16x1xf32, #tpu.memory_space<vmem>>, %arg3: memref<8x1xf32, #tpu.memory_space<vmem>>, %arg4: memref<16x128xf32, #tpu.memory_space<vmem>>, %arg5: memref<32x128xf32, #tpu.memory_space<vmem>>, %arg6: memref<1x128xf32, #tpu.memory_space<vmem>>, %arg7: memref<32x32xf32, #tpu.memory_space<vmem>>, %arg8: memref<1x32xf32, #tpu.memory_space<vmem>>, %arg9: memref<32x128xf32, #tpu.memory_space<vmem>>, %arg10: memref<32x128xf32, #tpu.memory_space<vmem>>, %arg11: memref<1x128xf32, #tpu.memory_space<vmem>>, %arg12: memref<32x32xf32, #tpu.memory_space<vmem>>, %arg13: memref<1x32xf32, #tpu.memory_space<vmem>>, %arg14: memref<1x32xf32, #tpu.memory_space<vmem>>, %arg15: memref<1x32xf32, #tpu.memory_space<vmem>>, %arg16: memref<32x32xf32, #tpu.memory_space<vmem>>, %arg17: memref<1x32xf32, #tpu.memory_space<vmem>>, %arg18: memref<32x16xf32, #tpu.memory_space<vmem>>, %arg19: memref<1x16xf32, #tpu.memory_space<vmem>>, %arg20: memref<8x16xf32, #tpu.memory_space<vmem>>, %arg21: memref<2x32xf32, #tpu.memory_space<vmem>>, %arg22: memref<2x32xf32, #tpu.memory_space<vmem>>, %arg23: memref<2x32xf32, #tpu.memory_space<vmem>>, %arg24: memref<2x32xf32, #tpu.memory_space<vmem>>, %arg25: memref<16x32xf32, #tpu.memory_space<vmem>>) attributes {dimension_semantics = [], scalar_prefetch = 0 : i64, scratch_operands = 1 : i64, tpu.core_type = #tpu.core_type<tc>} {
    %c0 = arith.constant 0 : index
    %c0_0 = arith.constant 0 : index
    %0 = vector.load %arg0[%c0, %c0_0] : memref<16x16xf32, #tpu.memory_space<vmem>>, vector<16x16xf32>
    %c0_1 = arith.constant 0 : index
    %c0_2 = arith.constant 0 : index
    %1 = vector.load %arg1[%c0_1, %c0_2] : memref<16x1xf32, #tpu.memory_space<vmem>>, vector<16x1xf32>
    %c0_3 = arith.constant 0 : index
    %c0_4 = arith.constant 0 : index
    %2 = vector.load %arg5[%c0_3, %c0_4] : memref<32x128xf32, #tpu.memory_space<vmem>>, vector<32x128xf32>
    %c0_5 = arith.constant 0 : index
    %c0_6 = arith.constant 0 : index
    %3 = vector.load %arg4[%c0_5, %c0_6] : memref<16x128xf32, #tpu.memory_space<vmem>>, vector<16x128xf32>
    %cst = arith.constant dense<0.000000e+00> : vector<16x128xf32>
    %4 = tpu.matmul %0, %3, %cst {dimension_numbers = #tpu.dot_dimension_numbers<[1], [0], [0], [1], [0, 0, 1, 1], [], []>} : vector<16x16xf32>, vector<16x128xf32>, vector<16x128xf32> -> vector<16x128xf32>
    %c0_7 = arith.constant 0 : index
    %c0_8 = arith.constant 0 : index
    %5 = vector.load %arg6[%c0_7, %c0_8] : memref<1x128xf32, #tpu.memory_space<vmem>>, vector<1x128xf32>
    %6 = vector.broadcast %5 : vector<1x128xf32> to vector<16x128xf32>
    %7 = arith.addf %4, %6 : vector<16x128xf32>
    %cst_9 = arith.constant 0.000000e+00 : f32
    %8 = vector.broadcast %cst_9 : f32 to vector<2x32xf32>
    %cst_10 = arith.constant 0.000000e+00 : f32
    %9 = vector.broadcast %cst_10 : f32 to vector<2x32xf32>
    %10 = vector.extract_strided_slice %7 {offsets = [0, 0], sizes = [2, 128], strides = [1, 1]} : vector<16x128xf32> to vector<2x128xf32>
    %cst_11 = arith.constant dense<0.000000e+00> : vector<2x128xf32>
    %11 = tpu.matmul %8, %2, %cst_11 {dimension_numbers = #tpu.dot_dimension_numbers<[1], [0], [0], [1], [0, 0, 1, 1], [], []>} : vector<2x32xf32>, vector<32x128xf32>, vector<2x128xf32> -> vector<2x128xf32>
    %12 = arith.addf %10, %11 : vector<2x128xf32>
    %13 = vector.extract_strided_slice %12 {offsets = [0, 0], sizes = [2, 32], strides = [1, 1]} : vector<2x128xf32> to vector<2x32xf32>
    %14 = arith.negf %13 : vector<2x32xf32>
    %15 = math.exp %14 : vector<2x32xf32>
    %cst_12 = arith.constant 1.000000e+00 : f32
    %16 = vector.broadcast %cst_12 : f32 to vector<2x32xf32>
    %17 = arith.addf %16, %15 : vector<2x32xf32>
    %18 = arith.divf %16, %17 : vector<2x32xf32>
    %19 = vector.extract_strided_slice %12 {offsets = [0, 32], sizes = [2, 32], strides = [1, 1]} : vector<2x128xf32> to vector<2x32xf32>
    %20 = arith.negf %19 : vector<2x32xf32>
    %21 = math.exp %20 : vector<2x32xf32>
    %cst_13 = arith.constant 1.000000e+00 : f32
    %22 = vector.broadcast %cst_13 : f32 to vector<2x32xf32>
    %23 = arith.addf %22, %21 : vector<2x32xf32>
    %24 = arith.divf %22, %23 : vector<2x32xf32>
    %25 = vector.extract_strided_slice %12 {offsets = [0, 64], sizes = [2, 32], strides = [1, 1]} : vector<2x128xf32> to vector<2x32xf32>
    %26 = math.tanh %25 : vector<2x32xf32>
    %27 = vector.extract_strided_slice %12 {offsets = [0, 96], sizes = [2, 32], strides = [1, 1]} : vector<2x128xf32> to vector<2x32xf32>
    %28 = arith.negf %27 : vector<2x32xf32>
    %29 = math.exp %28 : vector<2x32xf32>
    %cst_14 = arith.constant 1.000000e+00 : f32
    %30 = vector.broadcast %cst_14 : f32 to vector<2x32xf32>
    %31 = arith.addf %30, %29 : vector<2x32xf32>
    %32 = arith.divf %30, %31 : vector<2x32xf32>
    %33 = arith.mulf %24, %9 : vector<2x32xf32>
    %34 = arith.mulf %18, %26 : vector<2x32xf32>
    %35 = arith.addf %33, %34 : vector<2x32xf32>
    %36 = math.tanh %35 : vector<2x32xf32>
    %37 = arith.mulf %32, %36 : vector<2x32xf32>
    %38 = vector.extract_strided_slice %1 {offsets = [0, 0], sizes = [2, 1], strides = [1, 1]} : vector<16x1xf32> to vector<2x1xf32>
    %39 = arith.subf %37, %8 : vector<2x32xf32>
    %40 = vector.broadcast %38 : vector<2x1xf32> to vector<2x32xf32>
    %41 = arith.mulf %40, %39 : vector<2x32xf32>
    %42 = arith.addf %8, %41 : vector<2x32xf32>
    %43 = arith.subf %35, %9 : vector<2x32xf32>
    %44 = vector.broadcast %38 : vector<2x1xf32> to vector<2x32xf32>
    %45 = arith.mulf %44, %43 : vector<2x32xf32>
    %46 = arith.addf %9, %45 : vector<2x32xf32>
    %47 = vector.broadcast %38 : vector<2x1xf32> to vector<2x32xf32>
    %48 = arith.mulf %47, %37 : vector<2x32xf32>
    %c0_15 = arith.constant 0 : index
    %c0_16 = arith.constant 0 : index
    %49 = vector.load %arg25[%c0_15, %c0_16] : memref<16x32xf32, #tpu.memory_space<vmem>>, vector<2x32xf32>
    tpu.vector_store %arg25[%c0_15, %c0_16], %48 {strides = array<i32>} : memref<16x32xf32, #tpu.memory_space<vmem>>, vector<2x32xf32>,
    %50 = vector.extract_strided_slice %7 {offsets = [2, 0], sizes = [2, 128], strides = [1, 1]} : vector<16x128xf32> to vector<2x128xf32>
    %cst_17 = arith.constant dense<0.000000e+00> : vector<2x128xf32>
    %51 = tpu.matmul %42, %2, %cst_17 {dimension_numbers = #tpu.dot_dimension_numbers<[1], [0], [0], [1], [0, 0, 1, 1], [], []>} : vector<2x32xf32>, vector<32x128xf32>, vector<2x128xf32> -> vector<2x128xf32>
    %52 = arith.addf %50, %51 : vector<2x128xf32>
    %53 = vector.extract_strided_slice %52 {offsets = [0, 0], sizes = [2, 32], strides = [1, 1]} : vector<2x128xf32> to vector<2x32xf32>
    %54 = arith.negf %53 : vector<2x32xf32>
    %55 = math.exp %54 : vector<2x32xf32>
    %cst_18 = arith.constant 1.000000e+00 : f32
    %56 = vector.broadcast %cst_18 : f32 to vector<2x32xf32>
    %57 = arith.addf %56, %55 : vector<2x32xf32>
    %58 = arith.divf %56, %57 : vector<2x32xf32>
    %59 = vector.extract_strided_slice %52 {offsets = [0, 32], sizes = [2, 32], strides = [1, 1]} : vector<2x128xf32> to vector<2x32xf32>
    %60 = arith.negf %59 : vector<2x32xf32>
    %61 = math.exp %60 : vector<2x32xf32>
    %cst_19 = arith.constant 1.000000e+00 : f32
    %62 = vector.broadcast %cst_19 : f32 to vector<2x32xf32>
    %63 = arith.addf %62, %61 : vector<2x32xf32>
    %64 = arith.divf %62, %63 : vector<2x32xf32>
    %65 = vector.extract_strided_slice %52 {offsets = [0, 64], sizes = [2, 32], strides = [1, 1]} : vector<2x128xf32> to vector<2x32xf32>
    %66 = math.tanh %65 : vector<2x32xf32>
    %67 = vector.extract_strided_slice %52 {offsets = [0, 96], sizes = [2, 32], strides = [1, 1]} : vector<2x128xf32> to vector<2x32xf32>
    %68 = arith.negf %67 : vector<2x32xf32>
    %69 = math.exp %68 : vector<2x32xf32>
    %cst_20 = arith.constant 1.000000e+00 : f32
    %70 = vector.broadcast %cst_20 : f32 to vector<2x32xf32>
    %71 = arith.addf %70, %69 : vector<2x32xf32>
    %72 = arith.divf %70, %71 : vector<2x32xf32>
    %73 = arith.mulf %64, %46 : vector<2x32xf32>
    %74 = arith.mulf %58, %66 : vector<2x32xf32>
    %75 = arith.addf %73, %74 : vector<2x32xf32>
    %76 = math.tanh %75 : vector<2x32xf32>
    %77 = arith.mulf %72, %76 : vector<2x32xf32>
    %78 = vector.extract_strided_slice %1 {offsets = [2, 0], sizes = [2, 1], strides = [1, 1]} : vector<16x1xf32> to vector<2x1xf32>
    %79 = arith.subf %77, %42 : vector<2x32xf32>
    %80 = vector.broadcast %78 : vector<2x1xf32> to vector<2x32xf32>
    %81 = arith.mulf %80, %79 : vector<2x32xf32>
    %82 = arith.addf %42, %81 : vector<2x32xf32>
    %83 = arith.subf %75, %46 : vector<2x32xf32>
    %84 = vector.broadcast %78 : vector<2x1xf32> to vector<2x32xf32>
    %85 = arith.mulf %84, %83 : vector<2x32xf32>
    %86 = arith.addf %46, %85 : vector<2x32xf32>
    %87 = vector.broadcast %78 : vector<2x1xf32> to vector<2x32xf32>
    %88 = arith.mulf %87, %77 : vector<2x32xf32>
    %c2 = arith.constant 2 : index
    %c0_21 = arith.constant 0 : index
    %89 = vector.load %arg25[%c2, %c0_21] : memref<16x32xf32, #tpu.memory_space<vmem>>, vector<2x32xf32>
    tpu.vector_store %arg25[%c2, %c0_21], %88 {strides = array<i32>} : memref<16x32xf32, #tpu.memory_space<vmem>>, vector<2x32xf32>,
    %90 = vector.extract_strided_slice %7 {offsets = [4, 0], sizes = [2, 128], strides = [1, 1]} : vector<16x128xf32> to vector<2x128xf32>
    %cst_22 = arith.constant dense<0.000000e+00> : vector<2x128xf32>
    %91 = tpu.matmul %82, %2, %cst_22 {dimension_numbers = #tpu.dot_dimension_numbers<[1], [0], [0], [1], [0, 0, 1, 1], [], []>} : vector<2x32xf32>, vector<32x128xf32>, vector<2x128xf32> -> vector<2x128xf32>
    %92 = arith.addf %90, %91 : vector<2x128xf32>
    %93 = vector.extract_strided_slice %92 {offsets = [0, 0], sizes = [2, 32], strides = [1, 1]} : vector<2x128xf32> to vector<2x32xf32>
    %94 = arith.negf %93 : vector<2x32xf32>
    %95 = math.exp %94 : vector<2x32xf32>
    %cst_23 = arith.constant 1.000000e+00 : f32
    %96 = vector.broadcast %cst_23 : f32 to vector<2x32xf32>
    %97 = arith.addf %96, %95 : vector<2x32xf32>
    %98 = arith.divf %96, %97 : vector<2x32xf32>
    %99 = vector.extract_strided_slice %92 {offsets = [0, 32], sizes = [2, 32], strides = [1, 1]} : vector<2x128xf32> to vector<2x32xf32>
    %100 = arith.negf %99 : vector<2x32xf32>
    %101 = math.exp %100 : vector<2x32xf32>
    %cst_24 = arith.constant 1.000000e+00 : f32
    %102 = vector.broadcast %cst_24 : f32 to vector<2x32xf32>
    %103 = arith.addf %102, %101 : vector<2x32xf32>
    %104 = arith.divf %102, %103 : vector<2x32xf32>
    %105 = vector.extract_strided_slice %92 {offsets = [0, 64], sizes = [2, 32], strides = [1, 1]} : vector<2x128xf32> to vector<2x32xf32>
    %106 = math.tanh %105 : vector<2x32xf32>
    %107 = vector.extract_strided_slice %92 {offsets = [0, 96], sizes = [2, 32], strides = [1, 1]} : vector<2x128xf32> to vector<2x32xf32>
    %108 = arith.negf %107 : vector<2x32xf32>
    %109 = math.exp %108 : vector<2x32xf32>
    %cst_25 = arith.constant 1.000000e+00 : f32
    %110 = vector.broadcast %cst_25 : f32 to vector<2x32xf32>
    %111 = arith.addf %110, %109 : vector<2x32xf32>
    %112 = arith.divf %110, %111 : vector<2x32xf32>
    %113 = arith.mulf %104, %86 : vector<2x32xf32>
    %114 = arith.mulf %98, %106 : vector<2x32xf32>
    %115 = arith.addf %113, %114 : vector<2x32xf32>
    %116 = math.tanh %115 : vector<2x32xf32>
    %117 = arith.mulf %112, %116 : vector<2x32xf32>
    %118 = vector.extract_strided_slice %1 {offsets = [4, 0], sizes = [2, 1], strides = [1, 1]} : vector<16x1xf32> to vector<2x1xf32>
    %119 = arith.subf %117, %82 : vector<2x32xf32>
    %120 = vector.broadcast %118 : vector<2x1xf32> to vector<2x32xf32>
    %121 = arith.mulf %120, %119 : vector<2x32xf32>
    %122 = arith.addf %82, %121 : vector<2x32xf32>
    %123 = arith.subf %115, %86 : vector<2x32xf32>
    %124 = vector.broadcast %118 : vector<2x1xf32> to vector<2x32xf32>
    %125 = arith.mulf %124, %123 : vector<2x32xf32>
    %126 = arith.addf %86, %125 : vector<2x32xf32>
    %127 = vector.broadcast %118 : vector<2x1xf32> to vector<2x32xf32>
    %128 = arith.mulf %127, %117 : vector<2x32xf32>
    %c4 = arith.constant 4 : index
    %c0_26 = arith.constant 0 : index
    %129 = vector.load %arg25[%c4, %c0_26] : memref<16x32xf32, #tpu.memory_space<vmem>>, vector<2x32xf32>
    tpu.vector_store %arg25[%c4, %c0_26], %128 {strides = array<i32>} : memref<16x32xf32, #tpu.memory_space<vmem>>, vector<2x32xf32>,
    %130 = vector.extract_strided_slice %7 {offsets = [6, 0], sizes = [2, 128], strides = [1, 1]} : vector<16x128xf32> to vector<2x128xf32>
    %cst_27 = arith.constant dense<0.000000e+00> : vector<2x128xf32>
    %131 = tpu.matmul %122, %2, %cst_27 {dimension_numbers = #tpu.dot_dimension_numbers<[1], [0], [0], [1], [0, 0, 1, 1], [], []>} : vector<2x32xf32>, vector<32x128xf32>, vector<2x128xf32> -> vector<2x128xf32>
    %132 = arith.addf %130, %131 : vector<2x128xf32>
    %133 = vector.extract_strided_slice %132 {offsets = [0, 0], sizes = [2, 32], strides = [1, 1]} : vector<2x128xf32> to vector<2x32xf32>
    %134 = arith.negf %133 : vector<2x32xf32>
    %135 = math.exp %134 : vector<2x32xf32>
    %cst_28 = arith.constant 1.000000e+00 : f32
    %136 = vector.broadcast %cst_28 : f32 to vector<2x32xf32>
    %137 = arith.addf %136, %135 : vector<2x32xf32>
    %138 = arith.divf %136, %137 : vector<2x32xf32>
    %139 = vector.extract_strided_slice %132 {offsets = [0, 32], sizes = [2, 32], strides = [1, 1]} : vector<2x128xf32> to vector<2x32xf32>
    %140 = arith.negf %139 : vector<2x32xf32>
    %141 = math.exp %140 : vector<2x32xf32>
    %cst_29 = arith.constant 1.000000e+00 : f32
    %142 = vector.broadcast %cst_29 : f32 to vector<2x32xf32>
    %143 = arith.addf %142, %141 : vector<2x32xf32>
    %144 = arith.divf %142, %143 : vector<2x32xf32>
    %145 = vector.extract_strided_slice %132 {offsets = [0, 64], sizes = [2, 32], strides = [1, 1]} : vector<2x128xf32> to vector<2x32xf32>
    %146 = math.tanh %145 : vector<2x32xf32>
    %147 = vector.extract_strided_slice %132 {offsets = [0, 96], sizes = [2, 32], strides = [1, 1]} : vector<2x128xf32> to vector<2x32xf32>
    %148 = arith.negf %147 : vector<2x32xf32>
    %149 = math.exp %148 : vector<2x32xf32>
    %cst_30 = arith.constant 1.000000e+00 : f32
    %150 = vector.broadcast %cst_30 : f32 to vector<2x32xf32>
    %151 = arith.addf %150, %149 : vector<2x32xf32>
    %152 = arith.divf %150, %151 : vector<2x32xf32>
    %153 = arith.mulf %144, %126 : vector<2x32xf32>
    %154 = arith.mulf %138, %146 : vector<2x32xf32>
    %155 = arith.addf %153, %154 : vector<2x32xf32>
    %156 = math.tanh %155 : vector<2x32xf32>
    %157 = arith.mulf %152, %156 : vector<2x32xf32>
    %158 = vector.extract_strided_slice %1 {offsets = [6, 0], sizes = [2, 1], strides = [1, 1]} : vector<16x1xf32> to vector<2x1xf32>
    %159 = arith.subf %157, %122 : vector<2x32xf32>
    %160 = vector.broadcast %158 : vector<2x1xf32> to vector<2x32xf32>
    %161 = arith.mulf %160, %159 : vector<2x32xf32>
    %162 = arith.addf %122, %161 : vector<2x32xf32>
    %163 = arith.subf %155, %126 : vector<2x32xf32>
    %164 = vector.broadcast %158 : vector<2x1xf32> to vector<2x32xf32>
    %165 = arith.mulf %164, %163 : vector<2x32xf32>
    %166 = arith.addf %126, %165 : vector<2x32xf32>
    %167 = vector.broadcast %158 : vector<2x1xf32> to vector<2x32xf32>
    %168 = arith.mulf %167, %157 : vector<2x32xf32>
    %c6 = arith.constant 6 : index
    %c0_31 = arith.constant 0 : index
    %169 = vector.load %arg25[%c6, %c0_31] : memref<16x32xf32, #tpu.memory_space<vmem>>, vector<2x32xf32>
    tpu.vector_store %arg25[%c6, %c0_31], %168 {strides = array<i32>} : memref<16x32xf32, #tpu.memory_space<vmem>>, vector<2x32xf32>,
    %170 = vector.extract_strided_slice %7 {offsets = [8, 0], sizes = [2, 128], strides = [1, 1]} : vector<16x128xf32> to vector<2x128xf32>
    %cst_32 = arith.constant dense<0.000000e+00> : vector<2x128xf32>
    %171 = tpu.matmul %162, %2, %cst_32 {dimension_numbers = #tpu.dot_dimension_numbers<[1], [0], [0], [1], [0, 0, 1, 1], [], []>} : vector<2x32xf32>, vector<32x128xf32>, vector<2x128xf32> -> vector<2x128xf32>
    %172 = arith.addf %170, %171 : vector<2x128xf32>
    %173 = vector.extract_strided_slice %172 {offsets = [0, 0], sizes = [2, 32], strides = [1, 1]} : vector<2x128xf32> to vector<2x32xf32>
    %174 = arith.negf %173 : vector<2x32xf32>
    %175 = math.exp %174 : vector<2x32xf32>
    %cst_33 = arith.constant 1.000000e+00 : f32
    %176 = vector.broadcast %cst_33 : f32 to vector<2x32xf32>
    %177 = arith.addf %176, %175 : vector<2x32xf32>
    %178 = arith.divf %176, %177 : vector<2x32xf32>
    %179 = vector.extract_strided_slice %172 {offsets = [0, 32], sizes = [2, 32], strides = [1, 1]} : vector<2x128xf32> to vector<2x32xf32>
    %180 = arith.negf %179 : vector<2x32xf32>
    %181 = math.exp %180 : vector<2x32xf32>
    %cst_34 = arith.constant 1.000000e+00 : f32
    %182 = vector.broadcast %cst_34 : f32 to vector<2x32xf32>
    %183 = arith.addf %182, %181 : vector<2x32xf32>
    %184 = arith.divf %182, %183 : vector<2x32xf32>
    %185 = vector.extract_strided_slice %172 {offsets = [0, 64], sizes = [2, 32], strides = [1, 1]} : vector<2x128xf32> to vector<2x32xf32>
    %186 = math.tanh %185 : vector<2x32xf32>
    %187 = vector.extract_strided_slice %172 {offsets = [0, 96], sizes = [2, 32], strides = [1, 1]} : vector<2x128xf32> to vector<2x32xf32>
    %188 = arith.negf %187 : vector<2x32xf32>
    %189 = math.exp %188 : vector<2x32xf32>
    %cst_35 = arith.constant 1.000000e+00 : f32
    %190 = vector.broadcast %cst_35 : f32 to vector<2x32xf32>
    %191 = arith.addf %190, %189 : vector<2x32xf32>
    %192 = arith.divf %190, %191 : vector<2x32xf32>
    %193 = arith.mulf %184, %166 : vector<2x32xf32>
    %194 = arith.mulf %178, %186 : vector<2x32xf32>
    %195 = arith.addf %193, %194 : vector<2x32xf32>
    %196 = math.tanh %195 : vector<2x32xf32>
    %197 = arith.mulf %192, %196 : vector<2x32xf32>
    %198 = vector.extract_strided_slice %1 {offsets = [8, 0], sizes = [2, 1], strides = [1, 1]} : vector<16x1xf32> to vector<2x1xf32>
    %199 = arith.subf %197, %162 : vector<2x32xf32>
    %200 = vector.broadcast %198 : vector<2x1xf32> to vector<2x32xf32>
    %201 = arith.mulf %200, %199 : vector<2x32xf32>
    %202 = arith.addf %162, %201 : vector<2x32xf32>
    %203 = arith.subf %195, %166 : vector<2x32xf32>
    %204 = vector.broadcast %198 : vector<2x1xf32> to vector<2x32xf32>
    %205 = arith.mulf %204, %203 : vector<2x32xf32>
    %206 = arith.addf %166, %205 : vector<2x32xf32>
    %207 = vector.broadcast %198 : vector<2x1xf32> to vector<2x32xf32>
    %208 = arith.mulf %207, %197 : vector<2x32xf32>
    %c8 = arith.constant 8 : index
    %c0_36 = arith.constant 0 : index
    %209 = vector.load %arg25[%c8, %c0_36] : memref<16x32xf32, #tpu.memory_space<vmem>>, vector<2x32xf32>
    tpu.vector_store %arg25[%c8, %c0_36], %208 {strides = array<i32>} : memref<16x32xf32, #tpu.memory_space<vmem>>, vector<2x32xf32>,
    %210 = vector.extract_strided_slice %7 {offsets = [10, 0], sizes = [2, 128], strides = [1, 1]} : vector<16x128xf32> to vector<2x128xf32>
    %cst_37 = arith.constant dense<0.000000e+00> : vector<2x128xf32>
    %211 = tpu.matmul %202, %2, %cst_37 {dimension_numbers = #tpu.dot_dimension_numbers<[1], [0], [0], [1], [0, 0, 1, 1], [], []>} : vector<2x32xf32>, vector<32x128xf32>, vector<2x128xf32> -> vector<2x128xf32>
    %212 = arith.addf %210, %211 : vector<2x128xf32>
    %213 = vector.extract_strided_slice %212 {offsets = [0, 0], sizes = [2, 32], strides = [1, 1]} : vector<2x128xf32> to vector<2x32xf32>
    %214 = arith.negf %213 : vector<2x32xf32>
    %215 = math.exp %214 : vector<2x32xf32>
    %cst_38 = arith.constant 1.000000e+00 : f32
    %216 = vector.broadcast %cst_38 : f32 to vector<2x32xf32>
    %217 = arith.addf %216, %215 : vector<2x32xf32>
    %218 = arith.divf %216, %217 : vector<2x32xf32>
    %219 = vector.extract_strided_slice %212 {offsets = [0, 32], sizes = [2, 32], strides = [1, 1]} : vector<2x128xf32> to vector<2x32xf32>
    %220 = arith.negf %219 : vector<2x32xf32>
    %221 = math.exp %220 : vector<2x32xf32>
    %cst_39 = arith.constant 1.000000e+00 : f32
    %222 = vector.broadcast %cst_39 : f32 to vector<2x32xf32>
    %223 = arith.addf %222, %221 : vector<2x32xf32>
    %224 = arith.divf %222, %223 : vector<2x32xf32>
    %225 = vector.extract_strided_slice %212 {offsets = [0, 64], sizes = [2, 32], strides = [1, 1]} : vector<2x128xf32> to vector<2x32xf32>
    %226 = math.tanh %225 : vector<2x32xf32>
    %227 = vector.extract_strided_slice %212 {offsets = [0, 96], sizes = [2, 32], strides = [1, 1]} : vector<2x128xf32> to vector<2x32xf32>
    %228 = arith.negf %227 : vector<2x32xf32>
    %229 = math.exp %228 : vector<2x32xf32>
    %cst_40 = arith.constant 1.000000e+00 : f32
    %230 = vector.broadcast %cst_40 : f32 to vector<2x32xf32>
    %231 = arith.addf %230, %229 : vector<2x32xf32>
    %232 = arith.divf %230, %231 : vector<2x32xf32>
    %233 = arith.mulf %224, %206 : vector<2x32xf32>
    %234 = arith.mulf %218, %226 : vector<2x32xf32>
    %235 = arith.addf %233, %234 : vector<2x32xf32>
    %236 = math.tanh %235 : vector<2x32xf32>
    %237 = arith.mulf %232, %236 : vector<2x32xf32>
    %238 = vector.extract_strided_slice %1 {offsets = [10, 0], sizes = [2, 1], strides = [1, 1]} : vector<16x1xf32> to vector<2x1xf32>
    %239 = arith.subf %237, %202 : vector<2x32xf32>
    %240 = vector.broadcast %238 : vector<2x1xf32> to vector<2x32xf32>
    %241 = arith.mulf %240, %239 : vector<2x32xf32>
    %242 = arith.addf %202, %241 : vector<2x32xf32>
    %243 = arith.subf %235, %206 : vector<2x32xf32>
    %244 = vector.broadcast %238 : vector<2x1xf32> to vector<2x32xf32>
    %245 = arith.mulf %244, %243 : vector<2x32xf32>
    %246 = arith.addf %206, %245 : vector<2x32xf32>
    %247 = vector.broadcast %238 : vector<2x1xf32> to vector<2x32xf32>
    %248 = arith.mulf %247, %237 : vector<2x32xf32>
    %c10 = arith.constant 10 : index
    %c0_41 = arith.constant 0 : index
    %249 = vector.load %arg25[%c10, %c0_41] : memref<16x32xf32, #tpu.memory_space<vmem>>, vector<2x32xf32>
    tpu.vector_store %arg25[%c10, %c0_41], %248 {strides = array<i32>} : memref<16x32xf32, #tpu.memory_space<vmem>>, vector<2x32xf32>,
    %250 = vector.extract_strided_slice %7 {offsets = [12, 0], sizes = [2, 128], strides = [1, 1]} : vector<16x128xf32> to vector<2x128xf32>
    %cst_42 = arith.constant dense<0.000000e+00> : vector<2x128xf32>
    %251 = tpu.matmul %242, %2, %cst_42 {dimension_numbers = #tpu.dot_dimension_numbers<[1], [0], [0], [1], [0, 0, 1, 1], [], []>} : vector<2x32xf32>, vector<32x128xf32>, vector<2x128xf32> -> vector<2x128xf32>
    %252 = arith.addf %250, %251 : vector<2x128xf32>
    %253 = vector.extract_strided_slice %252 {offsets = [0, 0], sizes = [2, 32], strides = [1, 1]} : vector<2x128xf32> to vector<2x32xf32>
    %254 = arith.negf %253 : vector<2x32xf32>
    %255 = math.exp %254 : vector<2x32xf32>
    %cst_43 = arith.constant 1.000000e+00 : f32
    %256 = vector.broadcast %cst_43 : f32 to vector<2x32xf32>
    %257 = arith.addf %256, %255 : vector<2x32xf32>
    %258 = arith.divf %256, %257 : vector<2x32xf32>
    %259 = vector.extract_strided_slice %252 {offsets = [0, 32], sizes = [2, 32], strides = [1, 1]} : vector<2x128xf32> to vector<2x32xf32>
    %260 = arith.negf %259 : vector<2x32xf32>
    %261 = math.exp %260 : vector<2x32xf32>
    %cst_44 = arith.constant 1.000000e+00 : f32
    %262 = vector.broadcast %cst_44 : f32 to vector<2x32xf32>
    %263 = arith.addf %262, %261 : vector<2x32xf32>
    %264 = arith.divf %262, %263 : vector<2x32xf32>
    %265 = vector.extract_strided_slice %252 {offsets = [0, 64], sizes = [2, 32], strides = [1, 1]} : vector<2x128xf32> to vector<2x32xf32>
    %266 = math.tanh %265 : vector<2x32xf32>
    %267 = vector.extract_strided_slice %252 {offsets = [0, 96], sizes = [2, 32], strides = [1, 1]} : vector<2x128xf32> to vector<2x32xf32>
    %268 = arith.negf %267 : vector<2x32xf32>
    %269 = math.exp %268 : vector<2x32xf32>
    %cst_45 = arith.constant 1.000000e+00 : f32
    %270 = vector.broadcast %cst_45 : f32 to vector<2x32xf32>
    %271 = arith.addf %270, %269 : vector<2x32xf32>
    %272 = arith.divf %270, %271 : vector<2x32xf32>
    %273 = arith.mulf %264, %246 : vector<2x32xf32>
    %274 = arith.mulf %258, %266 : vector<2x32xf32>
    %275 = arith.addf %273, %274 : vector<2x32xf32>
    %276 = math.tanh %275 : vector<2x32xf32>
    %277 = arith.mulf %272, %276 : vector<2x32xf32>
    %278 = vector.extract_strided_slice %1 {offsets = [12, 0], sizes = [2, 1], strides = [1, 1]} : vector<16x1xf32> to vector<2x1xf32>
    %279 = arith.subf %277, %242 : vector<2x32xf32>
    %280 = vector.broadcast %278 : vector<2x1xf32> to vector<2x32xf32>
    %281 = arith.mulf %280, %279 : vector<2x32xf32>
    %282 = arith.addf %242, %281 : vector<2x32xf32>
    %283 = arith.subf %275, %246 : vector<2x32xf32>
    %284 = vector.broadcast %278 : vector<2x1xf32> to vector<2x32xf32>
    %285 = arith.mulf %284, %283 : vector<2x32xf32>
    %286 = arith.addf %246, %285 : vector<2x32xf32>
    %287 = vector.broadcast %278 : vector<2x1xf32> to vector<2x32xf32>
    %288 = arith.mulf %287, %277 : vector<2x32xf32>
    %c12 = arith.constant 12 : index
    %c0_46 = arith.constant 0 : index
    %289 = vector.load %arg25[%c12, %c0_46] : memref<16x32xf32, #tpu.memory_space<vmem>>, vector<2x32xf32>
    tpu.vector_store %arg25[%c12, %c0_46], %288 {strides = array<i32>} : memref<16x32xf32, #tpu.memory_space<vmem>>, vector<2x32xf32>,
    %290 = vector.extract_strided_slice %7 {offsets = [14, 0], sizes = [2, 128], strides = [1, 1]} : vector<16x128xf32> to vector<2x128xf32>
    %cst_47 = arith.constant dense<0.000000e+00> : vector<2x128xf32>
    %291 = tpu.matmul %282, %2, %cst_47 {dimension_numbers = #tpu.dot_dimension_numbers<[1], [0], [0], [1], [0, 0, 1, 1], [], []>} : vector<2x32xf32>, vector<32x128xf32>, vector<2x128xf32> -> vector<2x128xf32>
    %292 = arith.addf %290, %291 : vector<2x128xf32>
    %293 = vector.extract_strided_slice %292 {offsets = [0, 0], sizes = [2, 32], strides = [1, 1]} : vector<2x128xf32> to vector<2x32xf32>
    %294 = arith.negf %293 : vector<2x32xf32>
    %295 = math.exp %294 : vector<2x32xf32>
    %cst_48 = arith.constant 1.000000e+00 : f32
    %296 = vector.broadcast %cst_48 : f32 to vector<2x32xf32>
    %297 = arith.addf %296, %295 : vector<2x32xf32>
    %298 = arith.divf %296, %297 : vector<2x32xf32>
    %299 = vector.extract_strided_slice %292 {offsets = [0, 32], sizes = [2, 32], strides = [1, 1]} : vector<2x128xf32> to vector<2x32xf32>
    %300 = arith.negf %299 : vector<2x32xf32>
    %301 = math.exp %300 : vector<2x32xf32>
    %cst_49 = arith.constant 1.000000e+00 : f32
    %302 = vector.broadcast %cst_49 : f32 to vector<2x32xf32>
    %303 = arith.addf %302, %301 : vector<2x32xf32>
    %304 = arith.divf %302, %303 : vector<2x32xf32>
    %305 = vector.extract_strided_slice %292 {offsets = [0, 64], sizes = [2, 32], strides = [1, 1]} : vector<2x128xf32> to vector<2x32xf32>
    %306 = math.tanh %305 : vector<2x32xf32>
    %307 = vector.extract_strided_slice %292 {offsets = [0, 96], sizes = [2, 32], strides = [1, 1]} : vector<2x128xf32> to vector<2x32xf32>
    %308 = arith.negf %307 : vector<2x32xf32>
    %309 = math.exp %308 : vector<2x32xf32>
    %cst_50 = arith.constant 1.000000e+00 : f32
    %310 = vector.broadcast %cst_50 : f32 to vector<2x32xf32>
    %311 = arith.addf %310, %309 : vector<2x32xf32>
    %312 = arith.divf %310, %311 : vector<2x32xf32>
    %313 = arith.mulf %304, %286 : vector<2x32xf32>
    %314 = arith.mulf %298, %306 : vector<2x32xf32>
    %315 = arith.addf %313, %314 : vector<2x32xf32>
    %316 = math.tanh %315 : vector<2x32xf32>
    %317 = arith.mulf %312, %316 : vector<2x32xf32>
    %318 = vector.extract_strided_slice %1 {offsets = [14, 0], sizes = [2, 1], strides = [1, 1]} : vector<16x1xf32> to vector<2x1xf32>
    %319 = arith.subf %317, %282 : vector<2x32xf32>
    %320 = vector.broadcast %318 : vector<2x1xf32> to vector<2x32xf32>
    %321 = arith.mulf %320, %319 : vector<2x32xf32>
    %322 = arith.addf %282, %321 : vector<2x32xf32>
    %323 = arith.subf %315, %286 : vector<2x32xf32>
    %324 = vector.broadcast %318 : vector<2x1xf32> to vector<2x32xf32>
    %325 = arith.mulf %324, %323 : vector<2x32xf32>
    %326 = arith.addf %286, %325 : vector<2x32xf32>
    %327 = vector.broadcast %318 : vector<2x1xf32> to vector<2x32xf32>
    %328 = arith.mulf %327, %317 : vector<2x32xf32>
    %c14 = arith.constant 14 : index
    %c0_51 = arith.constant 0 : index
    %329 = vector.load %arg25[%c14, %c0_51] : memref<16x32xf32, #tpu.memory_space<vmem>>, vector<2x32xf32>
    tpu.vector_store %arg25[%c14, %c0_51], %328 {strides = array<i32>} : memref<16x32xf32, #tpu.memory_space<vmem>>, vector<2x32xf32>,
    %c0_52 = arith.constant 0 : index
    %c0_53 = arith.constant 0 : index
    %330 = vector.load %arg21[%c0_52, %c0_53] : memref<2x32xf32, #tpu.memory_space<vmem>>, vector<2x32xf32>
    tpu.vector_store %arg21[%c0_52, %c0_53], %322 {strides = array<i32>} : memref<2x32xf32, #tpu.memory_space<vmem>>, vector<2x32xf32>,
    %c0_54 = arith.constant 0 : index
    %c0_55 = arith.constant 0 : index
    %331 = vector.load %arg22[%c0_54, %c0_55] : memref<2x32xf32, #tpu.memory_space<vmem>>, vector<2x32xf32>
    tpu.vector_store %arg22[%c0_54, %c0_55], %326 {strides = array<i32>} : memref<2x32xf32, #tpu.memory_space<vmem>>, vector<2x32xf32>,
    %c0_56 = arith.constant 0 : index
    %c0_57 = arith.constant 0 : index
    %332 = vector.load %arg25[%c0_56, %c0_57] : memref<16x32xf32, #tpu.memory_space<vmem>>, vector<16x32xf32>
    %c0_58 = arith.constant 0 : index
    %c0_59 = arith.constant 0 : index
    %333 = vector.load %arg7[%c0_58, %c0_59] : memref<32x32xf32, #tpu.memory_space<vmem>>, vector<32x32xf32>
    %cst_60 = arith.constant dense<0.000000e+00> : vector<16x32xf32>
    %334 = tpu.matmul %332, %333, %cst_60 {dimension_numbers = #tpu.dot_dimension_numbers<[1], [0], [0], [1], [0, 0, 1, 1], [], []>} : vector<16x32xf32>, vector<32x32xf32>, vector<16x32xf32> -> vector<16x32xf32>
    %c0_61 = arith.constant 0 : index
    %c0_62 = arith.constant 0 : index
    %335 = vector.load %arg8[%c0_61, %c0_62] : memref<1x32xf32, #tpu.memory_space<vmem>>, vector<1x32xf32>
    %336 = vector.broadcast %335 : vector<1x32xf32> to vector<16x32xf32>
    %337 = arith.addf %334, %336 : vector<16x32xf32>
    %338 = math.tanh %337 : vector<16x32xf32>
    %c0_63 = arith.constant 0 : index
    %c0_64 = arith.constant 0 : index
    %339 = vector.load %arg2[%c0_63, %c0_64] : memref<16x1xf32, #tpu.memory_space<vmem>>, vector<16x1xf32>
    %c0_65 = arith.constant 0 : index
    %c0_66 = arith.constant 0 : index
    %340 = vector.load %arg10[%c0_65, %c0_66] : memref<32x128xf32, #tpu.memory_space<vmem>>, vector<32x128xf32>
    %c0_67 = arith.constant 0 : index
    %c0_68 = arith.constant 0 : index
    %341 = vector.load %arg9[%c0_67, %c0_68] : memref<32x128xf32, #tpu.memory_space<vmem>>, vector<32x128xf32>
    %cst_69 = arith.constant dense<0.000000e+00> : vector<16x128xf32>
    %342 = tpu.matmul %338, %341, %cst_69 {dimension_numbers = #tpu.dot_dimension_numbers<[1], [0], [0], [1], [0, 0, 1, 1], [], []>} : vector<16x32xf32>, vector<32x128xf32>, vector<16x128xf32> -> vector<16x128xf32>
    %c0_70 = arith.constant 0 : index
    %c0_71 = arith.constant 0 : index
    %343 = vector.load %arg11[%c0_70, %c0_71] : memref<1x128xf32, #tpu.memory_space<vmem>>, vector<1x128xf32>
    %344 = vector.broadcast %343 : vector<1x128xf32> to vector<16x128xf32>
    %345 = arith.addf %342, %344 : vector<16x128xf32>
    %cst_72 = arith.constant 0.000000e+00 : f32
    %346 = vector.broadcast %cst_72 : f32 to vector<2x32xf32>
    %cst_73 = arith.constant 0.000000e+00 : f32
    %347 = vector.broadcast %cst_73 : f32 to vector<2x32xf32>
    %348 = vector.extract_strided_slice %345 {offsets = [0, 0], sizes = [2, 128], strides = [1, 1]} : vector<16x128xf32> to vector<2x128xf32>
    %cst_74 = arith.constant dense<0.000000e+00> : vector<2x128xf32>
    %349 = tpu.matmul %346, %340, %cst_74 {dimension_numbers = #tpu.dot_dimension_numbers<[1], [0], [0], [1], [0, 0, 1, 1], [], []>} : vector<2x32xf32>, vector<32x128xf32>, vector<2x128xf32> -> vector<2x128xf32>
    %350 = arith.addf %348, %349 : vector<2x128xf32>
    %351 = vector.extract_strided_slice %350 {offsets = [0, 0], sizes = [2, 32], strides = [1, 1]} : vector<2x128xf32> to vector<2x32xf32>
    %352 = arith.negf %351 : vector<2x32xf32>
    %353 = math.exp %352 : vector<2x32xf32>
    %cst_75 = arith.constant 1.000000e+00 : f32
    %354 = vector.broadcast %cst_75 : f32 to vector<2x32xf32>
    %355 = arith.addf %354, %353 : vector<2x32xf32>
    %356 = arith.divf %354, %355 : vector<2x32xf32>
    %357 = vector.extract_strided_slice %350 {offsets = [0, 32], sizes = [2, 32], strides = [1, 1]} : vector<2x128xf32> to vector<2x32xf32>
    %358 = arith.negf %357 : vector<2x32xf32>
    %359 = math.exp %358 : vector<2x32xf32>
    %cst_76 = arith.constant 1.000000e+00 : f32
    %360 = vector.broadcast %cst_76 : f32 to vector<2x32xf32>
    %361 = arith.addf %360, %359 : vector<2x32xf32>
    %362 = arith.divf %360, %361 : vector<2x32xf32>
    %363 = vector.extract_strided_slice %350 {offsets = [0, 64], sizes = [2, 32], strides = [1, 1]} : vector<2x128xf32> to vector<2x32xf32>
    %364 = math.tanh %363 : vector<2x32xf32>
    %365 = vector.extract_strided_slice %350 {offsets = [0, 96], sizes = [2, 32], strides = [1, 1]} : vector<2x128xf32> to vector<2x32xf32>
    %366 = arith.negf %365 : vector<2x32xf32>
    %367 = math.exp %366 : vector<2x32xf32>
    %cst_77 = arith.constant 1.000000e+00 : f32
    %368 = vector.broadcast %cst_77 : f32 to vector<2x32xf32>
    %369 = arith.addf %368, %367 : vector<2x32xf32>
    %370 = arith.divf %368, %369 : vector<2x32xf32>
    %371 = arith.mulf %362, %347 : vector<2x32xf32>
    %372 = arith.mulf %356, %364 : vector<2x32xf32>
    %373 = arith.addf %371, %372 : vector<2x32xf32>
    %374 = math.tanh %373 : vector<2x32xf32>
    %375 = arith.mulf %370, %374 : vector<2x32xf32>
    %376 = vector.extract_strided_slice %339 {offsets = [0, 0], sizes = [2, 1], strides = [1, 1]} : vector<16x1xf32> to vector<2x1xf32>
    %377 = arith.subf %375, %346 : vector<2x32xf32>
    %378 = vector.broadcast %376 : vector<2x1xf32> to vector<2x32xf32>
    %379 = arith.mulf %378, %377 : vector<2x32xf32>
    %380 = arith.addf %346, %379 : vector<2x32xf32>
    %381 = arith.subf %373, %347 : vector<2x32xf32>
    %382 = vector.broadcast %376 : vector<2x1xf32> to vector<2x32xf32>
    %383 = arith.mulf %382, %381 : vector<2x32xf32>
    %384 = arith.addf %347, %383 : vector<2x32xf32>
    %385 = vector.broadcast %376 : vector<2x1xf32> to vector<2x32xf32>
    %386 = arith.mulf %385, %375 : vector<2x32xf32>
    %c0_78 = arith.constant 0 : index
    %c0_79 = arith.constant 0 : index
    %387 = vector.load %arg25[%c0_78, %c0_79] : memref<16x32xf32, #tpu.memory_space<vmem>>, vector<2x32xf32>
    tpu.vector_store %arg25[%c0_78, %c0_79], %386 {strides = array<i32>} : memref<16x32xf32, #tpu.memory_space<vmem>>, vector<2x32xf32>,
    %388 = vector.extract_strided_slice %345 {offsets = [2, 0], sizes = [2, 128], strides = [1, 1]} : vector<16x128xf32> to vector<2x128xf32>
    %cst_80 = arith.constant dense<0.000000e+00> : vector<2x128xf32>
    %389 = tpu.matmul %380, %340, %cst_80 {dimension_numbers = #tpu.dot_dimension_numbers<[1], [0], [0], [1], [0, 0, 1, 1], [], []>} : vector<2x32xf32>, vector<32x128xf32>, vector<2x128xf32> -> vector<2x128xf32>
    %390 = arith.addf %388, %389 : vector<2x128xf32>
    %391 = vector.extract_strided_slice %390 {offsets = [0, 0], sizes = [2, 32], strides = [1, 1]} : vector<2x128xf32> to vector<2x32xf32>
    %392 = arith.negf %391 : vector<2x32xf32>
    %393 = math.exp %392 : vector<2x32xf32>
    %cst_81 = arith.constant 1.000000e+00 : f32
    %394 = vector.broadcast %cst_81 : f32 to vector<2x32xf32>
    %395 = arith.addf %394, %393 : vector<2x32xf32>
    %396 = arith.divf %394, %395 : vector<2x32xf32>
    %397 = vector.extract_strided_slice %390 {offsets = [0, 32], sizes = [2, 32], strides = [1, 1]} : vector<2x128xf32> to vector<2x32xf32>
    %398 = arith.negf %397 : vector<2x32xf32>
    %399 = math.exp %398 : vector<2x32xf32>
    %cst_82 = arith.constant 1.000000e+00 : f32
    %400 = vector.broadcast %cst_82 : f32 to vector<2x32xf32>
    %401 = arith.addf %400, %399 : vector<2x32xf32>
    %402 = arith.divf %400, %401 : vector<2x32xf32>
    %403 = vector.extract_strided_slice %390 {offsets = [0, 64], sizes = [2, 32], strides = [1, 1]} : vector<2x128xf32> to vector<2x32xf32>
    %404 = math.tanh %403 : vector<2x32xf32>
    %405 = vector.extract_strided_slice %390 {offsets = [0, 96], sizes = [2, 32], strides = [1, 1]} : vector<2x128xf32> to vector<2x32xf32>
    %406 = arith.negf %405 : vector<2x32xf32>
    %407 = math.exp %406 : vector<2x32xf32>
    %cst_83 = arith.constant 1.000000e+00 : f32
    %408 = vector.broadcast %cst_83 : f32 to vector<2x32xf32>
    %409 = arith.addf %408, %407 : vector<2x32xf32>
    %410 = arith.divf %408, %409 : vector<2x32xf32>
    %411 = arith.mulf %402, %384 : vector<2x32xf32>
    %412 = arith.mulf %396, %404 : vector<2x32xf32>
    %413 = arith.addf %411, %412 : vector<2x32xf32>
    %414 = math.tanh %413 : vector<2x32xf32>
    %415 = arith.mulf %410, %414 : vector<2x32xf32>
    %416 = vector.extract_strided_slice %339 {offsets = [2, 0], sizes = [2, 1], strides = [1, 1]} : vector<16x1xf32> to vector<2x1xf32>
    %417 = arith.subf %415, %380 : vector<2x32xf32>
    %418 = vector.broadcast %416 : vector<2x1xf32> to vector<2x32xf32>
    %419 = arith.mulf %418, %417 : vector<2x32xf32>
    %420 = arith.addf %380, %419 : vector<2x32xf32>
    %421 = arith.subf %413, %384 : vector<2x32xf32>
    %422 = vector.broadcast %416 : vector<2x1xf32> to vector<2x32xf32>
    %423 = arith.mulf %422, %421 : vector<2x32xf32>
    %424 = arith.addf %384, %423 : vector<2x32xf32>
    %425 = vector.extract_strided_slice %345 {offsets = [4, 0], sizes = [2, 128], strides = [1, 1]} : vector<16x128xf32> to vector<2x128xf32>
    %cst_84 = arith.constant dense<0.000000e+00> : vector<2x128xf32>
    %426 = tpu.matmul %420, %340, %cst_84 {dimension_numbers = #tpu.dot_dimension_numbers<[1], [0], [0], [1], [0, 0, 1, 1], [], []>} : vector<2x32xf32>, vector<32x128xf32>, vector<2x128xf32> -> vector<2x128xf32>
    %427 = arith.addf %425, %426 : vector<2x128xf32>
    %428 = vector.extract_strided_slice %427 {offsets = [0, 0], sizes = [2, 32], strides = [1, 1]} : vector<2x128xf32> to vector<2x32xf32>
    %429 = arith.negf %428 : vector<2x32xf32>
    %430 = math.exp %429 : vector<2x32xf32>
    %cst_85 = arith.constant 1.000000e+00 : f32
    %431 = vector.broadcast %cst_85 : f32 to vector<2x32xf32>
    %432 = arith.addf %431, %430 : vector<2x32xf32>
    %433 = arith.divf %431, %432 : vector<2x32xf32>
    %434 = vector.extract_strided_slice %427 {offsets = [0, 32], sizes = [2, 32], strides = [1, 1]} : vector<2x128xf32> to vector<2x32xf32>
    %435 = arith.negf %434 : vector<2x32xf32>
    %436 = math.exp %435 : vector<2x32xf32>
    %cst_86 = arith.constant 1.000000e+00 : f32
    %437 = vector.broadcast %cst_86 : f32 to vector<2x32xf32>
    %438 = arith.addf %437, %436 : vector<2x32xf32>
    %439 = arith.divf %437, %438 : vector<2x32xf32>
    %440 = vector.extract_strided_slice %427 {offsets = [0, 64], sizes = [2, 32], strides = [1, 1]} : vector<2x128xf32> to vector<2x32xf32>
    %441 = math.tanh %440 : vector<2x32xf32>
    %442 = vector.extract_strided_slice %427 {offsets = [0, 96], sizes = [2, 32], strides = [1, 1]} : vector<2x128xf32> to vector<2x32xf32>
    %443 = arith.negf %442 : vector<2x32xf32>
    %444 = math.exp %443 : vector<2x32xf32>
    %cst_87 = arith.constant 1.000000e+00 : f32
    %445 = vector.broadcast %cst_87 : f32 to vector<2x32xf32>
    %446 = arith.addf %445, %444 : vector<2x32xf32>
    %447 = arith.divf %445, %446 : vector<2x32xf32>
    %448 = arith.mulf %439, %424 : vector<2x32xf32>
    %449 = arith.mulf %433, %441 : vector<2x32xf32>
    %450 = arith.addf %448, %449 : vector<2x32xf32>
    %451 = math.tanh %450 : vector<2x32xf32>
    %452 = arith.mulf %447, %451 : vector<2x32xf32>
    %453 = vector.extract_strided_slice %339 {offsets = [4, 0], sizes = [2, 1], strides = [1, 1]} : vector<16x1xf32> to vector<2x1xf32>
    %454 = arith.subf %452, %420 : vector<2x32xf32>
    %455 = vector.broadcast %453 : vector<2x1xf32> to vector<2x32xf32>
    %456 = arith.mulf %455, %454 : vector<2x32xf32>
    %457 = arith.addf %420, %456 : vector<2x32xf32>
    %458 = arith.subf %450, %424 : vector<2x32xf32>
    %459 = vector.broadcast %453 : vector<2x1xf32> to vector<2x32xf32>
    %460 = arith.mulf %459, %458 : vector<2x32xf32>
    %461 = arith.addf %424, %460 : vector<2x32xf32>
    %462 = vector.broadcast %453 : vector<2x1xf32> to vector<2x32xf32>
    %463 = arith.mulf %462, %452 : vector<2x32xf32>
    %c2_88 = arith.constant 2 : index
    %c0_89 = arith.constant 0 : index
    %464 = vector.load %arg25[%c2_88, %c0_89] : memref<16x32xf32, #tpu.memory_space<vmem>>, vector<2x32xf32>
    tpu.vector_store %arg25[%c2_88, %c0_89], %463 {strides = array<i32>} : memref<16x32xf32, #tpu.memory_space<vmem>>, vector<2x32xf32>,
    %465 = vector.extract_strided_slice %345 {offsets = [6, 0], sizes = [2, 128], strides = [1, 1]} : vector<16x128xf32> to vector<2x128xf32>
    %cst_90 = arith.constant dense<0.000000e+00> : vector<2x128xf32>
    %466 = tpu.matmul %457, %340, %cst_90 {dimension_numbers = #tpu.dot_dimension_numbers<[1], [0], [0], [1], [0, 0, 1, 1], [], []>} : vector<2x32xf32>, vector<32x128xf32>, vector<2x128xf32> -> vector<2x128xf32>
    %467 = arith.addf %465, %466 : vector<2x128xf32>
    %468 = vector.extract_strided_slice %467 {offsets = [0, 0], sizes = [2, 32], strides = [1, 1]} : vector<2x128xf32> to vector<2x32xf32>
    %469 = arith.negf %468 : vector<2x32xf32>
    %470 = math.exp %469 : vector<2x32xf32>
    %cst_91 = arith.constant 1.000000e+00 : f32
    %471 = vector.broadcast %cst_91 : f32 to vector<2x32xf32>
    %472 = arith.addf %471, %470 : vector<2x32xf32>
    %473 = arith.divf %471, %472 : vector<2x32xf32>
    %474 = vector.extract_strided_slice %467 {offsets = [0, 32], sizes = [2, 32], strides = [1, 1]} : vector<2x128xf32> to vector<2x32xf32>
    %475 = arith.negf %474 : vector<2x32xf32>
    %476 = math.exp %475 : vector<2x32xf32>
    %cst_92 = arith.constant 1.000000e+00 : f32
    %477 = vector.broadcast %cst_92 : f32 to vector<2x32xf32>
    %478 = arith.addf %477, %476 : vector<2x32xf32>
    %479 = arith.divf %477, %478 : vector<2x32xf32>
    %480 = vector.extract_strided_slice %467 {offsets = [0, 64], sizes = [2, 32], strides = [1, 1]} : vector<2x128xf32> to vector<2x32xf32>
    %481 = math.tanh %480 : vector<2x32xf32>
    %482 = vector.extract_strided_slice %467 {offsets = [0, 96], sizes = [2, 32], strides = [1, 1]} : vector<2x128xf32> to vector<2x32xf32>
    %483 = arith.negf %482 : vector<2x32xf32>
    %484 = math.exp %483 : vector<2x32xf32>
    %cst_93 = arith.constant 1.000000e+00 : f32
    %485 = vector.broadcast %cst_93 : f32 to vector<2x32xf32>
    %486 = arith.addf %485, %484 : vector<2x32xf32>
    %487 = arith.divf %485, %486 : vector<2x32xf32>
    %488 = arith.mulf %479, %461 : vector<2x32xf32>
    %489 = arith.mulf %473, %481 : vector<2x32xf32>
    %490 = arith.addf %488, %489 : vector<2x32xf32>
    %491 = math.tanh %490 : vector<2x32xf32>
    %492 = arith.mulf %487, %491 : vector<2x32xf32>
    %493 = vector.extract_strided_slice %339 {offsets = [6, 0], sizes = [2, 1], strides = [1, 1]} : vector<16x1xf32> to vector<2x1xf32>
    %494 = arith.subf %492, %457 : vector<2x32xf32>
    %495 = vector.broadcast %493 : vector<2x1xf32> to vector<2x32xf32>
    %496 = arith.mulf %495, %494 : vector<2x32xf32>
    %497 = arith.addf %457, %496 : vector<2x32xf32>
    %498 = arith.subf %490, %461 : vector<2x32xf32>
    %499 = vector.broadcast %493 : vector<2x1xf32> to vector<2x32xf32>
    %500 = arith.mulf %499, %498 : vector<2x32xf32>
    %501 = arith.addf %461, %500 : vector<2x32xf32>
    %502 = vector.extract_strided_slice %345 {offsets = [8, 0], sizes = [2, 128], strides = [1, 1]} : vector<16x128xf32> to vector<2x128xf32>
    %cst_94 = arith.constant dense<0.000000e+00> : vector<2x128xf32>
    %503 = tpu.matmul %497, %340, %cst_94 {dimension_numbers = #tpu.dot_dimension_numbers<[1], [0], [0], [1], [0, 0, 1, 1], [], []>} : vector<2x32xf32>, vector<32x128xf32>, vector<2x128xf32> -> vector<2x128xf32>
    %504 = arith.addf %502, %503 : vector<2x128xf32>
    %505 = vector.extract_strided_slice %504 {offsets = [0, 0], sizes = [2, 32], strides = [1, 1]} : vector<2x128xf32> to vector<2x32xf32>
    %506 = arith.negf %505 : vector<2x32xf32>
    %507 = math.exp %506 : vector<2x32xf32>
    %cst_95 = arith.constant 1.000000e+00 : f32
    %508 = vector.broadcast %cst_95 : f32 to vector<2x32xf32>
    %509 = arith.addf %508, %507 : vector<2x32xf32>
    %510 = arith.divf %508, %509 : vector<2x32xf32>
    %511 = vector.extract_strided_slice %504 {offsets = [0, 32], sizes = [2, 32], strides = [1, 1]} : vector<2x128xf32> to vector<2x32xf32>
    %512 = arith.negf %511 : vector<2x32xf32>
    %513 = math.exp %512 : vector<2x32xf32>
    %cst_96 = arith.constant 1.000000e+00 : f32
    %514 = vector.broadcast %cst_96 : f32 to vector<2x32xf32>
    %515 = arith.addf %514, %513 : vector<2x32xf32>
    %516 = arith.divf %514, %515 : vector<2x32xf32>
    %517 = vector.extract_strided_slice %504 {offsets = [0, 64], sizes = [2, 32], strides = [1, 1]} : vector<2x128xf32> to vector<2x32xf32>
    %518 = math.tanh %517 : vector<2x32xf32>
    %519 = vector.extract_strided_slice %504 {offsets = [0, 96], sizes = [2, 32], strides = [1, 1]} : vector<2x128xf32> to vector<2x32xf32>
    %520 = arith.negf %519 : vector<2x32xf32>
    %521 = math.exp %520 : vector<2x32xf32>
    %cst_97 = arith.constant 1.000000e+00 : f32
    %522 = vector.broadcast %cst_97 : f32 to vector<2x32xf32>
    %523 = arith.addf %522, %521 : vector<2x32xf32>
    %524 = arith.divf %522, %523 : vector<2x32xf32>
    %525 = arith.mulf %516, %501 : vector<2x32xf32>
    %526 = arith.mulf %510, %518 : vector<2x32xf32>
    %527 = arith.addf %525, %526 : vector<2x32xf32>
    %528 = math.tanh %527 : vector<2x32xf32>
    %529 = arith.mulf %524, %528 : vector<2x32xf32>
    %530 = vector.extract_strided_slice %339 {offsets = [8, 0], sizes = [2, 1], strides = [1, 1]} : vector<16x1xf32> to vector<2x1xf32>
    %531 = arith.subf %529, %497 : vector<2x32xf32>
    %532 = vector.broadcast %530 : vector<2x1xf32> to vector<2x32xf32>
    %533 = arith.mulf %532, %531 : vector<2x32xf32>
    %534 = arith.addf %497, %533 : vector<2x32xf32>
    %535 = arith.subf %527, %501 : vector<2x32xf32>
    %536 = vector.broadcast %530 : vector<2x1xf32> to vector<2x32xf32>
    %537 = arith.mulf %536, %535 : vector<2x32xf32>
    %538 = arith.addf %501, %537 : vector<2x32xf32>
    %539 = vector.broadcast %530 : vector<2x1xf32> to vector<2x32xf32>
    %540 = arith.mulf %539, %529 : vector<2x32xf32>
    %c4_98 = arith.constant 4 : index
    %c0_99 = arith.constant 0 : index
    %541 = vector.load %arg25[%c4_98, %c0_99] : memref<16x32xf32, #tpu.memory_space<vmem>>, vector<2x32xf32>
    tpu.vector_store %arg25[%c4_98, %c0_99], %540 {strides = array<i32>} : memref<16x32xf32, #tpu.memory_space<vmem>>, vector<2x32xf32>,
    %542 = vector.extract_strided_slice %345 {offsets = [10, 0], sizes = [2, 128], strides = [1, 1]} : vector<16x128xf32> to vector<2x128xf32>
    %cst_100 = arith.constant dense<0.000000e+00> : vector<2x128xf32>
    %543 = tpu.matmul %534, %340, %cst_100 {dimension_numbers = #tpu.dot_dimension_numbers<[1], [0], [0], [1], [0, 0, 1, 1], [], []>} : vector<2x32xf32>, vector<32x128xf32>, vector<2x128xf32> -> vector<2x128xf32>
    %544 = arith.addf %542, %543 : vector<2x128xf32>
    %545 = vector.extract_strided_slice %544 {offsets = [0, 0], sizes = [2, 32], strides = [1, 1]} : vector<2x128xf32> to vector<2x32xf32>
    %546 = arith.negf %545 : vector<2x32xf32>
    %547 = math.exp %546 : vector<2x32xf32>
    %cst_101 = arith.constant 1.000000e+00 : f32
    %548 = vector.broadcast %cst_101 : f32 to vector<2x32xf32>
    %549 = arith.addf %548, %547 : vector<2x32xf32>
    %550 = arith.divf %548, %549 : vector<2x32xf32>
    %551 = vector.extract_strided_slice %544 {offsets = [0, 32], sizes = [2, 32], strides = [1, 1]} : vector<2x128xf32> to vector<2x32xf32>
    %552 = arith.negf %551 : vector<2x32xf32>
    %553 = math.exp %552 : vector<2x32xf32>
    %cst_102 = arith.constant 1.000000e+00 : f32
    %554 = vector.broadcast %cst_102 : f32 to vector<2x32xf32>
    %555 = arith.addf %554, %553 : vector<2x32xf32>
    %556 = arith.divf %554, %555 : vector<2x32xf32>
    %557 = vector.extract_strided_slice %544 {offsets = [0, 64], sizes = [2, 32], strides = [1, 1]} : vector<2x128xf32> to vector<2x32xf32>
    %558 = math.tanh %557 : vector<2x32xf32>
    %559 = vector.extract_strided_slice %544 {offsets = [0, 96], sizes = [2, 32], strides = [1, 1]} : vector<2x128xf32> to vector<2x32xf32>
    %560 = arith.negf %559 : vector<2x32xf32>
    %561 = math.exp %560 : vector<2x32xf32>
    %cst_103 = arith.constant 1.000000e+00 : f32
    %562 = vector.broadcast %cst_103 : f32 to vector<2x32xf32>
    %563 = arith.addf %562, %561 : vector<2x32xf32>
    %564 = arith.divf %562, %563 : vector<2x32xf32>
    %565 = arith.mulf %556, %538 : vector<2x32xf32>
    %566 = arith.mulf %550, %558 : vector<2x32xf32>
    %567 = arith.addf %565, %566 : vector<2x32xf32>
    %568 = math.tanh %567 : vector<2x32xf32>
    %569 = arith.mulf %564, %568 : vector<2x32xf32>
    %570 = vector.extract_strided_slice %339 {offsets = [10, 0], sizes = [2, 1], strides = [1, 1]} : vector<16x1xf32> to vector<2x1xf32>
    %571 = arith.subf %569, %534 : vector<2x32xf32>
    %572 = vector.broadcast %570 : vector<2x1xf32> to vector<2x32xf32>
    %573 = arith.mulf %572, %571 : vector<2x32xf32>
    %574 = arith.addf %534, %573 : vector<2x32xf32>
    %575 = arith.subf %567, %538 : vector<2x32xf32>
    %576 = vector.broadcast %570 : vector<2x1xf32> to vector<2x32xf32>
    %577 = arith.mulf %576, %575 : vector<2x32xf32>
    %578 = arith.addf %538, %577 : vector<2x32xf32>
    %579 = vector.extract_strided_slice %345 {offsets = [12, 0], sizes = [2, 128], strides = [1, 1]} : vector<16x128xf32> to vector<2x128xf32>
    %cst_104 = arith.constant dense<0.000000e+00> : vector<2x128xf32>
    %580 = tpu.matmul %574, %340, %cst_104 {dimension_numbers = #tpu.dot_dimension_numbers<[1], [0], [0], [1], [0, 0, 1, 1], [], []>} : vector<2x32xf32>, vector<32x128xf32>, vector<2x128xf32> -> vector<2x128xf32>
    %581 = arith.addf %579, %580 : vector<2x128xf32>
    %582 = vector.extract_strided_slice %581 {offsets = [0, 0], sizes = [2, 32], strides = [1, 1]} : vector<2x128xf32> to vector<2x32xf32>
    %583 = arith.negf %582 : vector<2x32xf32>
    %584 = math.exp %583 : vector<2x32xf32>
    %cst_105 = arith.constant 1.000000e+00 : f32
    %585 = vector.broadcast %cst_105 : f32 to vector<2x32xf32>
    %586 = arith.addf %585, %584 : vector<2x32xf32>
    %587 = arith.divf %585, %586 : vector<2x32xf32>
    %588 = vector.extract_strided_slice %581 {offsets = [0, 32], sizes = [2, 32], strides = [1, 1]} : vector<2x128xf32> to vector<2x32xf32>
    %589 = arith.negf %588 : vector<2x32xf32>
    %590 = math.exp %589 : vector<2x32xf32>
    %cst_106 = arith.constant 1.000000e+00 : f32
    %591 = vector.broadcast %cst_106 : f32 to vector<2x32xf32>
    %592 = arith.addf %591, %590 : vector<2x32xf32>
    %593 = arith.divf %591, %592 : vector<2x32xf32>
    %594 = vector.extract_strided_slice %581 {offsets = [0, 64], sizes = [2, 32], strides = [1, 1]} : vector<2x128xf32> to vector<2x32xf32>
    %595 = math.tanh %594 : vector<2x32xf32>
    %596 = vector.extract_strided_slice %581 {offsets = [0, 96], sizes = [2, 32], strides = [1, 1]} : vector<2x128xf32> to vector<2x32xf32>
    %597 = arith.negf %596 : vector<2x32xf32>
    %598 = math.exp %597 : vector<2x32xf32>
    %cst_107 = arith.constant 1.000000e+00 : f32
    %599 = vector.broadcast %cst_107 : f32 to vector<2x32xf32>
    %600 = arith.addf %599, %598 : vector<2x32xf32>
    %601 = arith.divf %599, %600 : vector<2x32xf32>
    %602 = arith.mulf %593, %578 : vector<2x32xf32>
    %603 = arith.mulf %587, %595 : vector<2x32xf32>
    %604 = arith.addf %602, %603 : vector<2x32xf32>
    %605 = math.tanh %604 : vector<2x32xf32>
    %606 = arith.mulf %601, %605 : vector<2x32xf32>
    %607 = vector.extract_strided_slice %339 {offsets = [12, 0], sizes = [2, 1], strides = [1, 1]} : vector<16x1xf32> to vector<2x1xf32>
    %608 = arith.subf %606, %574 : vector<2x32xf32>
    %609 = vector.broadcast %607 : vector<2x1xf32> to vector<2x32xf32>
    %610 = arith.mulf %609, %608 : vector<2x32xf32>
    %611 = arith.addf %574, %610 : vector<2x32xf32>
    %612 = arith.subf %604, %578 : vector<2x32xf32>
    %613 = vector.broadcast %607 : vector<2x1xf32> to vector<2x32xf32>
    %614 = arith.mulf %613, %612 : vector<2x32xf32>
    %615 = arith.addf %578, %614 : vector<2x32xf32>
    %616 = vector.broadcast %607 : vector<2x1xf32> to vector<2x32xf32>
    %617 = arith.mulf %616, %606 : vector<2x32xf32>
    %c6_108 = arith.constant 6 : index
    %c0_109 = arith.constant 0 : index
    %618 = vector.load %arg25[%c6_108, %c0_109] : memref<16x32xf32, #tpu.memory_space<vmem>>, vector<2x32xf32>
    tpu.vector_store %arg25[%c6_108, %c0_109], %617 {strides = array<i32>} : memref<16x32xf32, #tpu.memory_space<vmem>>, vector<2x32xf32>,
    %619 = vector.extract_strided_slice %345 {offsets = [14, 0], sizes = [2, 128], strides = [1, 1]} : vector<16x128xf32> to vector<2x128xf32>
    %cst_110 = arith.constant dense<0.000000e+00> : vector<2x128xf32>
    %620 = tpu.matmul %611, %340, %cst_110 {dimension_numbers = #tpu.dot_dimension_numbers<[1], [0], [0], [1], [0, 0, 1, 1], [], []>} : vector<2x32xf32>, vector<32x128xf32>, vector<2x128xf32> -> vector<2x128xf32>
    %621 = arith.addf %619, %620 : vector<2x128xf32>
    %622 = vector.extract_strided_slice %621 {offsets = [0, 0], sizes = [2, 32], strides = [1, 1]} : vector<2x128xf32> to vector<2x32xf32>
    %623 = arith.negf %622 : vector<2x32xf32>
    %624 = math.exp %623 : vector<2x32xf32>
    %cst_111 = arith.constant 1.000000e+00 : f32
    %625 = vector.broadcast %cst_111 : f32 to vector<2x32xf32>
    %626 = arith.addf %625, %624 : vector<2x32xf32>
    %627 = arith.divf %625, %626 : vector<2x32xf32>
    %628 = vector.extract_strided_slice %621 {offsets = [0, 32], sizes = [2, 32], strides = [1, 1]} : vector<2x128xf32> to vector<2x32xf32>
    %629 = arith.negf %628 : vector<2x32xf32>
    %630 = math.exp %629 : vector<2x32xf32>
    %cst_112 = arith.constant 1.000000e+00 : f32
    %631 = vector.broadcast %cst_112 : f32 to vector<2x32xf32>
    %632 = arith.addf %631, %630 : vector<2x32xf32>
    %633 = arith.divf %631, %632 : vector<2x32xf32>
    %634 = vector.extract_strided_slice %621 {offsets = [0, 64], sizes = [2, 32], strides = [1, 1]} : vector<2x128xf32> to vector<2x32xf32>
    %635 = math.tanh %634 : vector<2x32xf32>
    %636 = vector.extract_strided_slice %621 {offsets = [0, 96], sizes = [2, 32], strides = [1, 1]} : vector<2x128xf32> to vector<2x32xf32>
    %637 = arith.negf %636 : vector<2x32xf32>
    %638 = math.exp %637 : vector<2x32xf32>
    %cst_113 = arith.constant 1.000000e+00 : f32
    %639 = vector.broadcast %cst_113 : f32 to vector<2x32xf32>
    %640 = arith.addf %639, %638 : vector<2x32xf32>
    %641 = arith.divf %639, %640 : vector<2x32xf32>
    %642 = arith.mulf %633, %615 : vector<2x32xf32>
    %643 = arith.mulf %627, %635 : vector<2x32xf32>
    %644 = arith.addf %642, %643 : vector<2x32xf32>
    %645 = math.tanh %644 : vector<2x32xf32>
    %646 = arith.mulf %641, %645 : vector<2x32xf32>
    %647 = vector.extract_strided_slice %339 {offsets = [14, 0], sizes = [2, 1], strides = [1, 1]} : vector<16x1xf32> to vector<2x1xf32>
    %648 = arith.subf %646, %611 : vector<2x32xf32>
    %649 = vector.broadcast %647 : vector<2x1xf32> to vector<2x32xf32>
    %650 = arith.mulf %649, %648 : vector<2x32xf32>
    %651 = arith.addf %611, %650 : vector<2x32xf32>
    %652 = arith.subf %644, %615 : vector<2x32xf32>
    %653 = vector.broadcast %647 : vector<2x1xf32> to vector<2x32xf32>
    %654 = arith.mulf %653, %652 : vector<2x32xf32>
    %655 = arith.addf %615, %654 : vector<2x32xf32>
    %c0_114 = arith.constant 0 : index
    %c0_115 = arith.constant 0 : index
    %656 = vector.load %arg23[%c0_114, %c0_115] : memref<2x32xf32, #tpu.memory_space<vmem>>, vector<2x32xf32>
    tpu.vector_store %arg23[%c0_114, %c0_115], %651 {strides = array<i32>} : memref<2x32xf32, #tpu.memory_space<vmem>>, vector<2x32xf32>,
    %c0_116 = arith.constant 0 : index
    %c0_117 = arith.constant 0 : index
    %657 = vector.load %arg24[%c0_116, %c0_117] : memref<2x32xf32, #tpu.memory_space<vmem>>, vector<2x32xf32>
    tpu.vector_store %arg24[%c0_116, %c0_117], %655 {strides = array<i32>} : memref<2x32xf32, #tpu.memory_space<vmem>>, vector<2x32xf32>,
    %c0_118 = arith.constant 0 : index
    %c0_119 = arith.constant 0 : index
    %658 = vector.load %arg25[%c0_118, %c0_119] : memref<16x32xf32, #tpu.memory_space<vmem>>, vector<8x32xf32>
    %c0_120 = arith.constant 0 : index
    %c0_121 = arith.constant 0 : index
    %659 = vector.load %arg12[%c0_120, %c0_121] : memref<32x32xf32, #tpu.memory_space<vmem>>, vector<32x32xf32>
    %cst_122 = arith.constant dense<0.000000e+00> : vector<8x32xf32>
    %660 = tpu.matmul %658, %659, %cst_122 {dimension_numbers = #tpu.dot_dimension_numbers<[1], [0], [0], [1], [0, 0, 1, 1], [], []>} : vector<8x32xf32>, vector<32x32xf32>, vector<8x32xf32> -> vector<8x32xf32>
    %c0_123 = arith.constant 0 : index
    %c0_124 = arith.constant 0 : index
    %661 = vector.load %arg13[%c0_123, %c0_124] : memref<1x32xf32, #tpu.memory_space<vmem>>, vector<1x32xf32>
    %662 = vector.broadcast %661 : vector<1x32xf32> to vector<8x32xf32>
    %663 = arith.addf %660, %662 : vector<8x32xf32>
    %cst_125 = arith.constant dense<0.000000e+00> : vector<8xf32>
    %664 = vector.multi_reduction <add>, %663, %cst_125 [1] : vector<8x32xf32> to vector<8xf32>
    %665 = vector.shape_cast %664 : vector<8xf32> to vector<8x1xf32>
    %cst_126 = arith.constant 3.200000e+01 : f32
    %666 = vector.broadcast %cst_126 : f32 to vector<8x1xf32>
    %667 = arith.divf %665, %666 : vector<8x1xf32>
    %668 = vector.broadcast %667 : vector<8x1xf32> to vector<8x32xf32>
    %669 = arith.subf %663, %668 : vector<8x32xf32>
    %670 = arith.mulf %669, %669 : vector<8x32xf32>
    %cst_127 = arith.constant dense<0.000000e+00> : vector<8xf32>
    %671 = vector.multi_reduction <add>, %670, %cst_127 [1] : vector<8x32xf32> to vector<8xf32>
    %672 = vector.shape_cast %671 : vector<8xf32> to vector<8x1xf32>
    %cst_128 = arith.constant 3.200000e+01 : f32
    %673 = vector.broadcast %cst_128 : f32 to vector<8x1xf32>
    %674 = arith.divf %672, %673 : vector<8x1xf32>
    %675 = vector.broadcast %667 : vector<8x1xf32> to vector<8x32xf32>
    %676 = arith.subf %663, %675 : vector<8x32xf32>
    %cst_129 = arith.constant 9.99999974E-6 : f32
    %677 = vector.broadcast %cst_129 : f32 to vector<8x1xf32>
    %678 = arith.addf %674, %677 : vector<8x1xf32>
    %679 = math.rsqrt %678 : vector<8x1xf32>
    %680 = vector.broadcast %679 : vector<8x1xf32> to vector<8x32xf32>
    %681 = arith.mulf %676, %680 : vector<8x32xf32>
    %c0_130 = arith.constant 0 : index
    %c0_131 = arith.constant 0 : index
    %682 = vector.load %arg14[%c0_130, %c0_131] : memref<1x32xf32, #tpu.memory_space<vmem>>, vector<1x32xf32>
    %683 = vector.broadcast %682 : vector<1x32xf32> to vector<8x32xf32>
    %684 = arith.mulf %681, %683 : vector<8x32xf32>
    %c0_132 = arith.constant 0 : index
    %c0_133 = arith.constant 0 : index
    %685 = vector.load %arg15[%c0_132, %c0_133] : memref<1x32xf32, #tpu.memory_space<vmem>>, vector<1x32xf32>
    %686 = vector.broadcast %685 : vector<1x32xf32> to vector<8x32xf32>
    %687 = arith.addf %684, %686 : vector<8x32xf32>
    %c0_134 = arith.constant 0 : index
    %c0_135 = arith.constant 0 : index
    %688 = vector.load %arg16[%c0_134, %c0_135] : memref<32x32xf32, #tpu.memory_space<vmem>>, vector<32x32xf32>
    %cst_136 = arith.constant dense<0.000000e+00> : vector<8x32xf32>
    %689 = tpu.matmul %687, %688, %cst_136 {dimension_numbers = #tpu.dot_dimension_numbers<[1], [0], [0], [1], [0, 0, 1, 1], [], []>} : vector<8x32xf32>, vector<32x32xf32>, vector<8x32xf32> -> vector<8x32xf32>
    %c0_137 = arith.constant 0 : index
    %c0_138 = arith.constant 0 : index
    %690 = vector.load %arg17[%c0_137, %c0_138] : memref<1x32xf32, #tpu.memory_space<vmem>>, vector<1x32xf32>
    %691 = vector.broadcast %690 : vector<1x32xf32> to vector<8x32xf32>
    %692 = arith.addf %689, %691 : vector<8x32xf32>
    %cst_139 = arith.constant 0.000000e+00 : f32
    %693 = vector.broadcast %cst_139 : f32 to vector<8x32xf32>
    %694 = arith.cmpf oge, %692, %693 : vector<8x32xf32>
    %cst_140 = arith.constant 0.00999999977 : f32
    %695 = vector.broadcast %cst_140 : f32 to vector<8x32xf32>
    %696 = arith.mulf %695, %692 : vector<8x32xf32>
    %697 = arith.select %694, %692, %696 : vector<8x32xi1>, vector<8x32xf32>
    %c0_141 = arith.constant 0 : index
    %c0_142 = arith.constant 0 : index
    %698 = vector.load %arg18[%c0_141, %c0_142] : memref<32x16xf32, #tpu.memory_space<vmem>>, vector<32x16xf32>
    %cst_143 = arith.constant dense<0.000000e+00> : vector<8x16xf32>
    %699 = tpu.matmul %697, %698, %cst_143 {dimension_numbers = #tpu.dot_dimension_numbers<[1], [0], [0], [1], [0, 0, 1, 1], [], []>} : vector<8x32xf32>, vector<32x16xf32>, vector<8x16xf32> -> vector<8x16xf32>
    %c0_144 = arith.constant 0 : index
    %c0_145 = arith.constant 0 : index
    %700 = vector.load %arg19[%c0_144, %c0_145] : memref<1x16xf32, #tpu.memory_space<vmem>>, vector<1x16xf32>
    %701 = vector.broadcast %700 : vector<1x16xf32> to vector<8x16xf32>
    %702 = arith.addf %699, %701 : vector<8x16xf32>
    %cst_146 = arith.constant dense<0xFF800000> : vector<8xf32>
    %703 = vector.multi_reduction <maximumf>, %702, %cst_146 [1] : vector<8x16xf32> to vector<8xf32>
    %704 = vector.shape_cast %703 : vector<8xf32> to vector<8x1xf32>
    %705 = vector.broadcast %704 : vector<8x1xf32> to vector<8x16xf32>
    %706 = arith.subf %702, %705 : vector<8x16xf32>
    %707 = math.exp %706 : vector<8x16xf32>
    %cst_147 = arith.constant dense<0.000000e+00> : vector<8xf32>
    %708 = vector.multi_reduction <add>, %707, %cst_147 [1] : vector<8x16xf32> to vector<8xf32>
    %709 = vector.shape_cast %708 : vector<8xf32> to vector<8x1xf32>
    %710 = math.log %709 : vector<8x1xf32>
    %711 = arith.addf %710, %704 : vector<8x1xf32>
    %712 = vector.broadcast %711 : vector<8x1xf32> to vector<8x16xf32>
    %713 = arith.subf %702, %712 : vector<8x16xf32>
    %c0_148 = arith.constant 0 : index
    %c0_149 = arith.constant 0 : index
    %714 = vector.load %arg3[%c0_148, %c0_149] : memref<8x1xf32, #tpu.memory_space<vmem>>, vector<8x1xf32>
    %715 = vector.broadcast %714 : vector<8x1xf32> to vector<8x16xf32>
    %716 = arith.mulf %713, %715 : vector<8x16xf32>
    %c0_150 = arith.constant 0 : index
    %c0_151 = arith.constant 0 : index
    %717 = vector.load %arg20[%c0_150, %c0_151] : memref<8x16xf32, #tpu.memory_space<vmem>>, vector<8x16xf32>
    tpu.vector_store %arg20[%c0_150, %c0_151], %716 {strides = array<i32>} : memref<8x16xf32, #tpu.memory_space<vmem>>, vector<8x16xf32>,
    return
  }
}

</mosaic_0001>

<bundles_post_ra>
// kernel: tpu_custom_call.1
= control target key start
LH: loop header
LB: loop body
LE: loop exit
PB: predicated region body
PF: predicated region fallthrough
CT: control target
= control target key end

     0   :  { %s4406_s0 = inlined_call_operand.hbm [shape: f32[16,16], index: 0, kind: input, shape index: {}]   ;;  %s4407_s1 = inlined_call_operand.vmem [shape: f32[16,1], index: 1, kind: input, shape index: {}]   ;;  %s4408_s2 = inlined_call_operand.vmem [shape: f32[16,1], index: 2, kind: input, shape index: {}]   ;;  %s4409_s3 = inlined_call_operand.vmem [shape: f32[8,1], index: 3, kind: input, shape index: {}]   ;;  %s4410_s4 = inlined_call_operand.hbm [shape: f32[16,128], index: 4, kind: input, shape index: {}]   ;;  %s4411_s5 = inlined_call_operand.vmem [shape: f32[32,128], index: 5, kind: input, shape index: {}]   ;;  %s4412_s6 = inlined_call_operand.hbm [shape: f32[1,128], index: 6, kind: input, shape index: {}]   ;;  %s4413_s7 = inlined_call_operand.vmem [shape: f32[32,32], index: 7, kind: input, shape index: {}]   ;;  %s4414_s8 = inlined_call_operand.hbm [shape: f32[1,32], index: 8, kind: input, shape index: {}]   ;;  %s4415_s9 = inlined_call_operand.vmem [shape: f32[32,128], index: 9, kind: input, shape index: {}]   ;;  %s4416_s10 = inlined_call_operand.hbm [shape: f32[32,128], index: 10, kind: input, shape index: {}]   ;;  %s4417_s11 = inlined_call_operand.hbm [shape: f32[1,128], index: 11, kind: input, shape index: {}]   ;;  %s4418_s12 = inlined_call_operand.hbm [shape: f32[32,32], index: 12, kind: input, shape index: {}]   ;;  %s4419_s13 = inlined_call_operand.vmem [shape: f32[1,32], index: 13, kind: input, shape index: {}]   ;;  %s4420_s14 = inlined_call_operand.vmem [shape: f32[1,32], index: 14, kind: input, shape index: {}]   ;;  %s4421_s15 = inlined_call_operand.vmem [shape: f32[1,32], index: 15, kind: input, shape index: {}]   ;;  %s4422_s16 = inlined_call_operand.hbm [shape: f32[32,32], index: 16, kind: input, shape index: {}]   ;;  %s4423_s17 = inlined_call_operand.vmem [shape: f32[1,32], index: 17, kind: input, shape index: {}]   ;;  %s4424_s18 = inlined_call_operand.vmem [shape: f32[32,16], index: 18, kind: input, shape index: {}]   ;;  %s4425_s19 = inlined_call_operand.vmem [shape: f32[1,16], index: 19, kind: input, shape index: {}]   ;;  %s4426_s20 = inlined_call_operand.hbm [shape: f32[8,16], index: 20, kind: output, shape index: {0}]   ;;  %s4427_s21 = inlined_call_operand.hbm [shape: f32[2,32], index: 21, kind: output, shape index: {1}]   ;;  %s4428_s22 = inlined_call_operand.hbm [shape: f32[2,32], index: 22, kind: output, shape index: {2}]   ;;  %s4429_s23 = inlined_call_operand.hbm [shape: f32[2,32], index: 23, kind: output, shape index: {3}]   ;;  %s4430_s24 = inlined_call_operand.hbm [shape: f32[2,32], index: 24, kind: output, shape index: {4}]  }
   0x1   :  { %4435 = sst [smem:[#allocation32_spill]] %s4406_s0 }
   0x2   :  { %4436 = sst [smem:[#allocation33_spill]] %s4407_s1 }
   0x3   :  { %4437 = sst [smem:[#allocation34_spill]] %s4408_s2 }
   0x4   :  { %4438 = sst [smem:[#allocation35_spill]] %s4409_s3 }
   0x5   :  { %4439 = sst [smem:[#allocation36_spill]] %s4410_s4 }
   0x6   :  { %4440 = sst [smem:[#allocation37_spill]] %s4411_s5 }
   0x7   :  { %4441 = sst [smem:[#allocation38_spill]] %s4412_s6 }
   0x8   :  { %4442 = sst [smem:[#allocation39_spill]] %s4413_s7 }
   0x9   :  { %4443 = sst [smem:[#allocation40_spill]] %s4414_s8 }
   0xa   :  { %4444 = sst [smem:[#allocation41_spill]] %s4426_s20 }
   0xb   :  { %30 = vsyncpa [#allocation4], 0 }
   0xc   :  { %31 = vsyncpa [#allocation7], 0 }
   0xd   :  { %32 = vsyncpa [#allocation10], 0 }
   0xe   :  { %33 = vsyncpa [#allocation13], 0 }
   0xf   :  { %34 = vsyncpa [#allocation16], 0 }
  0x10   :  { %35 = vsyncpa [#allocation5], 0 }
  0x11   :  { %36 = vsyncpa [#allocation19], 0 }
  0x12   :  { %37 = vsyncpa [#allocation22], 0  ;;  %s3650_s5 = smov [#allocation6]   ;;  %s3651_s27 = smov [#allocation9]  }
  0x13   :  { %s61_s26 = sshll.u32 %s3650_s5, 4  ;;  %s88_s28 = sshll.u32 %s3651_s27, 4  ;;  %s62_s26 = int_to_ptr.vmem [resolvable:$true] %s61_s26  ;;  %s89_s28 = int_to_ptr.vmem [resolvable:$true] %s88_s28 }
  0x14   :  { %s3382_s6 = scalar_lea.vmem %s62_s26, 256  ;;  %p3387_p1 = scmp.lt.s32.totalorder %s62_s26, %s62_s26 }
  0x15   :  { %p3383_p0 = scmp.ne.s32.totalorder %s62_s26, %s3382_s6  ;;  %p3388_p2 = scmp.lt.s32.totalorder %s3382_s6, %s3382_s6 }
  0x17   :  { %p3389_p3 = por %p3388_p2, %p3387_p1 }
  0x19   :  { %p3390_p4 = pnand %p3389_p3, %p3383_p0 }
  0x1b   :  { %3393 = shalt.err (!%p3390_p4)
}
  0x1c   :  { %s3652_s2 = smov 128   ;;  %s3653_s29 = smov 8  }
  0x1d   :  { %s4445_s30 = sld [smem:[#allocation36_spill]]  ;;  %s3402_s3 = scalar_lea.vmem %s89_s28, 16 }
  0x1e   :  { %p3403_p5 = scmp.ne.s32.totalorder %s89_s28, %s3402_s3  ;;  %s3406_s25 = scalar_lea.vmem %s89_s28, 32 }
  0x1f   :  { %p3407_p6 = scmp.lt.s32.totalorder %s89_s28, %s89_s28  ;;  %p3408_p7 = scmp.lt.s32.totalorder %s3406_s25, %s3402_s3 }
  0x21   :  { %p3409_p8 = por %p3408_p7, %p3407_p6 }
  0x23   :  { %67 = dma.hbm_to_vmem [thread:$0]  %s4445_s30, 256, %s62_s26, [#allocation7], %s3652_s2, %s3652_s2, %s3653_s29  }
  0x24   :  { %p3410_p9 = pnand %p3409_p8, %p3403_p5 }
  0x26   :  { %3413 = shalt.err (!%p3410_p9)
}
  0x27   :  { %s4446_s1 = sld [smem:[#allocation40_spill]]  ;;  %s3654_s5 = smov [#allocation12]  }
  0x28   :  { %s112_s27 = sshll.u32 %s3654_s5, 4  ;;  %s3655_s6 = smov [#allocation3]   ;;  %s113_s27 = int_to_ptr.vmem [resolvable:$true] %s112_s27 }
  0x29   :  { %s43_s20 = sshll.u32 %s3655_s6, 4  ;;  %s3422_s0 = scalar_lea.vmem %s113_s27, 16  ;;  %s44_s20 = int_to_ptr.vmem [resolvable:$true] %s43_s20 }
  0x2a   :  { %p3423_p10 = scmp.ne.s32.totalorder %s113_s27, %s3422_s0  ;;  %s3426_s26 = scalar_lea.vmem %s113_s27, 32 }
  0x2b   :  { %p3427_p11 = scmp.lt.s32.totalorder %s113_s27, %s113_s27  ;;  %p3428_p12 = scmp.lt.s32.totalorder %s3426_s26, %s3422_s0 }
  0x2d   :  { %91 = dma.hbm_to_vmem [thread:$0]  %s4446_s1, 16, %s89_s28, [#allocation10]  }
  0x2e   :  { %p3429_p13 = por %p3428_p12, %p3427_p11 }
  0x30   :  { %p3430_p0 = pnand %p3429_p13, %p3423_p10 }
  0x32   :  { %3433 = shalt.err (!%p3430_p0)
}
  0x33   :  { %115 = dma.hbm_to_vmem [thread:$0]  %s4417_s11, 16, %s113_s27, [#allocation13]  }
  0x34   :  { %s3442_s3 = scalar_lea.vmem %s44_s20, 256  ;;  %p3447_p2 = scmp.lt.s32.totalorder %s44_s20, %s44_s20 }
  0x35   :  { %p3443_p1 = scmp.ne.s32.totalorder %s44_s20, %s3442_s3  ;;  %p3448_p3 = scmp.lt.s32.totalorder %s3442_s3, %s3442_s3 }
  0x37   :  { %p3449_p4 = por %p3448_p3, %p3447_p2 }
  0x39   :  { %p3450_p5 = pnand %p3449_p4, %p3443_p1 }
  0x3b   :  { %3453 = shalt.err (!%p3450_p5)
}
  0x3c   :  { %s4447_s8 = sld [smem:[#allocation32_spill]]  ;;  %s3656_s4 = smov [#allocation8]  }
  0x3d   :  { %s76_s1 = sshll.u32 %s3656_s4, 4  ;;  %s3657_s5 = smov [#allocation11]   ;;  %s77_s1 = int_to_ptr.vmem [resolvable:$true] %s76_s1 }
  0x3e   :  { %s99_s6 = sshll.u32 %s3657_s5, 4  ;;  %s3462_s11 = scalar_lea.vmem %s77_s1, 16  ;;  %s100_s6 = int_to_ptr.vmem [resolvable:$true] %s99_s6 }
  0x3f   :  { %p3463_p6 = scmp.ne.s32.totalorder %s77_s1, %s3462_s11  ;;  %s3466_s27 = scalar_lea.vmem %s77_s1, 32 }
  0x40   :  { %p3467_p7 = scmp.lt.s32.totalorder %s77_s1, %s77_s1  ;;  %p3468_p8 = scmp.lt.s32.totalorder %s3466_s27, %s3462_s11 }
  0x42   :  { %49 = dma.hbm_to_vmem [thread:$0]  %s4447_s8, 256, %s44_s20, [#allocation4], %s3652_s2, %s3652_s2, %s3653_s29  }
  0x43   :  { %p3469_p9 = por %p3468_p8, %p3467_p7 }
  0x45   :  { %p3470_p10 = pnand %p3469_p9, %p3463_p6 }
  0x47   :  { %3473 = shalt.err (!%p3470_p10)
}
  0x48   :  { %s4448_s7 = sld [smem:[#allocation38_spill]]  ;;  %s3482_s30 = scalar_lea.vmem %s100_s6, 512 }
  0x49   :  { %p3483_p11 = scmp.ne.s32.totalorder %s100_s6, %s3482_s30  ;;  %p3487_p12 = scmp.lt.s32.totalorder %s100_s6, %s100_s6 }
  0x4a   :  { %p3488_p13 = scmp.lt.s32.totalorder %s3482_s30, %s3482_s30 }
  0x4c   :  { %p3489_p0 = por %p3488_p13, %p3487_p12 }
  0x4e   :  { %79 = dma.hbm_to_vmem [thread:$0]  %s4448_s7, 16, %s77_s1, [#allocation7]  }
  0x4f   :  { %p3490_p1 = pnand %p3489_p0, %p3483_p11 }
  0x51   :  { %3493 = shalt.err (!%p3490_p1)
}
  0x52   :  { %105 = dma.hbm_to_vmem [thread:$0]  %s4416_s10, 512, %s100_s6, [#allocation10], %s3652_s2, %s3652_s2, %s3653_s29  }
  0x53   :  { %s3658_s28 = smov [#allocation14]   ;;  %s3659_s8 = smov [#allocation15]  }
  0x54   :  { %s121_s25 = sshll.u32 %s3658_s28, 4  ;;  %s139_s4 = sshll.u32 %s3659_s8, 4  ;;  %s122_s25 = int_to_ptr.vmem [resolvable:$true] %s121_s25  ;;  %s140_s4 = int_to_ptr.vmem [resolvable:$true] %s139_s4 }
  0x55   :  { %s3502_s1 = scalar_lea.vmem %s122_s25, 512  ;;  %p3507_p3 = scmp.lt.s32.totalorder %s122_s25, %s122_s25 }
  0x56   :  { %p3503_p2 = scmp.ne.s32.totalorder %s122_s25, %s3502_s1  ;;  %p3508_p4 = scmp.lt.s32.totalorder %s3502_s1, %s3502_s1 }
  0x58   :  { %p3509_p5 = por %p3508_p4, %p3507_p3 }
  0x5a   :  { %p3510_p6 = pnand %p3509_p5, %p3503_p2 }
  0x5c   :  { %3513 = shalt.err (!%p3510_p6)
}
  0x5d   :  { %127 = dma.hbm_to_vmem [thread:$0]  %s4418_s12, 512, %s122_s25, [#allocation13], %s3652_s2, %s3652_s2, %s3653_s29  }
  0x5e   :  { %s3522_s10 = scalar_lea.vmem %s140_s4, 512  ;;  %p3527_p8 = scmp.lt.s32.totalorder %s140_s4, %s140_s4 }
  0x5f   :  { %p3523_p7 = scmp.ne.s32.totalorder %s140_s4, %s3522_s10  ;;  %p3528_p9 = scmp.lt.s32.totalorder %s3522_s10, %s3522_s10 }
  0x61   :  { %p3529_p10 = por %p3528_p9, %p3527_p8 }
  0x63   :  { %p3530_p11 = pnand %p3529_p10, %p3523_p7 }
  0x65   :  { %3533 = shalt.err (!%p3530_p11)
}
  0x66   :  { %145 = dma.hbm_to_vmem [thread:$0]  %s4422_s16, 512, %s140_s4, [#allocation16], %s3652_s2, %s3652_s2, %s3653_s29  }
  0x67   :  { %3634 = dma.done.wait [#allocation4], 256  }
  0x68   :  { %3635 = vsyncadd [#allocation4], 4294967040 }
  0x69   :  { %3636 = dma.done.wait [#allocation7], 272  }
  0x6a   :  { %3637 = vsyncadd [#allocation7], 4294967024 }
  0x6b   :  { %3638 = dma.done.wait [#allocation10], 528  }
  0x6c   :  { %3639 = vsyncadd [#allocation10], 4294966768 }
  0x6d   :  { %3640 = dma.done.wait [#allocation13], 528  }
  0x6e   :  { %3641 = vsyncadd [#allocation13], 4294966768 }
  0x6f   :  { %3642 = dma.done.wait [#allocation16], 512  }
  0x70   :  { %3643 = vsyncadd [#allocation16], 4294966784  ;;  %v3660_v0 = vmov 0.0   ;;  %vm3661_vm0 = vmmov 0   ;;  %v185_v1 = vld [vmem:[#allocation6 + $0x8] sm:$0xff]  ;;  %s4449_s2 = sld [smem:[#allocation37_spill]] }
  0x71   :  { %2982 = vmatprep.subr.mxu1 %v3660_v0  ;;  %2990 = vmatprep.mubr.msk.f32.mxu1 %vm3661_vm0, %v3660_v0  ;;  %v184_v3 = vld [vmem:[#allocation6] sm:$0xff]  ;;  %v176_v5 = vld [vmem:[#allocation3] sm:$0xff]  ;;  %vm193_vm1 = vcmask 130048   ;;  %v177_v6 = vld [vmem:[#allocation3 + $0x8] sm:$0xff]  ;;  %s4450_s25 = sld [smem:[#allocation33_spill]]  ;;  %v3662_v10 = vmov 0  }
  0x72   :  { %2975 = vmatprep.subr.mxu0 %v185_v1  ;;  %2979 = vmatprep.mubr.msk.f32.mxu0 %vm193_vm1, %v176_v5  ;;  %v2817_v11 = vld [vmem:[#allocation8] ss:$0 sm:$0xff]  ;;  %s3663_s8 = smov 64   ;;  %s3664_s4 = smov 32   ;;  %vm275_vm2 = vcmask 261120   ;;  %vm387_vm3 = vcmask 254976  }
  0x73   :  { %2976 = vmatpush3.msra.mxu0 %v185_v1  ;;  %3234 = vset.pattern.permute.xlu1 %v3662_v10  ;;  %vm641_vm4 = vcmask 259076   ;;  %s4451_s6 = sld [smem:[#allocation39_spill]]  ;;  %vm514_vm5 = vcmask 257026   ;;  %vm768_vm6 = vcmask 261126  }
  0x74   :  { %2977 = vmatprep.subr.mxu0 %v184_v3  ;;  %3235 = vset.pattern.permute.xlu0 %v3662_v10  ;;  %s4452_s11 = sld [smem:[#allocation34_spill]] }
  0x75   :  { %2978 = vmatpush3.msra.mxu0 %v184_v3  ;;  %s4453_s5 = sld [smem:[#allocation35_spill]] }
  0x76   :  { %v3841_v2 = vld [vmem:[%s4449_s2 + $0x18] sm:$0xff]  ;;  %v3847_v4 = vld [vmem:[%s4449_s2 + $0x10] sm:$0xff]  ;;  %v3854_v7 = vld [vmem:[%s4449_s2 + $0x8] sm:$0xff]  ;;  %2980 = vmatmul.mubr.msk.f32.vlgmr.msra.gmra.mxu0 %vm193_vm1, %v177_v6  ;;  %2993 = vmatprep.subr.mxu0 %v3660_v0 }
  0x77   :  { %2983 = vmatpush3.msra.mxu1 %v3841_v2  ;;  %v3862_v8 = vld [vmem:[%s4449_s2] sm:$0xff]  ;;  %2994 = vmatpush3.msra.mxu0 %v3841_v2 }
  0x78   :  { %2984 = vmatprep.subr.mxu1 %v3660_v0  ;;  %2995 = vmatprep.subr.mxu0 %v3660_v0  ;;  %v178_v9 = vld [vmem:[%s4450_s25] sm:$0xff] }
  0x79   :  { %2985 = vmatpush3.msra.mxu1 %v3847_v4  ;;  %2996 = vmatpush3.msra.mxu0 %v3847_v4 }
  0x7a   :  { %2986 = vmatprep.subr.mxu1 %v3660_v0  ;;  %2997 = vmatprep.subr.mxu0 %v3660_v0 }
  0x7b   :  { %2987 = vmatpush3.msra.mxu1 %v3854_v7  ;;  %3001 = vmatprep.mubr.msk.f32.mxu0 %vm3661_vm0, %v3660_v0 }
  0x7c   :  { %2988 = vmatprep.subr.mxu1 %v3660_v0  ;;  %2998 = vmatpush3.msra.mxu0 %v3854_v7 }
  0x7d   :  { %2989 = vmatpush3.msra.mxu1 %v3862_v8  ;;  %2999 = vmatprep.subr.mxu0 %v3660_v0 }
  0x7e   :  { %2991 = vmatmul.mubr.f32.vlgmr.msra.gmra.mxu1 %v3660_v0  ;;  %3004 = vmatprep.subr.mxu1 %v3660_v0 }
  0x7f   :  { %3005 = vmatpush3.msra.mxu1 %v3841_v2  ;;  %3000 = vmatpush3.msra.mxu0 %v3862_v8 }
  0x80   :  { %3006 = vmatprep.subr.mxu1 %v3660_v0  ;;  %3012 = vmatprep.mubr.msk.f32.mxu1 %vm3661_vm0, %v3660_v0 }
  0x81   :  { %3007 = vmatpush3.msra.mxu1 %v3847_v4  ;;  %3015 = vmatprep.subr.mxu0 %v3660_v0 }
  0x82   :  { %3008 = vmatprep.subr.mxu1 %v3660_v0  ;;  %376 = vperm.xlu1 %3234, %v178_v9  }
  0x83   :  { %3009 = vmatpush3.msra.mxu1 %v3854_v7 }
  0x84   :  { %3010 = vmatprep.subr.mxu1 %v3660_v0 }
  0x85   :  { %3011 = vmatpush3.msra.mxu1 %v3862_v8 }
  0x86   :  { %3026 = vmatprep.subr.mxu1 %v3660_v0 }
  0xfd   :  { %v3901_v30 = vpop.permute.xlu1 %376 }
 0x136   :  { %v2981_v12 = vpop.f32.mrf.mxu0 }
 0x137   :  { %v3893_v13 = vadd.f32 %v2981_v12, %v2817_v11 }
 0x138   :  { %v266_v14 = vpop.f32.mrf.mxu0 }
 0x139   :  { %v3895_v15 = vadd.f32 %v2817_v11, %v266_v14 }
 0x13e   :  { %v345_v16 = vpop.f32.mrf.mxu1 }
 0x13f   :  { %v349_v17 = vadd.f32 %v345_v16, %v3895_v15 }
 0x140   :  { %v2992_v18 = vpop.f32.mrf.mxu1 }
 0x141   :  { %3236 = vtanh.f32 %v349_v17  ;;  %v2820_v20 = vmul.f32 -1.442695, %v349_v17 }
 0x143   :  { %3238 = vpow2.f32 %v2820_v20 }
 0x14e   :  { %v3237_v19 = vpop.eup %3236 }
 0x14f   :  { %359 = vrot.lane.b32.xlu0 %v3237_v19, %s3663_s8 }
 0x150   :  { %v3239_v21 = vpop.eup %3238 }
 0x151   :  { %v353_v22 = vadd.f32 1.0, %v3239_v21 }
 0x153   :  { %3240 = vrcp.f32 %v353_v22 }
 0x160   :  { %v3241_v23 = vpop.eup %3240 }
 0x161   :  { %v357_v26 = vmul.f32 0.0, %v3241_v23 }
 0x1c1   :  { %v360_v24 = vpop.permute.xlu0 %359 }
 0x1c2   :  { %v362_v25 = vmul.f32 %v3241_v23, %v360_v24 }
 0x1c4   :  { %364 = vrot.lane.b32.xlu0 %v362_v25, %s3664_s4 }
 0x236   :  { %v365_v27 = vpop.permute.xlu0 %364 }
 0x237   :  { %v367_v28 = vadd.f32 %v365_v27, %v357_v26 }
 0x239   :  { %3242 = vtanh.f32 %v367_v28  ;;  %v381_v46 = vmul.f32 %v3901_v30, %v367_v28 }
 0x23b   :  { %v476_v47 = vrot.slane %v381_v46, 6 }
 0x246   :  { %v3243_v29 = vpop.eup %3242 }
 0x247   :  { %370 = vrot.lane.b32.xlu1 %v3243_v29, %s3663_s8 }
 0x2b9   :  { %v371_v31 = vpop.permute.xlu1 %370 }
 0x2ba   :  { %v373_v32 = vmul.f32 %v3241_v23, %v371_v31 }
 0x2bc   :  { %v3904_v33 = vmul.f32 %v3901_v30, %v373_v32 }
 0x2be   :  { %390 = vrot.lane.b32.xlu0 %v3904_v33, %s3664_s4  ;;  %v495_v54 = vrot.slane %v3904_v33, 6 }
 0x330   :  { %v391_v34 = vpop.permute.xlu0 %390 }
 0x331   :  { %3002 = vmatmul.mubr.msk.f32.vlgmr.msra.gmra.mxu0 %vm275_vm2, %v391_v34 }
 0x332   :  { %3016 = vmatpush3.msra.mxu0 %v3841_v2  ;;  %3023 = vmatprep.mubr.msk.f32.mxu0 %vm3661_vm0, %v3660_v0 }
 0x333   :  { %3017 = vmatprep.subr.mxu0 %v3660_v0 }
 0x334   :  { %3018 = vmatpush3.msra.mxu0 %v3847_v4 }
 0x335   :  { %3019 = vmatprep.subr.mxu0 %v3660_v0 }
 0x336   :  { %3020 = vmatpush3.msra.mxu0 %v3854_v7 }
 0x337   :  { %3021 = vmatprep.subr.mxu0 %v3660_v0 }
 0x338   :  { %3022 = vmatpush3.msra.mxu0 %v3862_v8 }
 0x339   :  { %3037 = vmatprep.subr.mxu0 %v3660_v0 }
 0x3f1   :  { %v460_v35 = vpop.f32.mrf.mxu0 }
 0x3f2   :  { %v465_v36 = vrot.slane %v460_v35, 6 }
 0x3f3   :  { %v3003_v37 = vpop.f32.mrf.mxu0 }
 0x3f4   :  { %v467_v38 = vadd.f32 %v465_v36, %v3895_v15 }
 0x3f6   :  { %3244 = vtanh.f32 %v467_v38  ;;  %v2822_v40 = vmul.f32 -1.442695, %v467_v38 }
 0x3f8   :  { %3246 = vpow2.f32 %v2822_v40 }
 0x403   :  { %v3245_v39 = vpop.eup %3244 }
 0x404   :  { %480 = vrot.lane.b32.xlu1 %v3245_v39, %s3663_s8 }
 0x405   :  { %v3247_v41 = vpop.eup %3246 }
 0x406   :  { %v471_v42 = vadd.f32 1.0, %v3247_v41 }
 0x408   :  { %3248 = vrcp.f32 %v471_v42 }
 0x415   :  { %v3249_v43 = vpop.eup %3248 }
 0x416   :  { %v478_v48 = vmul.f32 %v3249_v43, %v476_v47 }
 0x476   :  { %v481_v44 = vpop.permute.xlu1 %480 }
 0x477   :  { %v483_v45 = vmul.f32 %v3249_v43, %v481_v44 }
 0x479   :  { %485 = vrot.lane.b32.xlu0 %v483_v45, %s3664_s4 }
 0x4eb   :  { %v486_v49 = vpop.permute.xlu0 %485 }
 0x4ec   :  { %v488_v50 = vadd.f32 %v486_v49, %v478_v48 }
 0x4ee   :  { %3250 = vtanh.f32 %v488_v50  ;;  %v503_v12 = vsub.f32 %v488_v50, %v476_v47 }
 0x4f0   :  { %v504_v14 = vmul.f32 %v503_v12, %v3901_v30 }
 0x4f2   :  { %v506_v16 = vrot.slane %v504_v14, 2 }
 0x4f4   :  { %v508_v17 = vadd.f32 %v506_v16, %v381_v46 }
 0x4f6   :  { %v603_v18 = vrot.slane %v508_v17, 4 }
 0x4fb   :  { %v3251_v51 = vpop.eup %3250 }
 0x4fc   :  { %491 = vrot.lane.b32.xlu1 %v3251_v51, %s3663_s8 }
 0x56e   :  { %v492_v52 = vpop.permute.xlu1 %491 }
 0x56f   :  { %v3924_v53 = vmul.f32 %v3249_v43, %v492_v52 }
 0x571   :  { %v497_v55 = vsub.f32 %v3924_v53, %v495_v54 }
 0x573   :  { %v498_v56 = vmul.f32 %v497_v55, %v3901_v30 }
 0x575   :  { %v500_v57 = vrot.slane %v498_v56, 2 }
 0x577   :  { %v502_v58 = vadd.f32 %v500_v57, %v3904_v33 }
 0x579   :  { %517 = vrot.lane.b32.xlu0 %v502_v58, %s3664_s4  ;;  %v622_v25 = vrot.slane %v502_v58, 4 }
 0x5eb   :  { %v518_v59 = vpop.permute.xlu0 %517 }
 0x5ec   :  { %3013 = vmatmul.mubr.msk.f32.vlgmr.msra.gmra.mxu1 %vm275_vm2, %v518_v59 }
 0x5ed   :  { %3027 = vmatpush3.msra.mxu1 %v3841_v2  ;;  %3034 = vmatprep.mubr.msk.f32.mxu1 %vm3661_vm0, %v3660_v0 }
 0x5ee   :  { %3028 = vmatprep.subr.mxu1 %v3660_v0 }
 0x5ef   :  { %3029 = vmatpush3.msra.mxu1 %v3847_v4 }
 0x5f0   :  { %3030 = vmatprep.subr.mxu1 %v3660_v0 }
 0x5f1   :  { %3031 = vmatpush3.msra.mxu1 %v3854_v7 }
 0x5f2   :  { %3032 = vmatprep.subr.mxu1 %v3660_v0 }
 0x5f3   :  { %3033 = vmatpush3.msra.mxu1 %v3862_v8 }
 0x5f4   :  { %3048 = vmatprep.subr.mxu1 %v3660_v0 }
 0x6ac   :  { %v587_v60 = vpop.f32.mrf.mxu1 }
 0x6ad   :  { %v592_v61 = vrot.slane %v587_v60, 4 }
 0x6ae   :  { %v3014_v62 = vpop.f32.mrf.mxu1 }
 0x6af   :  { %v594_v63 = vadd.f32 %v592_v61, %v3895_v15 }
 0x6b1   :  { %3252 = vtanh.f32 %v594_v63  ;;  %v2824_v3 = vmul.f32 -1.442695, %v594_v63 }
 0x6b3   :  { %3254 = vpow2.f32 %v2824_v3  ;;  %v179_v3 = vld [vmem:[%s4450_s25 + $0x8] sm:$0xff] }
 0x6be   :  { %v3253_v1 = vpop.eup %3252 }
 0x6bf   :  { %607 = vrot.lane.b32.xlu1 %v3253_v1, %s3663_s8 }
 0x6c0   :  { %v3255_v5 = vpop.eup %3254 }
 0x6c1   :  { %v598_v6 = vadd.f32 1.0, %v3255_v5 }
 0x6c3   :  { %3256 = vrcp.f32 %v598_v6 }
 0x6d0   :  { %v3257_v9 = vpop.eup %3256 }
 0x6d1   :  { %v605_v19 = vmul.f32 %v3257_v9, %v603_v18 }
 0x731   :  { %v608_v10 = vpop.permute.xlu1 %607 }
 0x732   :  { %v610_v11 = vmul.f32 %v3257_v9, %v608_v10 }
 0x734   :  { %612 = vrot.lane.b32.xlu0 %v610_v11, %s3664_s4 }
 0x7a6   :  { %v613_v20 = vpop.permute.xlu0 %612 }
 0x7a7   :  { %v615_v21 = vadd.f32 %v613_v20, %v605_v19 }
 0x7a9   :  { %3258 = vtanh.f32 %v615_v21  ;;  %v630_v44 = vsub.f32 %v615_v21, %v603_v18 }
 0x7ab   :  { %v631_v45 = vmul.f32 %v630_v44, %v3901_v30 }
 0x7ad   :  { %v633_v46 = vrot.slane %v631_v45, 4 }
 0x7af   :  { %v635_v47 = vadd.f32 %v633_v46, %v508_v17 }
 0x7b6   :  { %v3259_v22 = vpop.eup %3258 }
 0x7b7   :  { %618 = vrot.lane.b32.xlu1 %v3259_v22, %s3663_s8 }
 0x829   :  { %v619_v23 = vpop.permute.xlu1 %618 }
 0x82a   :  { %v3947_v24 = vmul.f32 %v3257_v9, %v619_v23 }
 0x82c   :  { %v624_v26 = vsub.f32 %v3947_v24, %v622_v25 }
 0x82e   :  { %v625_v27 = vmul.f32 %v624_v26, %v3901_v30 }
 0x830   :  { %v627_v28 = vrot.slane %v625_v27, 4 }
 0x832   :  { %v629_v29 = vadd.f32 %v627_v28, %v502_v58 }
 0x834   :  { %644 = vrot.lane.b32.xlu0 %v629_v29, %s3664_s4  ;;  %v749_v55 = vrot.slane %v629_v29, 2 }
 0x8a6   :  { %v645_v31 = vpop.permute.xlu0 %644 }
 0x8a7   :  { %3024 = vmatmul.mubr.msk.f32.vlgmr.msra.gmra.mxu0 %vm275_vm2, %v645_v31 }
 0x8a8   :  { %3038 = vmatpush3.msra.mxu0 %v3841_v2  ;;  %3045 = vmatprep.mubr.msk.f32.mxu0 %vm3661_vm0, %v3660_v0 }
 0x8a9   :  { %3039 = vmatprep.subr.mxu0 %v3660_v0 }
 0x8aa   :  { %3040 = vmatpush3.msra.mxu0 %v3847_v4 }
 0x8ab   :  { %3041 = vmatprep.subr.mxu0 %v3660_v0 }
 0x8ac   :  { %3042 = vmatpush3.msra.mxu0 %v3854_v7 }
 0x8ad   :  { %3043 = vmatprep.subr.mxu0 %v3660_v0 }
 0x8ae   :  { %3044 = vmatpush3.msra.mxu0 %v3862_v8 }
 0x8af   :  { %3059 = vmatprep.subr.mxu0 %v3660_v0 }
 0x967   :  { %v714_v32 = vpop.f32.mrf.mxu0 }
 0x968   :  { %v719_v34 = vrot.slane %v714_v32, 2 }
 0x969   :  { %v3025_v35 = vpop.f32.mrf.mxu0 }
 0x96a   :  { %v721_v36 = vadd.f32 %v719_v34, %v3895_v15  ;;  %v730_v15 = vrot.slane %v635_v47, 2 }
 0x96c   :  { %3260 = vtanh.f32 %v721_v36  ;;  %v2826_v38 = vmul.f32 -1.442695, %v721_v36 }
 0x96e   :  { %3262 = vpow2.f32 %v2826_v38 }
 0x979   :  { %v3261_v37 = vpop.eup %3260 }
 0x97a   :  { %734 = vrot.lane.b32.xlu1 %v3261_v37, %s3663_s8 }
 0x97b   :  { %v3263_v39 = vpop.eup %3262 }
 0x97c   :  { %v725_v40 = vadd.f32 1.0, %v3263_v39 }
 0x97e   :  { %3264 = vrcp.f32 %v725_v40 }
 0x98b   :  { %v3265_v41 = vpop.eup %3264 }
 0x98c   :  { %v732_v48 = vmul.f32 %v3265_v41, %v730_v15 }
 0x9ec   :  { %v735_v42 = vpop.permute.xlu1 %734 }
 0x9ed   :  { %v737_v43 = vmul.f32 %v3265_v41, %v735_v42 }
 0x9ef   :  { %739 = vrot.lane.b32.xlu0 %v737_v43, %s3664_s4 }
 0xa61   :  { %v740_v49 = vpop.permute.xlu0 %739 }
 0xa62   :  { %v742_v50 = vadd.f32 %v740_v49, %v732_v48 }
 0xa64   :  { %3266 = vtanh.f32 %v742_v50  ;;  %v757_v14 = vsub.f32 %v742_v50, %v730_v15 }
 0xa66   :  { %v758_v16 = vmul.f32 %v757_v14, %v3901_v30 }
 0xa68   :  { %v760_v17 = vrot.slane %v758_v16, 6 }
 0xa6a   :  { %v762_v18 = vadd.f32 %v760_v17, %v635_v47 }
 0xa71   :  { %v3267_v51 = vpop.eup %3266 }
 0xa72   :  { %745 = vrot.lane.b32.xlu1 %v3267_v51, %s3663_s8 }
 0xae4   :  { %v746_v52 = vpop.permute.xlu1 %745 }
 0xae5   :  { %v3968_v54 = vmul.f32 %v3265_v41, %v746_v52 }
 0xae7   :  { %v751_v56 = vsub.f32 %v3968_v54, %v749_v55 }
 0xae9   :  { %v752_v57 = vmul.f32 %v751_v56, %v3901_v30 }
 0xaeb   :  { %v754_v58 = vrot.slane %v752_v57, 6 }
 0xaed   :  { %v756_v59 = vadd.f32 %v754_v58, %v629_v29 }
 0xaef   :  { %771 = vrot.lane.b32.xlu0 %v756_v59, %s3664_s4 }
 0xb61   :  { %v772_v60 = vpop.permute.xlu0 %771 }
 0xb62   :  { %3035 = vmatmul.mubr.msk.f32.vlgmr.msra.gmra.mxu1 %vm275_vm2, %v772_v60 }
 0xb63   :  { %3049 = vmatpush3.msra.mxu1 %v3841_v2  ;;  %3056 = vmatprep.mubr.msk.f32.mxu1 %vm3661_vm0, %v3660_v0 }
 0xb64   :  { %3050 = vmatprep.subr.mxu1 %v3660_v0 }
 0xb65   :  { %3051 = vmatpush3.msra.mxu1 %v3847_v4 }
 0xb66   :  { %3052 = vmatprep.subr.mxu1 %v3660_v0 }
 0xb67   :  { %3053 = vmatpush3.msra.mxu1 %v3854_v7 }
 0xb68   :  { %3054 = vmatprep.subr.mxu1 %v3660_v0 }
 0xb69   :  { %3055 = vmatpush3.msra.mxu1 %v3862_v8 }
 0xc22   :  { %v841_v61 = vpop.f32.mrf.mxu1 }
 0xc23   :  { %v845_v62 = vadd.f32 %v841_v61, %v3893_v13 }
 0xc24   :  { %v3036_v63 = vpop.f32.mrf.mxu1 }
 0xc25   :  { %3268 = vtanh.f32 %v845_v62  ;;  %v2828_v5 = vmul.f32 -1.442695, %v845_v62 }
 0xc27   :  { %3270 = vpow2.f32 %v2828_v5 }
 0xc32   :  { %v3269_v1 = vpop.eup %3268 }
 0xc33   :  { %855 = vrot.lane.b32.xlu1 %v3269_v1, %s3663_s8 }
 0xc34   :  { %v3271_v6 = vpop.eup %3270 }
 0xc35   :  { %v849_v9 = vadd.f32 1.0, %v3271_v6 }
 0xc37   :  { %873 = vperm.xlu1 %3234, %v179_v3   ;;  %3272 = vrcp.f32 %v849_v9 }
 0xc44   :  { %v3273_v10 = vpop.eup %3272 }
 0xc45   :  { %v853_v19 = vmul.f32 %v3273_v10, %v762_v18 }
 0xca5   :  { %v856_v11 = vpop.permute.xlu1 %855 }
 0xca6   :  { %v858_v12 = vmul.f32 %v3273_v10, %v856_v11 }
 0xca8   :  { %860 = vrot.lane.b32.xlu0 %v858_v12, %s3664_s4 }
 0xcb2   :  { %v3994_v27 = vpop.permute.xlu1 %873 }
 0xd1a   :  { %v861_v20 = vpop.permute.xlu0 %860 }
 0xd1b   :  { %v863_v21 = vadd.f32 %v861_v20, %v853_v19 }
 0xd1d   :  { %3274 = vtanh.f32 %v863_v21 }
 0xd2a   :  { %v3275_v22 = vpop.eup %3274 }
 0xd2b   :  { %866 = vrot.lane.b32.xlu0 %v3275_v22, %s3663_s8 }
 0xd9d   :  { %v867_v23 = vpop.permute.xlu0 %866 }
 0xd9e   :  { %v3991_v25 = vmul.f32 %v3273_v10, %v867_v23 }
 0xda0   :  { %v870_v26 = vsub.f32 %v3991_v25, %v756_v59 }
 0xda2   :  { %v876_v28 = vmul.f32 %v3994_v27, %v870_v26 }
 0xda4   :  { %v877_v29 = vadd.f32 %v876_v28, %v756_v59 }
 0xda6   :  { %888 = vrot.lane.b32.xlu1 %v877_v29, %s3664_s4  ;;  %v993_v49 = vrot.slane %v877_v29, 6 }
 0xe18   :  { %v889_v31 = vpop.permute.xlu1 %888 }
 0xe19   :  { %3046 = vmatmul.mubr.msk.f32.vlgmr.msra.gmra.mxu0 %vm275_vm2, %v889_v31 }
 0xe1a   :  { %3060 = vmatpush3.msra.mxu0 %v3841_v2  ;;  %3067 = vmatprep.mubr.msk.f32.mxu0 %vm3661_vm0, %v3660_v0 }
 0xe1b   :  { %3061 = vmatprep.subr.mxu0 %v3660_v0 }
 0xe1c   :  { %3062 = vmatpush3.msra.mxu0 %v3847_v4 }
 0xe1d   :  { %3063 = vmatprep.subr.mxu0 %v3660_v0 }
 0xe1e   :  { %3064 = vmatpush3.msra.mxu0 %v3854_v7 }
 0xe1f   :  { %3065 = vmatprep.subr.mxu0 %v3660_v0 }
 0xe20   :  { %3066 = vmatpush3.msra.mxu0 %v3862_v8  ;;  %v878_v8 = vsub.f32 %v863_v21, %v762_v18 }
 0xe22   :  { %v879_v41 = vmul.f32 %v878_v8, %v3994_v27  ;;  %v881_v8 = vmul.f32 %v3994_v27, %v3991_v25 }
 0xe24   :  { %v880_v42 = vadd.f32 %v879_v41, %v762_v18 }
 0xe26   :  { %v974_v43 = vrot.slane %v880_v42, 6 }
 0xed9   :  { %v958_v32 = vpop.f32.mrf.mxu0 }
 0xeda   :  { %v963_v34 = vrot.slane %v958_v32, 6 }
 0xedb   :  { %v3047_v35 = vpop.f32.mrf.mxu0 }
 0xedc   :  { %v965_v2 = vadd.f32 %v963_v34, %v3893_v13 }
 0xede   :  { %3276 = vtanh.f32 %v965_v2  ;;  %v2830_v37 = vmul.f32 -1.442695, %v965_v2 }
 0xee0   :  { %3278 = vpow2.f32 %v2830_v37 }
 0xeeb   :  { %v3277_v36 = vpop.eup %3276 }
 0xeec   :  { %978 = vrot.lane.b32.xlu0 %v3277_v36, %s3663_s8 }
 0xeed   :  { %v3279_v4 = vpop.eup %3278 }
 0xeee   :  { %v969_v38 = vadd.f32 1.0, %v3279_v4 }
 0xef0   :  { %3280 = vrcp.f32 %v969_v38 }
 0xefd   :  { %v3281_v39 = vpop.eup %3280 }
 0xefe   :  { %v976_v44 = vmul.f32 %v3281_v39, %v974_v43 }
 0xf5e   :  { %v979_v7 = vpop.permute.xlu0 %978 }
 0xf5f   :  { %v981_v40 = vmul.f32 %v3281_v39, %v979_v7 }
 0xf61   :  { %983 = vrot.lane.b32.xlu1 %v981_v40, %s3664_s4 }
 0xfd3   :  { %v984_v45 = vpop.permute.xlu1 %983 }
 0xfd4   :  { %v986_v46 = vadd.f32 %v984_v45, %v976_v44 }
 0xfd6   :  { %3282 = vtanh.f32 %v986_v46  ;;  %v1001_v9 = vsub.f32 %v986_v46, %v974_v43 }
 0xfd8   :  { %v1002_v10 = vmul.f32 %v1001_v9, %v3994_v27  ;;  %v4094_v9 = vld [vmem:[#allocation11 + $0x18] sm:$0xff] }
 0xfda   :  { %v1004_v11 = vrot.slane %v1002_v10, 2  ;;  %v4097_v10 = vld [vmem:[#allocation11 + $0x10] sm:$0xff] }
 0xfdc   :  { %v1006_v12 = vadd.f32 %v1004_v11, %v880_v42  ;;  %v1378_v11 = vld [vmem:[%s4415_s9 + $0x8] sm:$0xff] }
 0xfde   :  { %v1100_v14 = vrot.slane %v1006_v12, 4 }
 0xfe3   :  { %v3283_v47 = vpop.eup %3282 }
 0xfe4   :  { %989 = vrot.lane.b32.xlu0 %v3283_v47, %s3663_s8 }
0x1056   :  { %v990_v15 = vpop.permute.xlu0 %989 }
0x1057   :  { %v4013_v48 = vmul.f32 %v3281_v39, %v990_v15 }
0x1059   :  { %v995_v50 = vsub.f32 %v4013_v48, %v993_v49 }
0x105b   :  { %v996_v51 = vmul.f32 %v995_v50, %v3994_v27 }
0x105d   :  { %v998_v52 = vrot.slane %v996_v51, 2 }
0x105f   :  { %v1000_v55 = vadd.f32 %v998_v52, %v877_v29  ;;  %v509_v52 = vmul.f32 %v3924_v53, %v3901_v30  ;;  %v1279_v53 = vld [vmem:[%s4451_s6 + $0x10] sm:$0xff] }
0x1061   :  { %1014 = vrot.lane.b32.xlu1 %v1000_v55, %s3664_s4  ;;  %v1119_v21 = vrot.slane %v1000_v55, 4 }
0x10d3   :  { %v1015_v56 = vpop.permute.xlu1 %1014 }
0x10d4   :  { %3057 = vmatmul.mubr.msk.f32.vlgmr.msra.gmra.mxu1 %vm275_vm2, %v1015_v56  ;;  %v1007_v56 = vmul.f32 %v4013_v48, %v3994_v27 }
0x1194   :  { %v1084_v57 = vpop.f32.mrf.mxu1 }
0x1195   :  { %v1089_v58 = vrot.slane %v1084_v57, 4  ;;  %v1280_v57 = vld [vmem:[%s4451_s6 + $0x18] sm:$0xff] }
0x1196   :  { %v3058_v59 = vpop.f32.mrf.mxu1  ;;  %3070 = vmatprep.subr.mxu1 %v1280_v57 }
0x1197   :  { %v1091_v60 = vadd.f32 %v1089_v58, %v3893_v13  ;;  %3071 = vmatpush3.msra.mxu1 %v1280_v57 }
0x1198   :  { %3072 = vmatprep.subr.mxu1 %v1279_v53 }
0x1199   :  { %3284 = vtanh.f32 %v1091_v60  ;;  %v2832_v62 = vmul.f32 -1.442695, %v1091_v60  ;;  %3073 = vmatpush3.msra.mxu1 %v1279_v53 }
0x119b   :  { %3286 = vpow2.f32 %v2832_v62 }
0x11a6   :  { %v3285_v61 = vpop.eup %3284 }
0x11a7   :  { %1104 = vrot.lane.b32.xlu0 %v3285_v61, %s3663_s8 }
0x11a8   :  { %v3287_v63 = vpop.eup %3286 }
0x11a9   :  { %v1095_v1 = vadd.f32 1.0, %v3287_v63 }
0x11ab   :  { %3288 = vrcp.f32 %v1095_v1 }
0x11b8   :  { %v3289_v3 = vpop.eup %3288 }
0x11b9   :  { %v1102_v16 = vmul.f32 %v3289_v3, %v1100_v14 }
0x1219   :  { %v1105_v5 = vpop.permute.xlu0 %1104 }
0x121a   :  { %v1107_v6 = vmul.f32 %v3289_v3, %v1105_v5  ;;  %v1380_v5 = vld [vmem:[%s4415_s9 + $0x18] sm:$0xff] }
0x121b   :  { %3081 = vmatprep.subr.mxu0 %v1380_v5 }
0x121c   :  { %1109 = vrot.lane.b32.xlu1 %v1107_v6, %s3664_s4  ;;  %v1379_v6 = vld [vmem:[%s4415_s9 + $0x10] sm:$0xff] }
0x128e   :  { %v1110_v17 = vpop.permute.xlu1 %1109 }
0x128f   :  { %v1112_v18 = vadd.f32 %v1110_v17, %v1102_v16  ;;  %v4112_v16 = vld [vmem:[#allocation11] sm:$0xff]  ;;  %v2835_v17 = vld [vmem:[#allocation9] ss:$0 sm:$0xff] }
0x1291   :  { %3290 = vtanh.f32 %v1112_v18  ;;  %v1127_v42 = vsub.f32 %v1112_v18, %v1100_v14  ;;  %v4109_v14 = vld [vmem:[#allocation11 + $0x8] sm:$0xff] }
0x1293   :  { %v1128_v43 = vmul.f32 %v1127_v42, %v3994_v27 }
0x1295   :  { %v1130_v44 = vrot.slane %v1128_v43, 4 }
0x1297   :  { %v4044_v45 = vadd.f32 %v1130_v44, %v1006_v12  ;;  %v1377_v12 = vld [vmem:[%s4415_s9] sm:$0xff] }
0x129e   :  { %v3291_v19 = vpop.eup %3290 }
0x129f   :  { %1115 = vrot.lane.b32.xlu0 %v3291_v19, %s3663_s8 }
0x1311   :  { %v1116_v20 = vpop.permute.xlu0 %1115 }
0x1312   :  { %v1118_v22 = vmul.f32 %v3289_v3, %v1116_v20 }
0x1314   :  { %v1121_v23 = vsub.f32 %v1118_v22, %v1119_v21  ;;  %v1133_v41 = vmul.f32 %v1118_v22, %v3994_v27 }
0x1316   :  { %v1122_v26 = vmul.f32 %v1121_v23, %v3994_v27 }
0x1318   :  { %v1124_v28 = vrot.slane %v1122_v26, 4 }
0x131a   :  { %v4025_v29 = vadd.f32 %v1124_v28, %v1000_v55  ;;  %v763_v55 = vmul.f32 %v3968_v54, %v3901_v30  ;;  %v1277_v54 = vld [vmem:[%s4451_s6] sm:$0xff] }
0x131c   :  { %1140 = vrot.lane.b32.xlu1 %v4025_v29, %s3664_s4 }
0x138e   :  { %v1141_v31 = vpop.permute.xlu1 %1140 }
0x138f   :  { %3068 = vmatmul.mubr.msk.f32.vlgmr.msra.gmra.mxu0 %vm275_vm2, %v1141_v31  ;;  %v2838_v31 = vld [vmem:[#allocation12] ss:$0 sm:$0xff] }
0x1390   :  { %3082 = vmatpush3.msra.mxu0 %v1380_v5 }
0x1391   :  { %3083 = vmatprep.subr.mxu0 %v1379_v6 }
0x1392   :  { %3084 = vmatpush3.msra.mxu0 %v1379_v6 }
0x1393   :  { %3085 = vmatprep.subr.mxu0 %v1378_v11 }
0x1394   :  { %3086 = vmatpush3.msra.mxu0 %v1378_v11 }
0x1395   :  { %3087 = vmatprep.subr.mxu0 %v1377_v12 }
0x1396   :  { %3088 = vmatpush3.msra.mxu0 %v1377_v12 }
0x1397   :  { %3103 = vmatprep.subr.mxu0 %v3660_v0 }
0x144f   :  { %v1210_v32 = vpop.f32.mrf.mxu0 }
0x1450   :  { %v1215_v34 = vrot.slane %v1210_v32, 2 }
0x1451   :  { %v3069_v35 = vpop.f32.mrf.mxu0 }
0x1452   :  { %v1217_v2 = vadd.f32 %v1215_v34, %v3893_v13  ;;  %v636_v13 = vmul.f32 %v3947_v24, %v3901_v30  ;;  %v1278_v30 = vld [vmem:[%s4451_s6 + $0x8] sm:$0xff] }
0x1453   :  { %3074 = vmatprep.subr.mxu1 %v1278_v30 }
0x1454   :  { %3292 = vtanh.f32 %v1217_v2  ;;  %v2834_v37 = vmul.f32 -1.442695, %v1217_v2  ;;  %3075 = vmatpush3.msra.mxu1 %v1278_v30 }
0x1455   :  { %3076 = vmatprep.subr.mxu1 %v1277_v54 }
0x1456   :  { %3294 = vpow2.f32 %v2834_v37  ;;  %3077 = vmatpush3.msra.mxu1 %v1277_v54 }
0x1457   :  { %3092 = vmatprep.subr.mxu1 %v3660_v0 }
0x1461   :  { %v3293_v36 = vpop.eup %3292 }
0x1462   :  { %1230 = vrot.lane.b32.xlu0 %v3293_v36, %s3663_s8 }
0x1463   :  { %v3295_v4 = vpop.eup %3294 }
0x1464   :  { %v1221_v38 = vadd.f32 1.0, %v3295_v4  ;;  %v1371_v4 = vld [vmem:[%s4452_s11] sm:$0xff] }
0x1466   :  { %3296 = vrcp.f32 %v1221_v38 }
0x1473   :  { %v3297_v39 = vpop.eup %3296 }
0x14d4   :  { %v1231_v7 = vpop.permute.xlu0 %1230 }
0x14d5   :  { %v1233_v40 = vmul.f32 %v3297_v39, %v1231_v7 }
0x14d7   :  { %1235 = vrot.lane.b32.xlu1 %v1233_v40, %s3664_s4 }
0x14db   :  { %384 = vrot.lane.b32.xlu1 %v3904_v33, %s3664_s4  ;;  %v1226_v33 = vrot.slane %v4044_v45, 2 }
0x14dd   :  { %v1228_v24 = vmul.f32 %v3297_v39, %v1226_v33 }
0x14df   :  { %638 = vrot.lane.b32.xlu1 %v636_v13, %s3664_s4 }
0x14e3   :  { %883 = vrot.lane.b32.xlu1 %v881_v8, %s3664_s4 }
0x14e7   :  { %1135 = vrot.lane.b32.xlu1 %v1133_v41, %s3664_s4 }
0x1549   :  { %v1236_v46 = vpop.permute.xlu1 %1235 }
0x154a   :  { %v4049_v47 = vadd.f32 %v1236_v46, %v1228_v24 }
0x154c   :  { %3298 = vtanh.f32 %v4049_v47 }
0x154d   :  { %v385_v25 = vpop.permute.xlu1 %384 }
0x154e   :  { %388 = vst.msk [vmem:[#allocation2] sm:$0x3] %vm387_vm3, %v385_v25 }
0x1551   :  { %v639_v15 = vpop.permute.xlu1 %638 }
0x1552   :  { %642 = vst.msk [vmem:[#allocation2] sm:$0x30] %vm641_vm4, %v639_v15 }
0x1555   :  { %v884_v49 = vpop.permute.xlu1 %883 }
0x1556   :  { %886 = vst.msk [vmem:[#allocation2 + $0x8] sm:$0x3] %vm387_vm3, %v884_v49 }
0x1559   :  { %v3299_v50 = vpop.eup %3298  ;;  %v1136_v51 = vpop.permute.xlu1 %1135 }
0x155a   :  { %1138 = vst.msk [vmem:[#allocation2 + $0x8] sm:$0x30] %vm641_vm4, %v1136_v51  ;;  %1241 = vrot.lane.b32.xlu0 %v3299_v50, %s3663_s8 }
0x155e   :  { %511 = vrot.lane.b32.xlu0 %v509_v52, %s3664_s4 }
0x1562   :  { %765 = vrot.lane.b32.xlu0 %v763_v55, %s3664_s4 }
0x1566   :  { %1009 = vrot.lane.b32.xlu0 %v1007_v56, %s3664_s4 }
0x15cc   :  { %v1242_v48 = vpop.permute.xlu0 %1241 }
0x15cd   :  { %v4078_v58 = vmul.f32 %v3297_v39, %v1242_v48 }
0x15cf   :  { %v1259_v59 = vmul.f32 %v4078_v58, %v3994_v27 }
0x15d0   :  { %v512_v60 = vpop.permute.xlu0 %511 }
0x15d1   :  { %515 = vst.msk [vmem:[#allocation2] sm:$0xc] %vm514_vm5, %v512_v60  ;;  %1261 = vrot.lane.b32.xlu0 %v1259_v59, %s3664_s4 }
0x15d4   :  { %v766_v61 = vpop.permute.xlu0 %765 }
0x15d5   :  { %769 = vst.msk [vmem:[#allocation2] sm:$0xc0] %vm768_vm6, %v766_v61 }
0x15d8   :  { %v1010_v62 = vpop.permute.xlu0 %1009 }
0x15d9   :  { %1012 = vst.msk [vmem:[#allocation2 + $0x8] sm:$0xc] %vm514_vm5, %v1010_v62 }
0x15dc   :  { %v1275_v63 = vld [vmem:[#allocation2] sm:$0xff] }
0x15dd   :  { %3078 = vmatprep.mubr.msk.f32.mxu1 %vm275_vm2, %v1275_v63 }
0x1643   :  { %v1262_v1 = vpop.permute.xlu0 %1261 }
0x1644   :  { %1264 = vst.msk [vmem:[#allocation2 + $0x8] sm:$0xc0] %vm768_vm6, %v1262_v1 }
0x164b   :  { %v1276_v3 = vld [vmem:[#allocation2 + $0x8] sm:$0xff] }
0x164c   :  { %3079 = vmatmul.mubr.msk.f32.vlgmr.msra.gmra.mxu1 %vm275_vm2, %v1276_v3 }
0x164d   :  { %3100 = vmatprep.mubr.msk.f32.mxu1 %vm3661_vm0, %v3660_v0  ;;  %3093 = vmatpush3.msra.mxu1 %v4094_v9 }
0x164e   :  { %3094 = vmatprep.subr.mxu1 %v3660_v0 }
0x164f   :  { %3095 = vmatpush3.msra.mxu1 %v4097_v10 }
0x1650   :  { %3096 = vmatprep.subr.mxu1 %v3660_v0 }
0x1651   :  { %3097 = vmatpush3.msra.mxu1 %v4109_v14 }
0x1652   :  { %3098 = vmatprep.subr.mxu1 %v3660_v0 }
0x1653   :  { %3099 = vmatpush3.msra.mxu1 %v4112_v16 }
0x1654   :  { %3101 = vmatmul.mubr.f32.vlgmr.msra.gmra.mxu1 %v3660_v0  ;;  %3114 = vmatprep.subr.mxu1 %v3660_v0 }
0x1655   :  { %3115 = vmatpush3.msra.mxu1 %v4094_v9  ;;  %3122 = vmatprep.mubr.msk.f32.mxu1 %vm3661_vm0, %v3660_v0 }
0x1656   :  { %3116 = vmatprep.subr.mxu1 %v3660_v0 }
0x1657   :  { %3117 = vmatpush3.msra.mxu1 %v4097_v10 }
0x1658   :  { %3118 = vmatprep.subr.mxu1 %v3660_v0 }
0x1659   :  { %3119 = vmatpush3.msra.mxu1 %v4109_v14 }
0x165a   :  { %3120 = vmatprep.subr.mxu1 %v3660_v0 }
0x165b   :  { %3121 = vmatpush3.msra.mxu1 %v4112_v16 }
0x165c   :  { %3136 = vmatprep.subr.mxu1 %v3660_v0 }
0x170c   :  { %v3080_v18 = vpop.f32.mrf.mxu1 }
0x170d   :  { %v1366_v19 = vadd.f32 %v3080_v18, %v2835_v17 }
0x170e   :  { %v1360_v20 = vpop.f32.mrf.mxu1 }
0x170f   :  { %v1361_v21 = vadd.f32 %v2835_v17, %v1360_v20 }
0x1711   :  { %3300 = vtanh.f32 %v1361_v21 }
0x1712   :  { %3302 = vtanh.f32 %v1366_v19 }
0x1714   :  { %v1535_v26 = vpop.f32.mrf.mxu1 }
0x1716   :  { %v3102_v28 = vpop.f32.mrf.mxu1 }
0x171e   :  { %v3301_v22 = vpop.eup %3300 }
0x171f   :  { %v3303_v23 = vpop.eup %3302  ;;  %3089 = vmatprep.mubr.msk.f32.mxu0 %vm275_vm2, %v3301_v22 }
0x1720   :  { %3090 = vmatmul.mubr.msk.f32.vlgmr.msra.gmra.mxu0 %vm275_vm2, %v3303_v23 }
0x1721   :  { %3104 = vmatpush3.msra.mxu0 %v4094_v9  ;;  %3111 = vmatprep.mubr.msk.f32.mxu0 %vm3661_vm0, %v3660_v0 }
0x1722   :  { %3105 = vmatprep.subr.mxu0 %v3660_v0 }
0x1723   :  { %3106 = vmatpush3.msra.mxu0 %v4097_v10 }
0x1724   :  { %3107 = vmatprep.subr.mxu0 %v3660_v0 }
0x1725   :  { %3108 = vmatpush3.msra.mxu0 %v4109_v14 }
0x1726   :  { %3109 = vmatprep.subr.mxu0 %v3660_v0 }
0x1727   :  { %3110 = vmatpush3.msra.mxu0 %v4112_v16 }
0x1728   :  { %3125 = vmatprep.subr.mxu0 %v3660_v0 }
0x17e0   :  { %v3091_v32 = vpop.f32.mrf.mxu0 }
0x17e1   :  { %v4140_v34 = vadd.f32 %v3091_v32, %v2838_v31 }
0x17e2   :  { %v1460_v35 = vpop.f32.mrf.mxu0 }
0x17e3   :  { %v4142_v2 = vadd.f32 %v2838_v31, %v1460_v35 }
0x17e5   :  { %v1539_v36 = vadd.f32 %v1535_v26, %v4142_v2 }
0x17e7   :  { %3304 = vtanh.f32 %v1539_v36  ;;  %v2841_v38 = vmul.f32 -1.442695, %v1539_v36 }
0x17e9   :  { %3306 = vpow2.f32 %v2841_v38 }
0x17f4   :  { %v3305_v37 = vpop.eup %3304 }
0x17f5   :  { %1549 = vrot.lane.b32.xlu1 %v3305_v37, %s3663_s8 }
0x17f6   :  { %v3307_v39 = vpop.eup %3306 }
0x17f7   :  { %v1543_v7 = vadd.f32 1.0, %v3307_v39 }
0x17f9   :  { %1566 = vperm.xlu1 %3234, %v1371_v4   ;;  %3308 = vrcp.f32 %v1543_v7 }
0x1806   :  { %v3309_v40 = vpop.eup %3308 }
0x1807   :  { %v1547_v41 = vmul.f32 0.0, %v3309_v40 }
0x1867   :  { %v1550_v13 = vpop.permute.xlu1 %1549 }
0x1868   :  { %v1552_v8 = vmul.f32 %v3309_v40, %v1550_v13 }
0x186a   :  { %1554 = vrot.lane.b32.xlu0 %v1552_v8, %s3664_s4 }
0x1874   :  { %v4151_v25 = vpop.permute.xlu1 %1566 }
0x18dc   :  { %v1555_v42 = vpop.permute.xlu0 %1554 }
0x18dd   :  { %v1557_v43 = vadd.f32 %v1555_v42, %v1547_v41 }
0x18df   :  { %3310 = vtanh.f32 %v1557_v43  ;;  %v1571_v60 = vmul.f32 %v4151_v25, %v1557_v43 }
0x18e1   :  { %v1665_v61 = vrot.slane %v1571_v60, 6 }
0x18ec   :  { %v3311_v44 = vpop.eup %3310 }
0x18ed   :  { %1560 = vrot.lane.b32.xlu0 %v3311_v44, %s3663_s8 }
0x195f   :  { %v1561_v24 = vpop.permute.xlu0 %1560 }
0x1960   :  { %v1563_v46 = vmul.f32 %v3309_v40, %v1561_v24 }
0x1962   :  { %v4154_v15 = vmul.f32 %v4151_v25, %v1563_v46 }
0x1964   :  { %1579 = vrot.lane.b32.xlu1 %v4154_v15, %s3664_s4  ;;  %v1684_v11 = vrot.slane %v4154_v15, 6 }
0x19d6   :  { %v1580_v49 = vpop.permute.xlu1 %1579 }
0x19d7   :  { %3112 = vmatmul.mubr.msk.f32.vlgmr.msra.gmra.mxu0 %vm275_vm2, %v1580_v49 }
0x19d8   :  { %3126 = vmatpush3.msra.mxu0 %v4094_v9  ;;  %3133 = vmatprep.mubr.msk.f32.mxu0 %vm3661_vm0, %v3660_v0 }
0x19d9   :  { %3127 = vmatprep.subr.mxu0 %v3660_v0 }
0x19da   :  { %3128 = vmatpush3.msra.mxu0 %v4097_v10 }
0x19db   :  { %3129 = vmatprep.subr.mxu0 %v3660_v0 }
0x19dc   :  { %3130 = vmatpush3.msra.mxu0 %v4109_v14 }
0x19dd   :  { %3131 = vmatprep.subr.mxu0 %v3660_v0 }
0x19de   :  { %3132 = vmatpush3.msra.mxu0 %v4112_v16 }
0x19df   :  { %3147 = vmatprep.subr.mxu0 %v3660_v0 }
0x1a97   :  { %v1649_v50 = vpop.f32.mrf.mxu0 }
0x1a98   :  { %v1654_v51 = vrot.slane %v1649_v50, 6 }
0x1a99   :  { %v3113_v52 = vpop.f32.mrf.mxu0 }
0x1a9a   :  { %v1656_v55 = vadd.f32 %v1654_v51, %v4142_v2 }
0x1a9c   :  { %3312 = vtanh.f32 %v1656_v55  ;;  %v2843_v57 = vmul.f32 -1.442695, %v1656_v55 }
0x1a9e   :  { %3314 = vpow2.f32 %v2843_v57 }
0x1aa9   :  { %v3313_v56 = vpop.eup %3312 }
0x1aaa   :  { %1669 = vrot.lane.b32.xlu0 %v3313_v56, %s3663_s8 }
0x1aab   :  { %v3315_v53 = vpop.eup %3314 }
0x1aac   :  { %v1660_v30 = vadd.f32 1.0, %v3315_v53 }
0x1aae   :  { %3316 = vrcp.f32 %v1660_v30 }
0x1abb   :  { %v3317_v54 = vpop.eup %3316 }
0x1abc   :  { %v1667_v62 = vmul.f32 %v3317_v54, %v1665_v61 }
0x1b1c   :  { %v1670_v48 = vpop.permute.xlu0 %1669 }
0x1b1d   :  { %v1672_v59 = vmul.f32 %v3317_v54, %v1670_v48 }
0x1b1f   :  { %1674 = vrot.lane.b32.xlu1 %v1672_v59, %s3664_s4 }
0x1b91   :  { %v1675_v63 = vpop.permute.xlu1 %1674 }
0x1b92   :  { %v1677_v1 = vadd.f32 %v1675_v63, %v1667_v62 }
0x1b94   :  { %3318 = vtanh.f32 %v1677_v1  ;;  %v1692_v38 = vsub.f32 %v1677_v1, %v1665_v61 }
0x1b96   :  { %v1693_v39 = vmul.f32 %v1692_v38, %v4151_v25 }
0x1b98   :  { %v1695_v7 = vrot.slane %v1693_v39, 2 }
0x1b9a   :  { %v1697_v40 = vadd.f32 %v1695_v7, %v1571_v60 }
0x1b9c   :  { %v1785_v13 = vrot.slane %v1697_v40, 4 }
0x1ba1   :  { %v3319_v3 = vpop.eup %3318 }
0x1ba2   :  { %1680 = vrot.lane.b32.xlu0 %v3319_v3, %s3663_s8 }
0x1c14   :  { %v1681_v5 = vpop.permute.xlu0 %1680 }
0x1c15   :  { %v1683_v6 = vmul.f32 %v3317_v54, %v1681_v5 }
0x1c17   :  { %v1686_v12 = vsub.f32 %v1683_v6, %v1684_v11 }
0x1c19   :  { %v1687_v17 = vmul.f32 %v1686_v12, %v4151_v25 }
0x1c1b   :  { %v1689_v18 = vrot.slane %v1687_v17, 2 }
0x1c1d   :  { %v1691_v19 = vadd.f32 %v1689_v18, %v4154_v15 }
0x1c1f   :  { %1699 = vrot.lane.b32.xlu1 %v1691_v19, %s3664_s4  ;;  %v1804_v46 = vrot.slane %v1691_v19, 4 }
0x1c91   :  { %v1700_v20 = vpop.permute.xlu1 %1699 }
0x1c92   :  { %3123 = vmatmul.mubr.msk.f32.vlgmr.msra.gmra.mxu1 %vm275_vm2, %v1700_v20 }
0x1c93   :  { %3137 = vmatpush3.msra.mxu1 %v4094_v9  ;;  %3144 = vmatprep.mubr.msk.f32.mxu1 %vm3661_vm0, %v3660_v0 }
0x1c94   :  { %3138 = vmatprep.subr.mxu1 %v3660_v0 }
0x1c95   :  { %3139 = vmatpush3.msra.mxu1 %v4097_v10 }
0x1c96   :  { %3140 = vmatprep.subr.mxu1 %v3660_v0 }
0x1c97   :  { %3141 = vmatpush3.msra.mxu1 %v4109_v14 }
0x1c98   :  { %3142 = vmatprep.subr.mxu1 %v3660_v0 }
0x1c99   :  { %3143 = vmatpush3.msra.mxu1 %v4112_v16 }
0x1c9a   :  { %3158 = vmatprep.subr.mxu1 %v3660_v0 }
0x1d52   :  { %v1769_v21 = vpop.f32.mrf.mxu1 }
0x1d53   :  { %v1774_v22 = vrot.slane %v1769_v21, 4 }
0x1d54   :  { %v3124_v23 = vpop.f32.mrf.mxu1 }
0x1d55   :  { %v1776_v26 = vadd.f32 %v1774_v22, %v4142_v2 }
0x1d57   :  { %3320 = vtanh.f32 %v1776_v26  ;;  %v2845_v31 = vmul.f32 -1.442695, %v1776_v26 }
0x1d59   :  { %3322 = vpow2.f32 %v2845_v31 }
0x1d64   :  { %v3321_v28 = vpop.eup %3320 }
0x1d65   :  { %1789 = vrot.lane.b32.xlu0 %v3321_v28, %s3663_s8 }
0x1d66   :  { %v3323_v32 = vpop.eup %3322 }
0x1d67   :  { %v1780_v35 = vadd.f32 1.0, %v3323_v32 }
0x1d69   :  { %3324 = vrcp.f32 %v1780_v35 }
0x1d76   :  { %v3325_v36 = vpop.eup %3324 }
0x1d77   :  { %v1787_v8 = vmul.f32 %v3325_v36, %v1785_v13 }
0x1dd7   :  { %v1790_v37 = vpop.permute.xlu0 %1789 }
0x1dd8   :  { %v1792_v4 = vmul.f32 %v3325_v36, %v1790_v37 }
0x1dda   :  { %1794 = vrot.lane.b32.xlu1 %v1792_v4, %s3664_s4  ;;  %v1372_v4 = vld [vmem:[%s4452_s11 + $0x8] sm:$0xff] }
0x1e4c   :  { %v1795_v41 = vpop.permute.xlu1 %1794 }
0x1e4d   :  { %v1797_v42 = vadd.f32 %v1795_v41, %v1787_v8 }
0x1e4f   :  { %3326 = vtanh.f32 %v1797_v42  ;;  %v1812_v1 = vsub.f32 %v1797_v42, %v1785_v13 }
0x1e51   :  { %v1813_v3 = vmul.f32 %v1812_v1, %v4151_v25 }
0x1e53   :  { %v1815_v5 = vrot.slane %v1813_v3, 4 }
0x1e55   :  { %v1817_v6 = vadd.f32 %v1815_v5, %v1697_v40 }
0x1e5c   :  { %v3327_v43 = vpop.eup %3326 }
0x1e5d   :  { %1800 = vrot.lane.b32.xlu0 %v3327_v43, %s3663_s8 }
0x1ecf   :  { %v1801_v44 = vpop.permute.xlu0 %1800 }
0x1ed0   :  { %v4194_v24 = vmul.f32 %v3325_v36, %v1801_v44 }
0x1ed2   :  { %v1806_v49 = vsub.f32 %v4194_v24, %v1804_v46 }
0x1ed4   :  { %v1807_v50 = vmul.f32 %v1806_v49, %v4151_v25 }
0x1ed6   :  { %v1809_v51 = vrot.slane %v1807_v50, 4 }
0x1ed8   :  { %v1811_v52 = vadd.f32 %v1809_v51, %v1691_v19 }
0x1eda   :  { %1825 = vrot.lane.b32.xlu1 %v1811_v52, %s3664_s4  ;;  %v1930_v21 = vrot.slane %v1811_v52, 2 }
0x1f4c   :  { %v1826_v55 = vpop.permute.xlu1 %1825 }
0x1f4d   :  { %3134 = vmatmul.mubr.msk.f32.vlgmr.msra.gmra.mxu0 %vm275_vm2, %v1826_v55 }
0x1f4e   :  { %3148 = vmatpush3.msra.mxu0 %v4094_v9  ;;  %3155 = vmatprep.mubr.msk.f32.mxu0 %vm3661_vm0, %v3660_v0 }
0x1f4f   :  { %3149 = vmatprep.subr.mxu0 %v3660_v0 }
0x1f50   :  { %3150 = vmatpush3.msra.mxu0 %v4097_v10 }
0x1f51   :  { %3151 = vmatprep.subr.mxu0 %v3660_v0 }
0x1f52   :  { %3152 = vmatpush3.msra.mxu0 %v4109_v14 }
0x1f53   :  { %3153 = vmatprep.subr.mxu0 %v3660_v0 }
0x1f54   :  { %3154 = vmatpush3.msra.mxu0 %v4112_v16 }
0x1f55   :  { %3169 = vmatprep.subr.mxu0 %v3660_v0 }
0x200d   :  { %v1895_v56 = vpop.f32.mrf.mxu0 }
0x200e   :  { %v1900_v57 = vrot.slane %v1895_v56, 2 }
0x200f   :  { %v3135_v53 = vpop.f32.mrf.mxu0 }
0x2010   :  { %v1902_v30 = vadd.f32 %v1900_v57, %v4142_v2  ;;  %v1911_v2 = vrot.slane %v1817_v6, 2 }
0x2012   :  { %3328 = vtanh.f32 %v1902_v30  ;;  %v2847_v48 = vmul.f32 -1.442695, %v1902_v30 }
0x2014   :  { %3330 = vpow2.f32 %v2847_v48 }
0x201f   :  { %v3329_v54 = vpop.eup %3328 }
0x2020   :  { %1915 = vrot.lane.b32.xlu0 %v3329_v54, %s3663_s8 }
0x2021   :  { %v3331_v59 = vpop.eup %3330 }
0x2022   :  { %v1906_v60 = vadd.f32 1.0, %v3331_v59 }
0x2024   :  { %3332 = vrcp.f32 %v1906_v60 }
0x2031   :  { %v3333_v61 = vpop.eup %3332 }
0x2032   :  { %v1913_v11 = vmul.f32 %v3333_v61, %v1911_v2 }
0x2092   :  { %v1916_v62 = vpop.permute.xlu0 %1915 }
0x2093   :  { %v1918_v63 = vmul.f32 %v3333_v61, %v1916_v62 }
0x2095   :  { %1920 = vrot.lane.b32.xlu1 %v1918_v63, %s3664_s4 }
0x2107   :  { %v1921_v12 = vpop.permute.xlu1 %1920 }
0x2108   :  { %v1923_v17 = vadd.f32 %v1921_v12, %v1913_v11 }
0x210a   :  { %3334 = vtanh.f32 %v1923_v17  ;;  %v1938_v41 = vsub.f32 %v1923_v17, %v1911_v2 }
0x210c   :  { %v1939_v42 = vmul.f32 %v1938_v41, %v4151_v25 }
0x210e   :  { %v1941_v43 = vrot.slane %v1939_v42, 6 }
0x2110   :  { %v1943_v44 = vadd.f32 %v1941_v43, %v1817_v6 }
0x2117   :  { %v3335_v18 = vpop.eup %3334 }
0x2118   :  { %1926 = vrot.lane.b32.xlu0 %v3335_v18, %s3663_s8 }
0x218a   :  { %v1927_v19 = vpop.permute.xlu0 %1926 }
0x218b   :  { %v1929_v20 = vmul.f32 %v3333_v61, %v1927_v19 }
0x218d   :  { %v1932_v22 = vsub.f32 %v1929_v20, %v1930_v21 }
0x218f   :  { %v1933_v23 = vmul.f32 %v1932_v22, %v4151_v25 }
0x2191   :  { %v1935_v26 = vrot.slane %v1933_v23, 6 }
0x2193   :  { %v1937_v28 = vadd.f32 %v1935_v26, %v1811_v52 }
0x2195   :  { %1945 = vrot.lane.b32.xlu1 %v1937_v28, %s3664_s4 }
0x2207   :  { %v1946_v31 = vpop.permute.xlu1 %1945 }
0x2208   :  { %3145 = vmatmul.mubr.msk.f32.vlgmr.msra.gmra.mxu1 %vm275_vm2, %v1946_v31 }
0x2209   :  { %3159 = vmatpush3.msra.mxu1 %v4094_v9  ;;  %3166 = vmatprep.mubr.msk.f32.mxu1 %vm3661_vm0, %v3660_v0 }
0x220a   :  { %3160 = vmatprep.subr.mxu1 %v3660_v0 }
0x220b   :  { %3161 = vmatpush3.msra.mxu1 %v4097_v10 }
0x220c   :  { %3162 = vmatprep.subr.mxu1 %v3660_v0 }
0x220d   :  { %3163 = vmatpush3.msra.mxu1 %v4109_v14 }
0x220e   :  { %3164 = vmatprep.subr.mxu1 %v3660_v0 }
0x220f   :  { %3165 = vmatpush3.msra.mxu1 %v4112_v16 }
0x2210   :  { %3180 = vmatprep.subr.mxu1 %v3660_v0 }
0x22c8   :  { %v2015_v32 = vpop.f32.mrf.mxu1 }
0x22c9   :  { %v2019_v35 = vadd.f32 %v2015_v32, %v4140_v34 }
0x22ca   :  { %v3146_v36 = vpop.f32.mrf.mxu1 }
0x22cb   :  { %3336 = vtanh.f32 %v2019_v35  ;;  %v2849_v38 = vmul.f32 -1.442695, %v2019_v35 }
0x22cd   :  { %3338 = vpow2.f32 %v2849_v38 }
0x22d8   :  { %v3337_v37 = vpop.eup %3336 }
0x22d9   :  { %2029 = vrot.lane.b32.xlu0 %v3337_v37, %s3663_s8 }
0x22da   :  { %v3339_v39 = vpop.eup %3338 }
0x22db   :  { %v2023_v7 = vadd.f32 1.0, %v3339_v39 }
0x22dd   :  { %2047 = vperm.xlu0 %3235, %v1372_v4   ;;  %3340 = vrcp.f32 %v2023_v7 }
0x22ea   :  { %v3341_v40 = vpop.eup %3340 }
0x22eb   :  { %v2027_v46 = vmul.f32 %v3341_v40, %v1943_v44 }
0x234b   :  { %v2030_v13 = vpop.permute.xlu0 %2029 }
0x234c   :  { %v2032_v8 = vmul.f32 %v3341_v40, %v2030_v13 }
0x234e   :  { %2034 = vrot.lane.b32.xlu1 %v2032_v8, %s3664_s4 }
0x2358   :  { %v4239_v57 = vpop.permute.xlu0 %2047 }
0x23c0   :  { %v2035_v49 = vpop.permute.xlu1 %2034 }
0x23c1   :  { %v2037_v50 = vadd.f32 %v2035_v49, %v2027_v46 }
0x23c3   :  { %3342 = vtanh.f32 %v2037_v50 }
0x23d0   :  { %v3343_v51 = vpop.eup %3342 }
0x23d1   :  { %2040 = vrot.lane.b32.xlu1 %v3343_v51, %s3663_s8 }
0x2443   :  { %v2041_v52 = vpop.permute.xlu1 %2040 }
0x2444   :  { %v4236_v55 = vmul.f32 %v3341_v40, %v2041_v52 }
0x2446   :  { %v2044_v56 = vsub.f32 %v4236_v55, %v1937_v28  ;;  %v2055_v41 = vmul.f32 %v4239_v57, %v4236_v55 }
0x2448   :  { %v2050_v53 = vmul.f32 %v4239_v57, %v2044_v56 }
0x244a   :  { %v2051_v30 = vadd.f32 %v2050_v53, %v1937_v28  ;;  %v1818_v53 = vmul.f32 %v4194_v24, %v4151_v25 }
0x244c   :  { %2062 = vrot.lane.b32.xlu1 %v2051_v30, %s3664_s4  ;;  %v2167_v21 = vrot.slane %v2051_v30, 6 }
0x24be   :  { %v2063_v54 = vpop.permute.xlu1 %2062 }
0x24bf   :  { %3156 = vmatmul.mubr.msk.f32.vlgmr.msra.gmra.mxu0 %vm275_vm2, %v2063_v54  ;;  %v2440_v54 = vld [vmem:[#allocation14 + $0x10] sm:$0xff] }
0x24c0   :  { %3170 = vmatpush3.msra.mxu0 %v4094_v9  ;;  %3177 = vmatprep.mubr.msk.f32.mxu0 %vm3661_vm0, %v3660_v0 }
0x24c1   :  { %3171 = vmatprep.subr.mxu0 %v3660_v0 }
0x24c2   :  { %3172 = vmatpush3.msra.mxu0 %v4097_v10 }
0x24c3   :  { %3173 = vmatprep.subr.mxu0 %v3660_v0 }
0x24c4   :  { %3174 = vmatpush3.msra.mxu0 %v4109_v14 }
0x24c5   :  { %3175 = vmatprep.subr.mxu0 %v3660_v0 }
0x24c6   :  { %3176 = vmatpush3.msra.mxu0 %v4112_v16  ;;  %v2052_v16 = vsub.f32 %v2037_v50, %v1943_v44 }
0x24c7   :  { %3191 = vmatprep.subr.mxu0 %v3660_v0 }
0x24c8   :  { %v2053_v5 = vmul.f32 %v2052_v16, %v4239_v57 }
0x24ca   :  { %v2054_v6 = vadd.f32 %v2053_v5, %v1943_v44 }
0x24cc   :  { %v2148_v2 = vrot.slane %v2054_v6, 6 }
0x257f   :  { %v2132_v48 = vpop.f32.mrf.mxu0 }
0x2580   :  { %v2137_v59 = vrot.slane %v2132_v48, 6  ;;  %v2439_v48 = vld [vmem:[#allocation14 + $0x8] sm:$0xff] }
0x2581   :  { %v3157_v9 = vpop.f32.mrf.mxu0 }
0x2582   :  { %v2139_v60 = vadd.f32 %v2137_v59, %v4140_v34  ;;  %v2438_v59 = vld [vmem:[#allocation14] sm:$0xff] }
0x2584   :  { %3344 = vtanh.f32 %v2139_v60  ;;  %v2851_v10 = vmul.f32 -1.442695, %v2139_v60 }
0x2586   :  { %3346 = vpow2.f32 %v2851_v10 }
0x2591   :  { %v3345_v61 = vpop.eup %3344 }
0x2592   :  { %2152 = vrot.lane.b32.xlu0 %v3345_v61, %s3663_s8 }
0x2593   :  { %v3347_v62 = vpop.eup %3346 }
0x2594   :  { %v2143_v63 = vadd.f32 1.0, %v3347_v62  ;;  %v2856_v62 = vld [vmem:[%s4419_s13] ss:$0 sm:$0xff] }
0x2596   :  { %3348 = vrcp.f32 %v2143_v63 }
0x25a3   :  { %v3349_v14 = vpop.eup %3348 }
0x25a4   :  { %v2150_v11 = vmul.f32 %v3349_v14, %v2148_v2 }
0x2604   :  { %v2153_v1 = vpop.permute.xlu0 %2152 }
0x2605   :  { %v2155_v3 = vmul.f32 %v3349_v14, %v2153_v1 }
0x2607   :  { %2157 = vrot.lane.b32.xlu1 %v2155_v3, %s3664_s4 }
0x2679   :  { %v2158_v12 = vpop.permute.xlu1 %2157 }
0x267a   :  { %v2160_v17 = vadd.f32 %v2158_v12, %v2150_v11 }
0x267c   :  { %3350 = vtanh.f32 %v2160_v17  ;;  %v2175_v42 = vsub.f32 %v2160_v17, %v2148_v2 }
0x267e   :  { %v2176_v43 = vmul.f32 %v2175_v42, %v4239_v57 }
0x2680   :  { %v2178_v44 = vrot.slane %v2176_v43, 2 }
0x2682   :  { %v4276_v46 = vadd.f32 %v2178_v44, %v2054_v6 }
0x2684   :  { %v2268_v49 = vrot.slane %v4276_v46, 4 }
0x2689   :  { %v3351_v18 = vpop.eup %3350 }
0x268a   :  { %2163 = vrot.lane.b32.xlu0 %v3351_v18, %s3663_s8 }
0x26fc   :  { %v2164_v19 = vpop.permute.xlu0 %2163 }
0x26fd   :  { %v2166_v20 = vmul.f32 %v3349_v14, %v2164_v19 }
0x26ff   :  { %v2169_v22 = vsub.f32 %v2166_v20, %v2167_v21 }
0x2701   :  { %v2170_v23 = vmul.f32 %v2169_v22, %v4239_v57 }
0x2703   :  { %v2172_v26 = vrot.slane %v2170_v23, 2 }
0x2705   :  { %v4260_v28 = vadd.f32 %v2172_v26, %v2051_v30  ;;  %v2441_v30 = vld [vmem:[#allocation14 + $0x18] sm:$0xff] }
0x2706   :  { %v2555_v26 = vld [vmem:[#allocation15 + $0x18] sm:$0xff] }
0x2707   :  { %2182 = vrot.lane.b32.xlu1 %v4260_v28, %s3664_s4  ;;  %v2287_v12 = vrot.slane %v4260_v28, 4 }
0x2779   :  { %v2183_v31 = vpop.permute.xlu1 %2182 }
0x277a   :  { %3167 = vmatmul.mubr.msk.f32.vlgmr.msra.gmra.mxu1 %vm275_vm2, %v2183_v31 }
0x277b   :  { %3188 = vmatprep.mubr.msk.f32.mxu1 %vm3661_vm0, %v3660_v0  ;;  %3181 = vmatpush3.msra.mxu1 %v2441_v30 }
0x277c   :  { %3182 = vmatprep.subr.mxu1 %v3660_v0 }
0x277d   :  { %3183 = vmatpush3.msra.mxu1 %v2440_v54 }
0x277e   :  { %3184 = vmatprep.subr.mxu1 %v3660_v0 }
0x277f   :  { %3185 = vmatpush3.msra.mxu1 %v2439_v48 }
0x2780   :  { %3186 = vmatprep.subr.mxu1 %v3660_v0 }
0x2781   :  { %3187 = vmatpush3.msra.mxu1 %v2438_v59 }
0x2782   :  { %3202 = vmatprep.subr.mxu1 %v3660_v0 }
0x283a   :  { %v2252_v32 = vpop.f32.mrf.mxu1 }
0x283b   :  { %v2257_v35 = vrot.slane %v2252_v32, 4  ;;  %v2554_v32 = vld [vmem:[#allocation15 + $0x10] sm:$0xff] }
0x283c   :  { %v3168_v36 = vpop.f32.mrf.mxu1 }
0x283d   :  { %v2259_v37 = vadd.f32 %v2257_v35, %v4140_v34  ;;  %v2552_v35 = vld [vmem:[#allocation15] sm:$0xff] }
0x283f   :  { %3352 = vtanh.f32 %v2259_v37  ;;  %v2853_v38 = vmul.f32 -1.442695, %v2259_v37  ;;  %v2858_v37 = vld [vmem:[%s4420_s14] ss:$0 sm:$0xff] }
0x2841   :  { %3354 = vpow2.f32 %v2853_v38  ;;  %v2859_v38 = vld [vmem:[%s4421_s15] ss:$0 sm:$0xff] }
0x284c   :  { %v3353_v4 = vpop.eup %3352 }
0x284d   :  { %2272 = vrot.lane.b32.xlu0 %v3353_v4, %s3663_s8 }
0x284e   :  { %v3355_v39 = vpop.eup %3354 }
0x284f   :  { %v2263_v7 = vadd.f32 1.0, %v3355_v39 }
0x2851   :  { %3356 = vrcp.f32 %v2263_v7 }
0x285e   :  { %v3357_v40 = vpop.eup %3356 }
0x285f   :  { %v2270_v50 = vmul.f32 %v3357_v40, %v2268_v49 }
0x28bf   :  { %v2273_v13 = vpop.permute.xlu0 %2272 }
0x28c0   :  { %v2275_v8 = vmul.f32 %v3357_v40, %v2273_v13  ;;  %v2641_v13 = vld [vmem:[%s4424_s18 + $0x10] sm:$0xff] }
0x28c2   :  { %2277 = vrot.lane.b32.xlu1 %v2275_v8, %s3664_s4  ;;  %v2640_v8 = vld [vmem:[%s4424_s18 + $0x8] sm:$0xff] }
0x28c6   :  { %1574 = vrot.lane.b32.xlu1 %v4154_v15, %s3664_s4 }
0x28ca   :  { %2057 = vrot.lane.b32.xlu1 %v2055_v41, %s3664_s4  ;;  %v2639_v41 = vld [vmem:[%s4424_s18] sm:$0xff] }
0x2934   :  { %v2278_v51 = vpop.permute.xlu1 %2277 }
0x2935   :  { %v4281_v52 = vadd.f32 %v2278_v51, %v2270_v50 }
0x2937   :  { %3358 = vtanh.f32 %v4281_v52 }
0x2938   :  { %v1575_v15 = vpop.permute.xlu1 %1574 }
0x2939   :  { %1577 = vst.msk [vmem:[#allocation2] sm:$0x3] %vm387_vm3, %v1575_v15  ;;  %v2860_v15 = vld [vmem:[%s4423_s17] ss:$0 sm:$0xff] }
0x293c   :  { %v2058_v55 = vpop.permute.xlu1 %2057 }
0x293d   :  { %2060 = vst.msk [vmem:[#allocation2 + $0x4] sm:$0x3] %vm387_vm3, %v2058_v55 }
0x2944   :  { %v3359_v56 = vpop.eup %3358 }
0x2945   :  { %2283 = vrot.lane.b32.xlu0 %v3359_v56, %s3663_s8 }
0x2949   :  { %1820 = vrot.lane.b32.xlu0 %v1818_v53, %s3664_s4 }
0x29b7   :  { %v2284_v9 = vpop.permute.xlu0 %2283 }
0x29b8   :  { %v2286_v25 = vmul.f32 %v3357_v40, %v2284_v9  ;;  %v2642_v40 = vld [vmem:[%s4424_s18 + $0x18] sm:$0xff] }
0x29ba   :  { %v2301_v24 = vmul.f32 %v2286_v25, %v4239_v57  ;;  %v2289_v17 = vsub.f32 %v2286_v25, %v2287_v12  ;;  %v1245_v12 = vrot.slane %v4025_v29, 2 }
0x29bb   :  { %v1821_v60 = vpop.permute.xlu0 %1820 }
0x29bc   :  { %1823 = vst.msk [vmem:[#allocation2 - $0x2] sm:$0x30] %vm641_vm4, %v1821_v60  ;;  %2303 = vrot.lane.b32.xlu0 %v2301_v24, %s3664_s4  ;;  %v2290_v18 = vmul.f32 %v2289_v17, %v4239_v57  ;;  %v2862_v24 = vld [vmem:[%s4425_s19] ss:$0 sm:$0xff]  ;;  %v1247_v17 = vsub.f32 %v4078_v58, %v1245_v12  ;;  %s3665_s19 = smov 96  }
0x29be   :  { %v2292_v19 = vrot.slane %v2290_v18, 4 }
0x29c0   :  { %v4309_v20 = vadd.f32 %v2292_v19, %v4260_v28  ;;  %v2553_v28 = vld [vmem:[#allocation15 + $0x8] sm:$0xff] }
0x2a2e   :  { %v2304_v61 = vpop.permute.xlu0 %2303 }
0x2a2f   :  { %2306 = vst.msk [vmem:[#allocation2 + $0x2] sm:$0x30] %vm641_vm4, %v2304_v61 }
0x2a36   :  { %v2437_v10 = vld [vmem:[#allocation2] sm:$0xff] }
0x2a37   :  { %3189 = vmatmul.mubr.msk.f32.vlgmr.msra.gmra.mxu1 %vm275_vm2, %v2437_v10 }
0x2a38   :  { %3210 = vmatprep.mubr.msk.f32.mxu1 %vm3661_vm0, %v3660_v0  ;;  %3203 = vmatpush3.msra.mxu1 %v2642_v40 }
0x2a39   :  { %3204 = vmatprep.subr.mxu1 %v3660_v0 }
0x2a3a   :  { %3205 = vmatpush3.msra.mxu1 %v2641_v13 }
0x2a3b   :  { %3206 = vmatprep.subr.mxu1 %v3660_v0 }
0x2a3c   :  { %3207 = vmatpush3.msra.mxu1 %v2640_v8 }
0x2a3d   :  { %3208 = vmatprep.subr.mxu1 %v3660_v0 }
0x2a3e   :  { %3209 = vmatpush3.msra.mxu1 %v2639_v41 }
0x2af7   :  { %v2518_v63 = vpop.f32.mrf.mxu1 }
0x2af8   :  { %v2519_v14 = vadd.f32 %v2856_v62, %v2518_v63  ;;  %v2295_v63 = vsub.f32 %v4281_v52, %v2268_v49  ;;  %v1248_v49 = vmul.f32 %v1247_v17, %v3994_v27 }
0x2af9   :  { %v3190_v1 = vpop.f32.mrf.mxu1 }
0x2afa   :  { %v2522_v3 = vsel %vm275_vm2, %v2519_v14, 0.0  ;;  %v1250_v52 = vrot.slane %v1248_v49, 6 }
0x2afb   :  { %2523 = vadd.xlane.f32.xlu1 %v2522_v3  ;;  %v2736_v3 = vld [vmem:[%s4453_s5] sm:$0xff] }
0x2afc   :  { %v1252_v19 = vadd.f32 %v1250_v52, %v4025_v29  ;;  %v2413_v29 = vrot.slane %v4309_v20, 2 }
0x2b84   :  { %v2524_v16 = vpop.xlane.xlu1 %2523 }
0x2b85   :  { %v2526_v5 = vmul.f32 0.03125, %v2524_v16 }
0x2b87   :  { %v2527_v6 = vsub.f32 %v2519_v14, %v2526_v5  ;;  %v2296_v14 = vmul.f32 %v2295_v63, %v4239_v57 }
0x2b89   :  { %v2528_v2 = vmul.f32 %v2527_v6, %v2527_v6  ;;  %v2298_v1 = vrot.slane %v2296_v14, 4 }
0x2b8b   :  { %v2529_v11 = vsel %vm275_vm2, %v2528_v2, 0.0  ;;  %v2300_v16 = vadd.f32 %v2298_v1, %v4276_v46 }
0x2b8c   :  { %2530 = vadd.xlane.f32.xlu0 %v2529_v11 }
0x2b8d   :  { %v2394_v5 = vrot.slane %v2300_v16, 2 }
0x2ba2   :  { %2308 = vrot.lane.b32.xlu0 %v4309_v20, %s3664_s4 }
0x2c15   :  { %v2531_v21 = vpop.xlane.xlu0 %2530 }
0x2c16   :  { %v2532_v22 = vmul.f32 0.03125, %v2531_v21 }
0x2c18   :  { %v2533_v23 = vadd.f32 1e-05, %v2532_v22 }
0x2c19   :  { %v2309_v31 = vpop.permute.xlu0 %2308 }
0x2c1a   :  { %3360 = vrsqrt.f32 %v2533_v23  ;;  %3178 = vmatmul.mubr.msk.f32.vlgmr.msra.gmra.mxu0 %vm275_vm2, %v2309_v31  ;;  %v1253_v31 = vsub.f32 %v4049_v47, %v1226_v33 }
0x2c1b   :  { %3192 = vmatpush3.msra.mxu0 %v2555_v26  ;;  %3199 = vmatprep.mubr.msk.f32.mxu0 %vm3661_vm0, %v3660_v0 }
0x2c1c   :  { %3193 = vmatprep.subr.mxu0 %v3660_v0 }
0x2c1d   :  { %3194 = vmatpush3.msra.mxu0 %v2554_v32 }
0x2c1e   :  { %3195 = vmatprep.subr.mxu0 %v3660_v0 }
0x2c1f   :  { %3196 = vmatpush3.msra.mxu0 %v2553_v28 }
0x2c20   :  { %3197 = vmatprep.subr.mxu0 %v3660_v0 }
0x2c21   :  { %3198 = vmatpush3.msra.mxu0 %v2552_v35 }
0x2c27   :  { %v3361_v36 = vpop.eup %3360 }
0x2c28   :  { %v2535_v4 = vmul.f32 %v3361_v36, %v2527_v6 }
0x2c2a   :  { %v2543_v39 = vmul.f32 %v2858_v37, %v2535_v4  ;;  %v1254_v37 = vmul.f32 %v1253_v31, %v3994_v27 }
0x2c2c   :  { %v2551_v7 = vadd.f32 %v2859_v38, %v2543_v39 }
0x2c2e   :  { %3200 = vmatmul.mubr.msk.f32.vlgmr.msra.gmra.mxu0 %vm275_vm2, %v2551_v7  ;;  %v1256_v7 = vrot.slane %v1254_v37, 6 }
0x2c30   :  { %v1258_v33 = vadd.f32 %v1256_v7, %v4044_v45 }
0x2cda   :  { %v2378_v42 = vpop.f32.mrf.mxu0 }
0x2cdb   :  { %v2383_v43 = vrot.slane %v2378_v42, 2 }
0x2cdc   :  { %v3179_v44 = vpop.f32.mrf.mxu0 }
0x2cdd   :  { %v2385_v50 = vadd.f32 %v2383_v43, %v4140_v34 }
0x2cdf   :  { %3362 = vtanh.f32 %v2385_v50  ;;  %v2855_v54 = vmul.f32 -1.442695, %v2385_v50 }
0x2ce1   :  { %3364 = vpow2.f32 %v2855_v54 }
0x2cec   :  { %v3363_v51 = vpop.eup %3362 }
0x2ced   :  { %2398 = vrot.lane.b32.xlu1 %v3363_v51, %s3663_s8 }
0x2cee   :  { %v2632_v55 = vpop.f32.mrf.mxu0  ;;  %v3365_v48 = vpop.eup %3364 }
0x2cef   :  { %v2633_v0 = vadd.f32 %v2860_v15, %v2632_v55  ;;  %v2389_v34 = vadd.f32 1.0, %v3365_v48 }
0x2cf0   :  { %v3201_v56 = vpop.f32.mrf.mxu0 }
0x2cf1   :  { %vm2636_vm7 = vcmp.ge.f32.partialorder %v2633_v0, 0.0  ;;  %v2637_v53 = vmul.f32 0.01, %v2633_v0  ;;  %3366 = vrcp.f32 %v2389_v34 }
0x2cf3   :  { %v2638_v30 = vsel %vm2636_vm7, %v2633_v0, %v2637_v53 }
0x2cf4   :  { %3211 = vmatmul.mubr.msk.f32.vlgmr.msra.gmra.mxu1 %vm275_vm2, %v2638_v30 }
0x2cfe   :  { %v3367_v59 = vpop.eup %3366 }
0x2cff   :  { %v2396_v6 = vmul.f32 %v3367_v59, %v2394_v5 }
0x2d5f   :  { %v2399_v9 = vpop.permute.xlu1 %2398 }
0x2d60   :  { %v2401_v25 = vmul.f32 %v3367_v59, %v2399_v9 }
0x2d62   :  { %2403 = vrot.lane.b32.xlu1 %v2401_v25, %s3664_s4 }
0x2db4   :  { %v2719_v60 = vpop.f32.mrf.mxu1 }
0x2db5   :  { %v4351_v61 = vadd.f32 %v2862_v24, %v2719_v60 }
0x2db6   :  { %v3212_v10 = vpop.f32.mrf.mxu1 }
0x2db7   :  { %v2723_v62 = vsel %vm193_vm1, %v4351_v61, -inf }
0x2db8   :  { %2724 = vmax.xlane.f32.xlu0 %v2723_v62 }
0x2dce   :  { %2739 = vperm.xlu0 %3235, %v2736_v3  }
0x2dd4   :  { %v2404_v2 = vpop.permute.xlu1 %2403 }
0x2dd5   :  { %v2406_v11 = vadd.f32 %v2404_v2, %v2396_v6 }
0x2dd7   :  { %3368 = vtanh.f32 %v2406_v11  ;;  %v2421_v32 = vsub.f32 %v2406_v11, %v2394_v5 }
0x2dd9   :  { %v2422_v4 = vmul.f32 %v2421_v32, %v4239_v57 }
0x2ddb   :  { %v2424_v40 = vrot.slane %v2422_v4, 6 }
0x2ddd   :  { %v2426_v47 = vadd.f32 %v2424_v40, %v2300_v16 }
0x2de4   :  { %v3369_v18 = vpop.eup %3368 }
0x2de5   :  { %2409 = vrot.lane.b32.xlu1 %v3369_v18, %s3663_s8  ;;  %s3666_s8 = smov [#allocation18]  }
0x2de6   :  { %s2760_s11 = sshll.u32 %s3666_s8, 4  ;;  %s2761_s11 = int_to_ptr.vmem [resolvable:$true] %s2760_s11 }
0x2de7   :  { %s3534_s10 = scalar_lea.vmem %s2761_s11, 32  ;;  %p3539_p13 = scmp.lt.s32.totalorder %s2761_s11, %s2761_s11 }
0x2de8   :  { %p3535_p12 = scmp.ne.s32.totalorder %s2761_s11, %s3534_s10  ;;  %p3540_p0 = scmp.lt.s32.totalorder %s3534_s10, %s3534_s10 }
0x2de9   :  { %1266 = vrot.lane.b32.xlu1 %v1252_v19, %s3664_s4 }
0x2dea   :  { %p3541_p1 = por %p3540_p0, %p3539_p13 }
0x2dec   :  { %p3542_p2 = pnand %p3541_p1, %p3535_p12 }
0x2e41   :  { %v4369_v46 = vpop.xlane.xlu0 %2724 }
0x2e42   :  { %v2726_v21 = vsub.f32 %v4351_v61, %v4369_v46 }
0x2e44   :  { %v2727_v22 = vmul.f32 1.442695, %v2726_v21 }
0x2e46   :  { %3370 = vpow2.f32 %v2727_v22 }
0x2e53   :  { %v3371_v23 = vpop.eup %3370 }
0x2e54   :  { %v2729_v58 = vsel %vm193_vm1, %v3371_v23, 0.0 }
0x2e55   :  { %2730 = vadd.xlane.f32.xlu1 %v2729_v58 }
0x2e57   :  { %v2410_v26 = vpop.permute.xlu1 %2409 }
0x2e58   :  { %v2412_v28 = vmul.f32 %v3367_v59, %v2410_v26 }
0x2e5a   :  { %v2415_v35 = vsub.f32 %v2412_v28, %v2413_v29 }
0x2e5b   :  { %v1267_v36 = vpop.permute.xlu1 %1266 }
0x2e5c   :  { %v2416_v38 = vmul.f32 %v2415_v35, %v4239_v57  ;;  %1269 = vst.msk [vmem:[#allocation18] sm:$0x3] %vm387_vm3, %v1267_v36 }
0x2e5e   :  { %v2418_v39 = vrot.slane %v2416_v38, 6 }
0x2e60   :  { %v2420_v13 = vadd.f32 %v2418_v39, %v4309_v20 }
0x2e62   :  { %2428 = vrot.lane.b32.xlu0 %v2420_v13, %s3664_s4 }
0x2e66   :  { %1271 = vrot.lane.b32.xlu0 %v1258_v33, %s3665_s19  ;;  %2433 = vrot.lane.b32.xlu1 %v2426_v47, %s3665_s19 }
0x2e67   :  { %3545 = shalt.err (!%p3542_p2)
}
0x2e68   :  { %2763 = dma.vmem_to_hbm [thread:$0]  %s2761_s11, 32, %s4427_s21, [#allocation19]   ;;  %v2740_v27 = vpop.permute.xlu0 %2739 }
0x2e69   :  { %s3667_s4 = smov [#allocation21]   ;;  %s3668_s13 = smov [#allocation20]  }
0x2e6a   :  { %s2780_s12 = sshll.u32 %s3667_s4, 4  ;;  %s2770_s16 = sshll.u32 %s3668_s13, 4  ;;  %s2781_s12 = int_to_ptr.vmem [resolvable:$true] %s2780_s12  ;;  %s2771_s16 = int_to_ptr.vmem [resolvable:$true] %s2770_s16 }
0x2e6b   :  { %s3554_s2 = scalar_lea.vmem %s2781_s12, 32  ;;  %p3559_p4 = scmp.lt.s32.totalorder %s2781_s12, %s2781_s12 }
0x2e6c   :  { %p3555_p3 = scmp.ne.s32.totalorder %s2781_s12, %s3554_s2  ;;  %p3560_p5 = scmp.lt.s32.totalorder %s3554_s2, %s3554_s2 }
0x2e6e   :  { %p3561_p6 = por %p3560_p5, %p3559_p4 }
0x2e70   :  { %p3562_p7 = pnand %p3561_p6, %p3555_p3 }
0x2ed4   :  { %v2429_v45 = vpop.permute.xlu0 %2428 }
0x2ed5   :  { %2431 = vst.msk [vmem:[#allocation21] sm:$0x3] %vm387_vm3, %v2429_v45 }
0x2ed6   :  { %3565 = shalt.err (!%p3562_p7)
}
0x2ed7   :  { %2783 = dma.vmem_to_hbm [thread:$0]  %s2781_s12, 32, %s4429_s23, [#allocation22]  }
0x2ed8   :  { %v1272_v57 = vpop.permute.xlu0 %1271  ;;  %s3574_s21 = scalar_lea.vmem %s2771_s16, 32  ;;  %p3579_p9 = scmp.lt.s32.totalorder %s2771_s16, %s2771_s16 }
0x2ed9   :  { %1274 = vst.msk [vmem:[#allocation20] sm:$0x3] %vm387_vm3, %v1272_v57  ;;  %p3575_p8 = scmp.ne.s32.totalorder %s2771_s16, %s3574_s21  ;;  %p3580_p10 = scmp.lt.s32.totalorder %s3574_s21, %s3574_s21 }
0x2edb   :  { %p3581_p11 = por %p3580_p10, %p3579_p9 }
0x2edd   :  { %p3582_p12 = pnand %p3581_p11, %p3575_p8 }
0x2edf   :  { %3585 = shalt.err (!%p3582_p12)
}
0x2ee0   :  { %2773 = dma.vmem_to_hbm [thread:$0]  %s2771_s16, 32, %s4428_s22, [#allocation19]   ;;  %v2731_v20 = vpop.xlane.xlu1 %2730 }
0x2ee1   :  { %s3669_s30 = smov [#allocation23]   ;;  %3372 = vlog2.f32 %v2731_v20 }
0x2ee2   :  { %s2790_s14 = sshll.u32 %s3669_s30, 4  ;;  %s2791_s14 = int_to_ptr.vmem [resolvable:$true] %s2790_s14 }
0x2ee3   :  { %s3594_s23 = scalar_lea.vmem %s2791_s14, 32  ;;  %p3599_p0 = scmp.lt.s32.totalorder %s2791_s14, %s2791_s14 }
0x2ee4   :  { %v2434_v8 = vpop.permute.xlu1 %2433  ;;  %p3595_p13 = scmp.ne.s32.totalorder %s2791_s14, %s3594_s23  ;;  %p3600_p1 = scmp.lt.s32.totalorder %s3594_s23, %s3594_s23 }
0x2ee5   :  { %2436 = vst.msk [vmem:[#allocation23] sm:$0x3] %vm387_vm3, %v2434_v8 }
0x2ee6   :  { %p3601_p2 = por %p3600_p1, %p3599_p0 }
0x2ee8   :  { %p3602_p3 = pnand %p3601_p2, %p3595_p13 }
0x2eea   :  { %3605 = shalt.err (!%p3602_p3)
}
0x2eeb   :  { %2793 = dma.vmem_to_hbm [thread:$0]  %s2791_s14, 32, %s4430_s24, [#allocation22]  }
0x2eec   :  { %s3670_s22 = smov [#allocation17]  }
0x2eed   :  { %s2750_s3 = sshll.u32 %s3670_s22, 4  ;;  %s2751_s3 = int_to_ptr.vmem [resolvable:$true] %s2750_s3 }
0x2eee   :  { %v3373_v41 = vpop.eup %3372  ;;  %s3614_s28 = scalar_lea.vmem %s2751_s3, 128  ;;  %p3619_p5 = scmp.lt.s32.totalorder %s2751_s3, %s2751_s3 }
0x2eef   :  { %v2733_v42 = vmul.f32 0.6931472, %v3373_v41  ;;  %p3615_p4 = scmp.ne.s32.totalorder %s2751_s3, %s3614_s28  ;;  %p3620_p6 = scmp.lt.s32.totalorder %s3614_s28, %s3614_s28 }
0x2ef1   :  { %v2734_v43 = vadd.f32 %v2733_v42, %v4369_v46  ;;  %p3621_p7 = por %p3620_p6, %p3619_p5 }
0x2ef3   :  { %v2735_v44 = vsub.f32 %v4351_v61, %v2734_v43  ;;  %p3622_p8 = pnand %p3621_p7, %p3615_p4 }
0x2ef5   :  { %v2742_v50 = vmul.f32 %v2740_v27, %v2735_v44 }
0x2ef7   :  { %2743 = vst.msk [vmem:[#allocation17] sm:$0xff] %vm193_vm1, %v2742_v50 }
0x2ef8   :  { %3625 = shalt.err (!%p3622_p8)
}
0x2ef9   :  { %s4454_s17 = sld [smem:[#allocation41_spill]] }
0x2eff   :  { %2753 = dma.vmem_to_hbm [thread:$0]  %s2751_s3, 128, %s4454_s17, [#allocation5]  }
0x2f00   :  { %3644 = dma.done.wait [#allocation5], 128  }
0x2f01   :  { %3645 = vsyncadd [#allocation5], 4294967168 }
0x2f02   :  { %3646 = dma.done.wait [#allocation19], 64  }
0x2f03   :  { %3647 = vsyncadd [#allocation19], 4294967232 }
0x2f04   :  { %3648 = dma.done.wait [#allocation22], 64  }
0x2f05   :  { %3649 = vsyncadd [#allocation22], 4294967232 }
0x2f06   :  { %2809 = vsyncpa [#allocation4], 1 }
0x2f07   :  { %2810 = vsyncpa [#allocation7], 1 }
0x2f08   :  { %2811 = vsyncpa [#allocation10], 1 }
0x2f09   :  { %2812 = vsyncpa [#allocation13], 1 }
0x2f0a   :  { %2813 = vsyncpa [#allocation16], 1 }
0x2f0b   :  { %2814 = vsyncpa [#allocation5], 1 }
0x2f0c   :  { %2815 = vsyncpa [#allocation19], 1 }
0x2f0d   :  { %2816 = vsyncpa [#allocation22], 1 }

</bundles_post_ra>
